<compile_context>
chip_gen: v5e
topology: v5e:2x2
jax: 0.10.0
libtpu: 0.0.40
codegen_flags: <defaults>
</compile_context>

<pallas_src>
import functools

import jax
import jax.numpy as jnp
from jax import lax
from jax.experimental import pallas as pl
from jax.experimental.pallas import tpu as pltpu


def _round_up(x, m):
    return (x + m - 1) // m * m


def _sfa_kernel(x2d_ref, idx_ref, out_ref, *, n_views, c, hw, P, tn, kc, num_k):
    """One tile of `tn` voxels, all views.

    x2d_ref : (n_views, num_k, c, kc)  bf16/f32  image features, hw chunked; chunk k
              holds pixels [k*kc, (k+1)*kc), zero-padded past hw.
    idx_ref : (n_views, P, tn) int32   pix_y*w+pix_x, out-of-FOV patterns already set
              to the sentinel `hw` (gathers zero padding -> contributes nothing).
    out_ref : (c, tn) f32              fused feature for this voxel tile.
    """
    feats = []
    wvecs = []

    # Chunk-local pixel index, hoisted (JAX does not CSE broadcast_in_dim).
    base_iota = lax.broadcasted_iota(jnp.int32, (kc, tn), 0)

    for v in range(n_views):
        idx_v = idx_ref[v]  # (P, tn) int32

        def chunk_body(k, feat_acc, idx_v=idx_v, v=v):
            # One-hot count matrix for this hw chunk:
            #   m[r, n] = #patterns of voxel n hitting pixel k*kc + r.
            # Accumulated in f32 (v5e has no bf16 VALU), cast once for the MXU dot
            # (counts <= P are exact in bf16).
            iota = base_iota + k * kc
            m = jnp.zeros((kc, tn), jnp.float32)
            for p in range(P):
                m = m + (idx_v[p:p + 1, :] == iota).astype(jnp.float32)
            src_chunk = x2d_ref[v, k, :, :]                       # (c, kc)
            feat_acc = feat_acc + jnp.dot(
                src_chunk, m.astype(src_chunk.dtype),
                preferred_element_type=jnp.float32)
            return feat_acc

        feat = lax.fori_loop(0, num_k, chunk_body,
                             jnp.zeros((c, tn), jnp.float32),
                             unroll=(num_k <= 4))

        # Number of in-FOV patterns per voxel (sentinel == hw marks out-of-FOV).
        cnt = jnp.sum((idx_v < hw).astype(jnp.float32), axis=0, keepdims=True)
        # EUP reciprocal; invalid voxels already have feat == 0 exactly, so this
        # reproduces the torch 0/0 -> NaN -> 0 path without generating NaNs.
        feat = feat * pl.reciprocal(jnp.maximum(cnt, 1.0), approx=True)
        wv = (cnt > 0.0).astype(jnp.float32)                      # (1, tn)

        feats.append(feat)
        wvecs.append(wv)

    if n_views > 1:
        acc = jnp.zeros((c, tn), jnp.float32)
        eps2 = jnp.float32(1e-16)  # eps^2 with torch.cosine_similarity eps = 1e-8
        for i in range(n_views):
            for j in range(i + 1, n_views):
                wij = wvecs[i] * wvecs[j]
                diff = wvecs[i] - wvecs[j]
                wi_vec = (diff > 0.0).astype(jnp.float32)
                wj_vec = (diff < 0.0).astype(jnp.float32)
                dotij = jnp.sum(feats[i] * feats[j], axis=0, keepdims=True)
                n1 = jnp.sum(feats[i] * feats[i], axis=0, keepdims=True)
                n2 = jnp.sum(feats[j] * feats[j], axis=0, keepdims=True)
                # cosine similarity via rsqrt (EUP) instead of sqrt-then-divide
                cos = dotij * lax.rsqrt(jnp.maximum(n1 * n2, eps2))
                cs = cos * wij
                acc = acc + (cs + wi_vec) * feats[i] + (cs + wj_vec) * feats[j]
        out = acc * jnp.float32(1.0 / (n_views * (n_views - 1)))
    else:
        out = feats[0]

    out_ref[...] = out.astype(out_ref.dtype)


def sfa_forward(x2d, projected_pix, fov_mask, *, scene_size, dataset,
                project_scale, tn=256, kc=256, feat_dtype=jnp.bfloat16):
    """JAX/Pallas equivalent of SFA.forward.

    x2d           : (n_views, c, h, w)  float
    projected_pix : (n_views, N, P, 2)  int   (..., 0)=pix_x, (..., 1)=pix_y
    fov_mask      : (n_views, N, P)     bool
    """
    n_views, c, h, w = x2d.shape
    N, P = projected_pix.shape[1], projected_pix.shape[2]
    hw = h * w
    assert tn % 128 == 0 and kc % 128 == 0

    # ---- flatten + hw-chunk the image features (bf16 halves VMEM, bf16 MXU) -------
    hw_pad = _round_up(max(hw, kc), kc)
    num_k = hw_pad // kc
    x2d_flat = x2d.reshape(n_views, c, hw).astype(feat_dtype)
    if hw_pad > hw:
        x2d_flat = jnp.pad(x2d_flat, ((0, 0), (0, 0), (0, hw_pad - hw)))
    # (n_views, c, num_k, kc) -> (n_views, num_k, c, kc): chunk axis is a major dim
    # so the kernel never slices dynamically along lanes.
    x2d_chunks = jnp.transpose(x2d_flat.reshape(n_views, c, num_k, kc), (0, 2, 1, 3))

    # ---- fold fov_mask into the index (sentinel hw -> zero-padded column) ---------
    pix_x = projected_pix[..., 0].astype(jnp.int32)
    pix_y = projected_pix[..., 1].astype(jnp.int32)
    img_indices = pix_y * w + pix_x                               # (n_views, N, P)
    idx_masked = jnp.where(fov_mask, img_indices, jnp.int32(hw))
    idx_t = jnp.transpose(idx_masked, (0, 2, 1)).astype(jnp.int32)  # (n_views, P, N)

    # ---- pad voxel axis to the tile size (padded voxels -> cnt 0 -> feature 0) ----
    n_pad = _round_up(N, tn)
    if n_pad > N:
        idx_t = jnp.pad(idx_t, ((0, 0), (0, 0), (0, n_pad - N)),
                        constant_values=hw)

    kern = functools.partial(_sfa_kernel, n_views=n_views, c=c, hw=hw, P=P,
                             tn=tn, kc=kc, num_k=num_k)

    # VMEM budget: double-buffered blocks + in-kernel intermediates, with headroom.
    esize = jnp.dtype(feat_dtype).itemsize
    est = (2 * n_views * c * hw_pad * esize            # resident x2d (double-buffered)
           + 2 * n_views * P * tn * 4                  # idx tiles
           + 2 * c * tn * 4                            # out tiles
           + 3 * kc * tn * 4                           # one-hot chunk + iota + cast
           + (n_views + 2) * c * tn * 4)               # per-view feats + accumulators
    vmem_limit = int(min(112 * 2**20, max(32 * 2**20, 2 * est)))

    out = pl.pallas_call(
        kern,
        out_shape=jax.ShapeDtypeStruct((c, n_pad), jnp.float32),
        grid_spec=pltpu.PrefetchScalarGridSpec(
            num_scalar_prefetch=0,
            grid=(n_pad // tn,),
            in_specs=[
                # grid-invariant resident image features
                pl.BlockSpec((n_views, num_k, c, kc), lambda n: (0, 0, 0, 0)),
                pl.BlockSpec((n_views, P, tn), lambda n: (0, 0, n)),
            ],
            out_specs=pl.BlockSpec((c, tn), lambda n: (0, n)),
        ),
        compiler_params=pltpu.CompilerParams(
            dimension_semantics=("parallel",),
            vmem_limit_bytes=vmem_limit),
    )(x2d_chunks, idx_t)

    out = out[:, :N]

    # final reshape to the 3-D scene volume (plain-JAX glue, matches the reference)
    s = project_scale
    sx, sy, sz = scene_size
    if dataset == "NYU":
        x3d = out.reshape(c, sx // s, sz // s, sy // s)
        x3d = jnp.transpose(x3d, (0, 1, 3, 2))
    elif dataset in ("kitti", "tartanair"):
        x3d = out.reshape(c, sx // s, sy // s, sz // s)
    else:
        raise ValueError(f"unknown dataset {dataset}")
    return x3d


if __name__ == "__main__":
    key = jax.random.PRNGKey(0)
    k1, k2, k3 = jax.random.split(key, 3)

    n_views, c, h, w = 2, 4, 16, 16
    scene_size = (8, 8, 4)        # (X, Y, Z)
    project_scale = 1
    N = (scene_size[0] // project_scale) * (scene_size[1] // project_scale) * \
        (scene_size[2] // project_scale)   # 256 voxels
    P = 4                          # sampling patterns per voxel

    x2d = jax.random.normal(k1, (n_views, c, h, w), dtype=jnp.float32)
    # pix_x in [0, w), pix_y in [0, h)  (h == w here)
    projected_pix = jax.random.randint(k2, (n_views, N, P, 2), 0, w, dtype=jnp.int32)
    fov_mask = jax.random.bernoulli(k3, 0.7, (n_views, N, P))

    x3d = sfa_forward(x2d, projected_pix, fov_mask,
                      scene_size=scene_size, dataset="NYU",
                      project_scale=project_scale, tn=256, kc=256)
    x3d = jax.block_until_ready(x3d)

    assert x3d.shape == (c, scene_size[0], scene_size[1], scene_size[2]), x3d.shape
    assert bool(jnp.all(jnp.isfinite(x3d)))
    print("KERNEL_OK")
</pallas_src>

<mosaic_0001>
module attributes {stable_mosaic.version = 11 : i64} {
  func.func @_sfa_kernel(%arg0: i32, %arg1: memref<2x1x4x256xbf16, #tpu.memory_space<vmem>>, %arg2: memref<2x4x256xi32, #tpu.memory_space<vmem>>, %arg3: memref<4x256xf32, #tpu.memory_space<vmem>>) attributes {dimension_semantics = [#tpu.dimension_semantics<parallel>], iteration_bounds = array<i64: 1>, scalar_prefetch = 0 : i64, scratch_operands = 0 : i64, tpu.core_type = #tpu.core_type<tc>, window_params = [{pipeline_mode = #tpu.pipeline_mode<synchronous>, transform_indices = @transform_0, window_bounds = array<i64: 2, 1, 4, 256>}, {transform_indices = @transform_1, window_bounds = array<i64: 2, 4, 256>}, {transform_indices = @transform_2, window_bounds = array<i64: 4, 256>}]} {
    %0 = tpu.iota {dimensions = array<i32: 0>} : vector<256x256xi32>
    %c0 = arith.constant 0 : index
    %c0_0 = arith.constant 0 : index
    %c0_1 = arith.constant 0 : index
    %1 = vector.load %arg2[%c0, %c0_0, %c0_1] : memref<2x4x256xi32, #tpu.memory_space<vmem>>, vector<1x4x256xi32>
    %2 = vector.shape_cast %1 : vector<1x4x256xi32> to vector<4x256xi32>
    %cst = arith.constant 0.000000e+00 : f32
    %3 = vector.broadcast %cst : f32 to vector<4x256xf32>
    %c0_i32 = arith.constant 0 : i32
    %c256_i32 = arith.constant 256 : i32
    %4 = arith.muli %c0_i32, %c256_i32 : i32
    %5 = vector.broadcast %4 : i32 to vector<256x256xi32>
    %6 = arith.addi %0, %5 : vector<256x256xi32>
    %cst_2 = arith.constant 0.000000e+00 : f32
    %7 = vector.broadcast %cst_2 : f32 to vector<256x256xf32>
    %8 = vector.extract_strided_slice %2 {offsets = [0, 0], sizes = [1, 256], strides = [1, 1]} : vector<4x256xi32> to vector<1x256xi32>
    %9 = vector.broadcast %8 : vector<1x256xi32> to vector<256x256xi32>
    %10 = arith.cmpi eq, %9, %6 : vector<256x256xi32>
    %11 = arith.extui %10 : vector<256x256xi1> to vector<256x256xi32>
    %12 = arith.sitofp %11 : vector<256x256xi32> to vector<256x256xf32>
    %13 = arith.addf %7, %12 : vector<256x256xf32>
    %14 = vector.extract_strided_slice %2 {offsets = [1, 0], sizes = [1, 256], strides = [1, 1]} : vector<4x256xi32> to vector<1x256xi32>
    %15 = vector.broadcast %14 : vector<1x256xi32> to vector<256x256xi32>
    %16 = arith.cmpi eq, %15, %6 : vector<256x256xi32>
    %17 = arith.extui %16 : vector<256x256xi1> to vector<256x256xi32>
    %18 = arith.sitofp %17 : vector<256x256xi32> to vector<256x256xf32>
    %19 = arith.addf %13, %18 : vector<256x256xf32>
    %20 = vector.extract_strided_slice %2 {offsets = [2, 0], sizes = [1, 256], strides = [1, 1]} : vector<4x256xi32> to vector<1x256xi32>
    %21 = vector.broadcast %20 : vector<1x256xi32> to vector<256x256xi32>
    %22 = arith.cmpi eq, %21, %6 : vector<256x256xi32>
    %23 = arith.extui %22 : vector<256x256xi1> to vector<256x256xi32>
    %24 = arith.sitofp %23 : vector<256x256xi32> to vector<256x256xf32>
    %25 = arith.addf %19, %24 : vector<256x256xf32>
    %26 = vector.extract_strided_slice %2 {offsets = [3, 0], sizes = [1, 256], strides = [1, 1]} : vector<4x256xi32> to vector<1x256xi32>
    %27 = vector.broadcast %26 : vector<1x256xi32> to vector<256x256xi32>
    %28 = arith.cmpi eq, %27, %6 : vector<256x256xi32>
    %29 = arith.extui %28 : vector<256x256xi1> to vector<256x256xi32>
    %30 = arith.sitofp %29 : vector<256x256xi32> to vector<256x256xf32>
    %31 = arith.addf %25, %30 : vector<256x256xf32>
    %c0_3 = arith.constant 0 : index
    %32 = arith.index_cast %c0_i32 : i32 to index
    %c0_4 = arith.constant 0 : index
    %c0_5 = arith.constant 0 : index
    %33 = vector.load %arg1[%c0_3, %32, %c0_4, %c0_5] : memref<2x1x4x256xbf16, #tpu.memory_space<vmem>>, vector<1x1x4x256xbf16>
    %34 = vector.shape_cast %33 : vector<1x1x4x256xbf16> to vector<4x256xbf16>
    %35 = arith.truncf %31 : vector<256x256xf32> to vector<256x256xbf16>
    %cst_6 = arith.constant dense<0.000000e+00> : vector<4x256xf32>
    %36 = tpu.matmul %34, %35, %cst_6 {dimension_numbers = #tpu.dot_dimension_numbers<[1], [0], [0], [1], [0, 0, 1, 1], [], []>} : vector<4x256xbf16>, vector<256x256xbf16>, vector<4x256xf32> -> vector<4x256xf32>
    %37 = arith.addf %3, %36 : vector<4x256xf32>
    %c1_i32 = arith.constant 1 : i32
    %c256_i32_7 = arith.constant 256 : i32
    %38 = vector.broadcast %c256_i32_7 : i32 to vector<4x256xi32>
    %39 = arith.cmpi slt, %2, %38 : vector<4x256xi32>
    %40 = arith.extui %39 : vector<4x256xi1> to vector<4x256xi32>
    %41 = arith.sitofp %40 : vector<4x256xi32> to vector<4x256xf32>
    %cst_8 = arith.constant dense<0.000000e+00> : vector<256xf32>
    %42 = vector.multi_reduction <add>, %41, %cst_8 [0] : vector<4x256xf32> to vector<256xf32>
    %43 = vector.shape_cast %42 : vector<256xf32> to vector<1x256xf32>
    %cst_9 = arith.constant 1.000000e+00 : f32
    %44 = vector.broadcast %cst_9 : f32 to vector<1x256xf32>
    %45 = arith.maximumf %43, %44 : vector<1x256xf32>
    %46 = tpu.reciprocal %45 {approx = true} : vector<1x256xf32> -> vector<1x256xf32>
    %47 = vector.broadcast %46 : vector<1x256xf32> to vector<4x256xf32>
    %48 = arith.mulf %37, %47 : vector<4x256xf32>
    %cst_10 = arith.constant 0.000000e+00 : f32
    %49 = vector.broadcast %cst_10 : f32 to vector<1x256xf32>
    %50 = arith.cmpf ogt, %43, %49 : vector<1x256xf32>
    %51 = arith.extui %50 : vector<1x256xi1> to vector<1x256xi32>
    %52 = arith.sitofp %51 : vector<1x256xi32> to vector<1x256xf32>
    %c1 = arith.constant 1 : index
    %c0_11 = arith.constant 0 : index
    %c0_12 = arith.constant 0 : index
    %53 = vector.load %arg2[%c1, %c0_11, %c0_12] : memref<2x4x256xi32, #tpu.memory_space<vmem>>, vector<1x4x256xi32>
    %54 = vector.shape_cast %53 : vector<1x4x256xi32> to vector<4x256xi32>
    %cst_13 = arith.constant 0.000000e+00 : f32
    %55 = vector.broadcast %cst_13 : f32 to vector<4x256xf32>
    %c0_i32_14 = arith.constant 0 : i32
    %c256_i32_15 = arith.constant 256 : i32
    %56 = arith.muli %c0_i32_14, %c256_i32_15 : i32
    %57 = vector.broadcast %56 : i32 to vector<256x256xi32>
    %58 = arith.addi %0, %57 : vector<256x256xi32>
    %cst_16 = arith.constant 0.000000e+00 : f32
    %59 = vector.broadcast %cst_16 : f32 to vector<256x256xf32>
    %60 = vector.extract_strided_slice %54 {offsets = [0, 0], sizes = [1, 256], strides = [1, 1]} : vector<4x256xi32> to vector<1x256xi32>
    %61 = vector.broadcast %60 : vector<1x256xi32> to vector<256x256xi32>
    %62 = arith.cmpi eq, %61, %58 : vector<256x256xi32>
    %63 = arith.extui %62 : vector<256x256xi1> to vector<256x256xi32>
    %64 = arith.sitofp %63 : vector<256x256xi32> to vector<256x256xf32>
    %65 = arith.addf %59, %64 : vector<256x256xf32>
    %66 = vector.extract_strided_slice %54 {offsets = [1, 0], sizes = [1, 256], strides = [1, 1]} : vector<4x256xi32> to vector<1x256xi32>
    %67 = vector.broadcast %66 : vector<1x256xi32> to vector<256x256xi32>
    %68 = arith.cmpi eq, %67, %58 : vector<256x256xi32>
    %69 = arith.extui %68 : vector<256x256xi1> to vector<256x256xi32>
    %70 = arith.sitofp %69 : vector<256x256xi32> to vector<256x256xf32>
    %71 = arith.addf %65, %70 : vector<256x256xf32>
    %72 = vector.extract_strided_slice %54 {offsets = [2, 0], sizes = [1, 256], strides = [1, 1]} : vector<4x256xi32> to vector<1x256xi32>
    %73 = vector.broadcast %72 : vector<1x256xi32> to vector<256x256xi32>
    %74 = arith.cmpi eq, %73, %58 : vector<256x256xi32>
    %75 = arith.extui %74 : vector<256x256xi1> to vector<256x256xi32>
    %76 = arith.sitofp %75 : vector<256x256xi32> to vector<256x256xf32>
    %77 = arith.addf %71, %76 : vector<256x256xf32>
    %78 = vector.extract_strided_slice %54 {offsets = [3, 0], sizes = [1, 256], strides = [1, 1]} : vector<4x256xi32> to vector<1x256xi32>
    %79 = vector.broadcast %78 : vector<1x256xi32> to vector<256x256xi32>
    %80 = arith.cmpi eq, %79, %58 : vector<256x256xi32>
    %81 = arith.extui %80 : vector<256x256xi1> to vector<256x256xi32>
    %82 = arith.sitofp %81 : vector<256x256xi32> to vector<256x256xf32>
    %83 = arith.addf %77, %82 : vector<256x256xf32>
    %c1_17 = arith.constant 1 : index
    %84 = arith.index_cast %c0_i32_14 : i32 to index
    %c0_18 = arith.constant 0 : index
    %c0_19 = arith.constant 0 : index
    %85 = vector.load %arg1[%c1_17, %84, %c0_18, %c0_19] : memref<2x1x4x256xbf16, #tpu.memory_space<vmem>>, vector<1x1x4x256xbf16>
    %86 = vector.shape_cast %85 : vector<1x1x4x256xbf16> to vector<4x256xbf16>
    %87 = arith.truncf %83 : vector<256x256xf32> to vector<256x256xbf16>
    %cst_20 = arith.constant dense<0.000000e+00> : vector<4x256xf32>
    %88 = tpu.matmul %86, %87, %cst_20 {dimension_numbers = #tpu.dot_dimension_numbers<[1], [0], [0], [1], [0, 0, 1, 1], [], []>} : vector<4x256xbf16>, vector<256x256xbf16>, vector<4x256xf32> -> vector<4x256xf32>
    %89 = arith.addf %55, %88 : vector<4x256xf32>
    %c1_i32_21 = arith.constant 1 : i32
    %c256_i32_22 = arith.constant 256 : i32
    %90 = vector.broadcast %c256_i32_22 : i32 to vector<4x256xi32>
    %91 = arith.cmpi slt, %54, %90 : vector<4x256xi32>
    %92 = arith.extui %91 : vector<4x256xi1> to vector<4x256xi32>
    %93 = arith.sitofp %92 : vector<4x256xi32> to vector<4x256xf32>
    %cst_23 = arith.constant dense<0.000000e+00> : vector<256xf32>
    %94 = vector.multi_reduction <add>, %93, %cst_23 [0] : vector<4x256xf32> to vector<256xf32>
    %95 = vector.shape_cast %94 : vector<256xf32> to vector<1x256xf32>
    %cst_24 = arith.constant 1.000000e+00 : f32
    %96 = vector.broadcast %cst_24 : f32 to vector<1x256xf32>
    %97 = arith.maximumf %95, %96 : vector<1x256xf32>
    %98 = tpu.reciprocal %97 {approx = true} : vector<1x256xf32> -> vector<1x256xf32>
    %99 = vector.broadcast %98 : vector<1x256xf32> to vector<4x256xf32>
    %100 = arith.mulf %89, %99 : vector<4x256xf32>
    %cst_25 = arith.constant 0.000000e+00 : f32
    %101 = vector.broadcast %cst_25 : f32 to vector<1x256xf32>
    %102 = arith.cmpf ogt, %95, %101 : vector<1x256xf32>
    %103 = arith.extui %102 : vector<1x256xi1> to vector<1x256xi32>
    %104 = arith.sitofp %103 : vector<1x256xi32> to vector<1x256xf32>
    %cst_26 = arith.constant 0.000000e+00 : f32
    %105 = vector.broadcast %cst_26 : f32 to vector<4x256xf32>
    %106 = arith.mulf %52, %104 : vector<1x256xf32>
    %107 = arith.subf %52, %104 : vector<1x256xf32>
    %cst_27 = arith.constant 0.000000e+00 : f32
    %108 = vector.broadcast %cst_27 : f32 to vector<1x256xf32>
    %109 = arith.cmpf ogt, %107, %108 : vector<1x256xf32>
    %110 = arith.extui %109 : vector<1x256xi1> to vector<1x256xi32>
    %111 = arith.sitofp %110 : vector<1x256xi32> to vector<1x256xf32>
    %cst_28 = arith.constant 0.000000e+00 : f32
    %112 = vector.broadcast %cst_28 : f32 to vector<1x256xf32>
    %113 = arith.cmpf olt, %107, %112 : vector<1x256xf32>
    %114 = arith.extui %113 : vector<1x256xi1> to vector<1x256xi32>
    %115 = arith.sitofp %114 : vector<1x256xi32> to vector<1x256xf32>
    %116 = arith.mulf %48, %100 : vector<4x256xf32>
    %cst_29 = arith.constant dense<0.000000e+00> : vector<256xf32>
    %117 = vector.multi_reduction <add>, %116, %cst_29 [0] : vector<4x256xf32> to vector<256xf32>
    %118 = vector.shape_cast %117 : vector<256xf32> to vector<1x256xf32>
    %119 = arith.mulf %48, %48 : vector<4x256xf32>
    %cst_30 = arith.constant dense<0.000000e+00> : vector<256xf32>
    %120 = vector.multi_reduction <add>, %119, %cst_30 [0] : vector<4x256xf32> to vector<256xf32>
    %121 = vector.shape_cast %120 : vector<256xf32> to vector<1x256xf32>
    %122 = arith.mulf %100, %100 : vector<4x256xf32>
    %cst_31 = arith.constant dense<0.000000e+00> : vector<256xf32>
    %123 = vector.multi_reduction <add>, %122, %cst_31 [0] : vector<4x256xf32> to vector<256xf32>
    %124 = vector.shape_cast %123 : vector<256xf32> to vector<1x256xf32>
    %125 = arith.mulf %121, %124 : vector<1x256xf32>
    %cst_32 = arith.constant 1.000000e-16 : f32
    %126 = vector.broadcast %cst_32 : f32 to vector<1x256xf32>
    %127 = arith.maximumf %125, %126 : vector<1x256xf32>
    %128 = math.rsqrt %127 : vector<1x256xf32>
    %129 = arith.mulf %118, %128 : vector<1x256xf32>
    %130 = arith.mulf %129, %106 : vector<1x256xf32>
    %131 = arith.addf %130, %111 : vector<1x256xf32>
    %132 = vector.broadcast %131 : vector<1x256xf32> to vector<4x256xf32>
    %133 = arith.mulf %132, %48 : vector<4x256xf32>
    %134 = arith.addf %105, %133 : vector<4x256xf32>
    %135 = arith.addf %130, %115 : vector<1x256xf32>
    %136 = vector.broadcast %135 : vector<1x256xf32> to vector<4x256xf32>
    %137 = arith.mulf %136, %100 : vector<4x256xf32>
    %138 = arith.addf %134, %137 : vector<4x256xf32>
    %cst_33 = arith.constant 5.000000e-01 : f32
    %139 = vector.broadcast %cst_33 : f32 to vector<4x256xf32>
    %140 = arith.mulf %138, %139 : vector<4x256xf32>
    %c0_34 = arith.constant 0 : index
    %c0_35 = arith.constant 0 : index
    %141 = vector.load %arg3[%c0_34, %c0_35] : memref<4x256xf32, #tpu.memory_space<vmem>>, vector<4x256xf32>
    tpu.vector_store %arg3[%c0_34, %c0_35], %140 {strides = array<i32>} : memref<4x256xf32, #tpu.memory_space<vmem>>, vector<4x256xf32>,
    return
  }
  func.func @transform_0(%arg0: i32) -> (i32, i32, i32, i32) {
    %c0_i32 = arith.constant 0 : i32
    %c0_i32_0 = arith.constant 0 : i32
    %c0_i32_1 = arith.constant 0 : i32
    %c0_i32_2 = arith.constant 0 : i32
    %c0_i32_3 = arith.constant 0 : i32
    return %c0_i32, %c0_i32_0, %c0_i32_1, %c0_i32_2 : i32, i32, i32, i32
  }
  func.func @transform_1(%arg0: i32) -> (i32, i32, i32) {
    %c0_i32 = arith.constant 0 : i32
    %c0_i32_0 = arith.constant 0 : i32
    %c0_i32_1 = arith.constant 0 : i32
    return %c0_i32, %c0_i32_0, %arg0 : i32, i32, i32
  }
  func.func @transform_2(%arg0: i32) -> (i32, i32) {
    %c0_i32 = arith.constant 0 : i32
    %c0_i32_0 = arith.constant 0 : i32
    return %c0_i32, %arg0 : i32, i32
  }
}

</mosaic_0001>

<bundles_post_ra>
// kernel: tpu_custom_call.1
= control target key start
LH: loop header
LB: loop body
LE: loop exit
PB: predicated region body
PF: predicated region fallthrough
CT: control target
= control target key end

     0   :  { %7 = vsyncpa [#allocation3], 0  ;;  %s4953_s0 = inlined_call_operand.hbm [shape: bf16[2,1,4,256], index: 0, kind: input, shape index: {}]   ;;  %s4954_s1 = inlined_call_operand.hbm [shape: s32[2,4,256], index: 1, kind: input, shape index: {}]   ;;  %s4955_s2 = inlined_call_operand.hbm [shape: f32[4,256], index: 2, kind: output, shape index: {}]  }
   0x1   :  { %8 = vsyncpa [#allocation6], 0 }
   0x2   :  { %9 = vsyncpa [#allocation4], 0  ;;  %s14_s11 = sshll.u32 %s4953_s0, 4  ;;  %s3166_s12 = smov [#allocation2]   ;;  %s15_s11 = int_to_ptr.hbm [resolvable:$true] %s14_s11 }
   0x3   :  { %s16_s13 = sshll.u32 %s3166_s12, 4  ;;  %s27_s16 = sshll.u32 %s4954_s1, 4  ;;  %s17_s13 = int_to_ptr.vmem [resolvable:$true] %s16_s13  ;;  %s28_s16 = int_to_ptr.hbm [resolvable:$true] %s27_s16 }
   0x4   :  { %s3167_s17 = smov 64   ;;  %s3168_s18 = smov 4  }
   0x5   :  { %22 = dma.hbm_to_vmem [thread:$0]  %s15_s11, 128, %s17_s13, [#allocation3], %s3167_s17, %s3167_s17, %s3168_s18  }
   0x6   :  { %s3169_s19 = smov [#allocation5]   ;;  %s3170_s21 = smov 128  }
   0x7   :  { %s29_s20 = sshll.u32 %s3169_s19, 4  ;;  %s3171_s22 = smov 8   ;;  %s30_s20 = int_to_ptr.vmem [resolvable:$true] %s29_s20 }
   0x8   :  { %35 = dma.hbm_to_vmem [thread:$0]  %s28_s16, 256, %s30_s20, [#allocation6], %s3170_s21, %s3170_s21, %s3171_s22  }
   0x9   :  { %3160 = dma.done.wait [#allocation3], 128  }
   0xa   :  { %3161 = vsyncadd [#allocation3], 4294967168 }
   0xb   :  { %3162 = dma.done.wait [#allocation6], 256  }
   0xc   :  { %3163 = vsyncadd [#allocation6], 4294967040  ;;  %v44_v0 = vlaneseq  ;;  %v77_v6 = vld [vmem:[#allocation5] sm:$0xff]  ;;  %v3172_v27 = vmov 0.0   ;;  %s3173_s0 = smov [#allocation7]   ;;  %s2533_s25 = sshll.u32 %s4955_s2, 4  ;;  %s2534_s25 = int_to_ptr.hbm [resolvable:$true] %s2533_s25 }
   0xd   :  { %v78_v11 = vperm.slane %v77_v6, 0  ;;  %v338_v12 = vperm.slane %v77_v6, 1  ;;  %v598_v13 = vperm.slane %v77_v6, 2  ;;  %v858_v14 = vperm.slane %v77_v6, 3  ;;  %s2531_s1 = sshll.u32 %s3173_s0, 4  ;;  %s2532_s1 = int_to_ptr.vmem [resolvable:$true] %s2531_s1 }
   0xe   :  { %v3195_v1 = vshrl.u32 %v44_v0, 7  ;;  %v79_v15 = vperm.slane %v77_v6, 4  ;;  %v339_v16 = vperm.slane %v77_v6, 5  ;;  %v599_v17 = vperm.slane %v77_v6, 6 }
   0xf   :  { %v859_v18 = vperm.slane %v77_v6, 7  ;;  %v3221_v19 = vperm.slane %v78_v11, 0  ;;  %v3223_v20 = vperm.slane %v338_v12, 1  ;;  %v3225_v21 = vperm.slane %v598_v13, 2 }
  0x10   :  { %v3198_v2 = vadd.s32 112, %v3195_v1  ;;  %v3201_v3 = vadd.s32 120, %v3195_v1  ;;  %v3204_v4 = vadd.s32 240, %v3195_v1  ;;  %v3207_v5 = vadd.s32 248, %v3195_v1 }
  0x11   :  { %v3210_v7 = vadd.s32 96, %v3195_v1  ;;  %v3213_v8 = vadd.s32 104, %v3195_v1  ;;  %v3216_v9 = vadd.s32 224, %v3195_v1  ;;  %v3219_v10 = vadd.s32 232, %v3195_v1 }
  0x12   :  { %v3227_v22 = vperm.slane %v858_v14, 3  ;;  %v3229_v23 = vperm.slane %v79_v15, 0  ;;  %v3231_v24 = vperm.slane %v339_v16, 1  ;;  %v3233_v25 = vperm.slane %v599_v17, 2 }
  0x13   :  { %v3235_v26 = vperm.slane %v859_v18, 3  ;;  %vm110_vm0 = vcmp.eq.s32.totalorder %v3221_v19, %v3198_v2  ;;  %vm112_vm1 = vcmp.eq.s32.totalorder %v3221_v19, %v3201_v3  ;;  %vm370_vm2 = vcmp.eq.s32.totalorder %v3223_v20, %v3198_v2 }
  0x14   :  { %vm372_vm3 = vcmp.eq.s32.totalorder %v3223_v20, %v3201_v3  ;;  %v2572_v28 = vsel %vm110_vm0, 1.0, %v3172_v27  ;;  %v2574_v29 = vsel %vm112_vm1, 1.0, %v3172_v27  ;;  %v2636_v30 = vsel %vm370_vm2, 1.0, %v3172_v27 }
  0x15   :  { %v2638_v31 = vsel %vm372_vm3, 1.0, %v3172_v27  ;;  %v562_v32 = vadd.f32 %v2636_v30, %v2572_v28  ;;  %vm630_vm4 = vcmp.eq.s32.totalorder %v3225_v21, %v3198_v2  ;;  %vm632_vm5 = vcmp.eq.s32.totalorder %v3225_v21, %v3201_v3 }
  0x16   :  { %v564_v33 = vadd.f32 %v2638_v31, %v2574_v29  ;;  %v2700_v34 = vsel %vm630_vm4, 1.0, %v3172_v27  ;;  %v2702_v35 = vsel %vm632_vm5, 1.0, %v3172_v27  ;;  %vm890_vm6 = vcmp.eq.s32.totalorder %v3227_v22, %v3198_v2 }
  0x17   :  { %vm892_vm7 = vcmp.eq.s32.totalorder %v3227_v22, %v3201_v3  ;;  %v822_v36 = vadd.f32 %v2700_v34, %v562_v32  ;;  %v2764_v38 = vsel %vm890_vm6, 1.0, %v3172_v27  ;;  %vm142_vm8 = vcmp.eq.s32.totalorder %v3221_v19, %v3204_v4 }
  0x18   :  { %v824_v37 = vadd.f32 %v2702_v35, %v564_v33  ;;  %v2766_v39 = vsel %vm892_vm7, 1.0, %v3172_v27  ;;  %vm144_vm9 = vcmp.eq.s32.totalorder %v3221_v19, %v3207_v5  ;;  %vm402_vm10 = vcmp.eq.s32.totalorder %v3223_v20, %v3204_v4 }
  0x19   :  { %vm404_vm11 = vcmp.eq.s32.totalorder %v3223_v20, %v3207_v5  ;;  %v1082_v40 = vadd.f32 %v2764_v38, %v822_v36  ;;  %v2604_v42 = vsel %vm142_vm8, 1.0, %v3172_v27  ;;  %v2606_v43 = vsel %vm144_vm9, 1.0, %v3172_v27 }
  0x1a   :  { %v1084_v41 = vadd.f32 %v2766_v39, %v824_v37  ;;  %v2668_v44 = vsel %vm402_vm10, 1.0, %v3172_v27  ;;  %v2670_v45 = vsel %vm404_vm11, 1.0, %v3172_v27  ;;  %vm662_vm12 = vcmp.eq.s32.totalorder %v3225_v21, %v3204_v4 }
  0x1b   :  { %vm664_vm13 = vcmp.eq.s32.totalorder %v3225_v21, %v3207_v5  ;;  %v594_v47 = vadd.f32 %v2668_v44, %v2604_v42  ;;  %v596_v48 = vadd.f32 %v2670_v45, %v2606_v43  ;;  %v2732_v49 = vsel %vm662_vm12, 1.0, %v3172_v27 }
  0x1c   :  { %v1133_v46 = vpack.c.bf16 %v1084_v41, %v1082_v40  ;;  %v2734_v50 = vsel %vm664_vm13, 1.0, %v3172_v27  ;;  %vm922_vm14 = vcmp.eq.s32.totalorder %v3227_v22, %v3204_v4  ;;  %vm924_vm15 = vcmp.eq.s32.totalorder %v3227_v22, %v3207_v5 }
  0x1d   :  { %vm111_vm0 = vcmp.eq.s32.totalorder %v3229_v23, %v3198_v2  ;;  %v854_v51 = vadd.f32 %v2732_v49, %v594_v47  ;;  %v856_v52 = vadd.f32 %v2734_v50, %v596_v48  ;;  %v2796_v53 = vsel %vm922_vm14, 1.0, %v3172_v27 }
  0x1e   :  { %1157 = vmatpush.bf16.msra.mxu0 %v1133_v46  ;;  %v2798_v54 = vsel %vm924_vm15, 1.0, %v3172_v27  ;;  %vm113_vm1 = vcmp.eq.s32.totalorder %v3229_v23, %v3201_v3  ;;  %v2573_v55 = vsel %vm111_vm0, 1.0, %v3172_v27  ;;  %vm371_vm2 = vcmp.eq.s32.totalorder %v3231_v24, %v3198_v2 }
  0x1f   :  { %vm373_vm3 = vcmp.eq.s32.totalorder %v3231_v24, %v3201_v3  ;;  %v1114_v56 = vadd.f32 %v2796_v53, %v854_v51  ;;  %v1116_v57 = vadd.f32 %v2798_v54, %v856_v52  ;;  %v2575_v58 = vsel %vm113_vm1, 1.0, %v3172_v27 }
  0x20   :  { %v2637_v59 = vsel %vm371_vm2, 1.0, %v3172_v27  ;;  %v2639_v60 = vsel %vm373_vm3, 1.0, %v3172_v27  ;;  %vm631_vm4 = vcmp.eq.s32.totalorder %v3233_v25, %v3198_v2  ;;  %vm633_vm5 = vcmp.eq.s32.totalorder %v3233_v25, %v3201_v3 }
  0x21   :  { %v563_v61 = vadd.f32 %v2637_v59, %v2573_v55  ;;  %v1149_v62 = vpack.c.bf16 %v1116_v57, %v1114_v56  ;;  %v565_v63 = vadd.f32 %v2639_v60, %v2575_v58  ;;  %v2701_v0 = vsel %vm631_vm4, 1.0, %v3172_v27 }
  0x22   :  { %v2703_v6 = vsel %vm633_vm5, 1.0, %v3172_v27  ;;  %vm891_vm6 = vcmp.eq.s32.totalorder %v3235_v26, %v3198_v2  ;;  %vm893_vm7 = vcmp.eq.s32.totalorder %v3235_v26, %v3201_v3  ;;  %vm143_vm8 = vcmp.eq.s32.totalorder %v3229_v23, %v3204_v4 }
  0x23   :  { %v823_v11 = vadd.f32 %v2701_v0, %v563_v61  ;;  %1170 = vmatpush.bf16.msra.mxu1 %v1149_v62  ;;  %v825_v12 = vadd.f32 %v2703_v6, %v565_v63  ;;  %v2765_v13 = vsel %vm891_vm6, 1.0, %v3172_v27  ;;  %v2767_v14 = vsel %vm893_vm7, 1.0, %v3172_v27 }
  0x24   :  { %vm145_vm9 = vcmp.eq.s32.totalorder %v3229_v23, %v3207_v5  ;;  %v2605_v16 = vsel %vm143_vm8, 1.0, %v3172_v27  ;;  %vm403_vm10 = vcmp.eq.s32.totalorder %v3231_v24, %v3204_v4  ;;  %vm405_vm11 = vcmp.eq.s32.totalorder %v3231_v24, %v3207_v5 }
  0x25   :  { %v1083_v15 = vadd.f32 %v2765_v13, %v823_v11  ;;  %v2607_v17 = vsel %vm145_vm9, 1.0, %v3172_v27  ;;  %v1085_v18 = vadd.f32 %v2767_v14, %v825_v12  ;;  %v2669_v28 = vsel %vm403_vm10, 1.0, %v3172_v27 }
  0x26   :  { %vm663_vm12 = vcmp.eq.s32.totalorder %v3233_v25, %v3204_v4  ;;  %v2671_v29 = vsel %vm405_vm11, 1.0, %v3172_v27  ;;  %v595_v30 = vadd.f32 %v2669_v28, %v2605_v16  ;;  %vm665_vm13 = vcmp.eq.s32.totalorder %v3233_v25, %v3207_v5 }
  0x27   :  { %v2733_v31 = vsel %vm663_vm12, 1.0, %v3172_v27  ;;  %v1134_v32 = vpack.c.bf16 %v1085_v18, %v1083_v15  ;;  %v597_v33 = vadd.f32 %v2671_v29, %v2607_v17  ;;  %v2735_v34 = vsel %vm665_vm13, 1.0, %v3172_v27 }
  0x28   :  { %vm923_vm14 = vcmp.eq.s32.totalorder %v3235_v26, %v3204_v4  ;;  %v855_v35 = vadd.f32 %v2733_v31, %v595_v30  ;;  %vm925_vm15 = vcmp.eq.s32.totalorder %v3235_v26, %v3207_v5  ;;  %vm106_vm0 = vcmp.eq.s32.totalorder %v3221_v19, %v3210_v7 }
  0x29   :  { %v2797_v36 = vsel %vm923_vm14, 1.0, %v3172_v27  ;;  %1183 = vmatpush.bf16.msra.mxu2 %v1134_v32  ;;  %v857_v37 = vadd.f32 %v2735_v34, %v597_v33  ;;  %v2799_v38 = vsel %vm925_vm15, 1.0, %v3172_v27  ;;  %vm108_vm1 = vcmp.eq.s32.totalorder %v3221_v19, %v3213_v8 }
  0x2a   :  { %v2568_v39 = vsel %vm106_vm0, 1.0, %v3172_v27  ;;  %v1115_v40 = vadd.f32 %v2797_v36, %v855_v35  ;;  %v2570_v41 = vsel %vm108_vm1, 1.0, %v3172_v27  ;;  %vm366_vm2 = vcmp.eq.s32.totalorder %v3223_v20, %v3210_v7 }
  0x2b   :  { %vm368_vm3 = vcmp.eq.s32.totalorder %v3223_v20, %v3213_v8  ;;  %v1117_v42 = vadd.f32 %v2799_v38, %v857_v37  ;;  %v2632_v43 = vsel %vm366_vm2, 1.0, %v3172_v27  ;;  %vm626_vm4 = vcmp.eq.s32.totalorder %v3225_v21, %v3210_v7 }
  0x2c   :  { %v2634_v44 = vsel %vm368_vm3, 1.0, %v3172_v27  ;;  %v558_v45 = vadd.f32 %v2632_v43, %v2568_v39  ;;  %vm628_vm5 = vcmp.eq.s32.totalorder %v3225_v21, %v3213_v8  ;;  %v2696_v47 = vsel %vm626_vm4, 1.0, %v3172_v27 }
  0x2d   :  { %v560_v46 = vadd.f32 %v2634_v44, %v2570_v41  ;;  %v1150_v48 = vpack.c.bf16 %v1117_v42, %v1115_v40  ;;  %v2698_v49 = vsel %vm628_vm5, 1.0, %v3172_v27  ;;  %vm886_vm6 = vcmp.eq.s32.totalorder %v3227_v22, %v3210_v7 }
  0x2e   :  { %vm888_vm7 = vcmp.eq.s32.totalorder %v3227_v22, %v3213_v8  ;;  %v818_v50 = vadd.f32 %v2696_v47, %v558_v45  ;;  %v2760_v52 = vsel %vm886_vm6, 1.0, %v3172_v27  ;;  %vm138_vm8 = vcmp.eq.s32.totalorder %v3221_v19, %v3216_v9 }
  0x2f   :  { %v820_v51 = vadd.f32 %v2698_v49, %v560_v46  ;;  %v2762_v53 = vsel %vm888_vm7, 1.0, %v3172_v27  ;;  %1196 = vmatpush.bf16.msra.mxu3 %v1150_v48  ;;  %vm140_vm9 = vcmp.eq.s32.totalorder %v3221_v19, %v3219_v10  ;;  %vm398_vm10 = vcmp.eq.s32.totalorder %v3223_v20, %v3216_v9 }
  0x30   :  { %vm400_vm11 = vcmp.eq.s32.totalorder %v3223_v20, %v3219_v10  ;;  %v1078_v54 = vadd.f32 %v2760_v52, %v818_v50  ;;  %v2600_v56 = vsel %vm138_vm8, 1.0, %v3172_v27  ;;  %v2602_v57 = vsel %vm140_vm9, 1.0, %v3172_v27 }
  0x31   :  { %v1080_v55 = vadd.f32 %v2762_v53, %v820_v51  ;;  %v2664_v58 = vsel %vm398_vm10, 1.0, %v3172_v27  ;;  %v2666_v59 = vsel %vm400_vm11, 1.0, %v3172_v27  ;;  %vm658_vm12 = vcmp.eq.s32.totalorder %v3225_v21, %v3216_v9 }
  0x32   :  { %vm660_vm13 = vcmp.eq.s32.totalorder %v3225_v21, %v3219_v10  ;;  %v590_v61 = vadd.f32 %v2664_v58, %v2600_v56  ;;  %v592_v62 = vadd.f32 %v2666_v59, %v2602_v57  ;;  %v2728_v63 = vsel %vm658_vm12, 1.0, %v3172_v27 }
  0x33   :  { %v1131_v60 = vpack.c.bf16 %v1080_v55, %v1078_v54  ;;  %v2730_v0 = vsel %vm660_vm13, 1.0, %v3172_v27  ;;  %vm918_vm14 = vcmp.eq.s32.totalorder %v3227_v22, %v3216_v9  ;;  %vm920_vm15 = vcmp.eq.s32.totalorder %v3227_v22, %v3219_v10 }
  0x34   :  { %vm107_vm0 = vcmp.eq.s32.totalorder %v3229_v23, %v3210_v7  ;;  %v850_v6 = vadd.f32 %v2728_v63, %v590_v61  ;;  %v852_v11 = vadd.f32 %v2730_v0, %v592_v62  ;;  %v2792_v12 = vsel %vm918_vm14, 1.0, %v3172_v27 }
  0x35   :  { %1158 = vmatpush.bf16.msra.mxu0 %v1131_v60  ;;  %v2794_v13 = vsel %vm920_vm15, 1.0, %v3172_v27  ;;  %vm109_vm1 = vcmp.eq.s32.totalorder %v3229_v23, %v3213_v8  ;;  %v2569_v14 = vsel %vm107_vm0, 1.0, %v3172_v27  ;;  %vm367_vm2 = vcmp.eq.s32.totalorder %v3231_v24, %v3210_v7 }
  0x36   :  { %vm369_vm3 = vcmp.eq.s32.totalorder %v3231_v24, %v3213_v8  ;;  %v1110_v15 = vadd.f32 %v2792_v12, %v850_v6  ;;  %v1112_v16 = vadd.f32 %v2794_v13, %v852_v11  ;;  %v2571_v17 = vsel %vm109_vm1, 1.0, %v3172_v27 }
  0x37   :  { %v2633_v18 = vsel %vm367_vm2, 1.0, %v3172_v27  ;;  %v2635_v28 = vsel %vm369_vm3, 1.0, %v3172_v27  ;;  %vm627_vm4 = vcmp.eq.s32.totalorder %v3233_v25, %v3210_v7  ;;  %vm629_vm5 = vcmp.eq.s32.totalorder %v3233_v25, %v3213_v8 }
  0x38   :  { %v559_v29 = vadd.f32 %v2633_v18, %v2569_v14  ;;  %v1147_v30 = vpack.c.bf16 %v1112_v16, %v1110_v15  ;;  %v561_v31 = vadd.f32 %v2635_v28, %v2571_v17  ;;  %v2697_v32 = vsel %vm627_vm4, 1.0, %v3172_v27 }
  0x39   :  { %v2699_v33 = vsel %vm629_vm5, 1.0, %v3172_v27  ;;  %vm887_vm6 = vcmp.eq.s32.totalorder %v3235_v26, %v3210_v7  ;;  %vm889_vm7 = vcmp.eq.s32.totalorder %v3235_v26, %v3213_v8  ;;  %vm139_vm8 = vcmp.eq.s32.totalorder %v3229_v23, %v3216_v9 }
  0x3a   :  { %v819_v34 = vadd.f32 %v2697_v32, %v559_v29  ;;  %1171 = vmatpush.bf16.msra.mxu1 %v1147_v30  ;;  %v821_v35 = vadd.f32 %v2699_v33, %v561_v31  ;;  %v2761_v36 = vsel %vm887_vm6, 1.0, %v3172_v27  ;;  %v2763_v37 = vsel %vm889_vm7, 1.0, %v3172_v27 }
  0x3b   :  { %vm141_vm9 = vcmp.eq.s32.totalorder %v3229_v23, %v3219_v10  ;;  %v2601_v39 = vsel %vm139_vm8, 1.0, %v3172_v27  ;;  %vm399_vm10 = vcmp.eq.s32.totalorder %v3231_v24, %v3216_v9  ;;  %vm401_vm11 = vcmp.eq.s32.totalorder %v3231_v24, %v3219_v10 }
  0x3c   :  { %v1079_v38 = vadd.f32 %v2761_v36, %v819_v34  ;;  %v2603_v40 = vsel %vm141_vm9, 1.0, %v3172_v27  ;;  %v1081_v41 = vadd.f32 %v2763_v37, %v821_v35  ;;  %v2665_v42 = vsel %vm399_vm10, 1.0, %v3172_v27 }
  0x3d   :  { %vm659_vm12 = vcmp.eq.s32.totalorder %v3233_v25, %v3216_v9  ;;  %v2667_v43 = vsel %vm401_vm11, 1.0, %v3172_v27  ;;  %v591_v44 = vadd.f32 %v2665_v42, %v2601_v39  ;;  %vm661_vm13 = vcmp.eq.s32.totalorder %v3233_v25, %v3219_v10 }
  0x3e   :  { %v2729_v45 = vsel %vm659_vm12, 1.0, %v3172_v27  ;;  %v1132_v46 = vpack.c.bf16 %v1081_v41, %v1079_v38  ;;  %v593_v47 = vadd.f32 %v2667_v43, %v2603_v40  ;;  %v2731_v48 = vsel %vm661_vm13, 1.0, %v3172_v27 }
  0x3f   :  { %vm919_vm14 = vcmp.eq.s32.totalorder %v3235_v26, %v3216_v9  ;;  %v851_v49 = vadd.f32 %v2729_v45, %v591_v44  ;;  %vm921_vm15 = vcmp.eq.s32.totalorder %v3235_v26, %v3219_v10  ;;  %v3429_v51 = vadd.s32 80, %v3195_v1 }
  0x40   :  { %v2793_v50 = vsel %vm919_vm14, 1.0, %v3172_v27  ;;  %1184 = vmatpush.bf16.msra.mxu2 %v1132_v46  ;;  %v853_v52 = vadd.f32 %v2731_v48, %v593_v47  ;;  %v2795_v53 = vsel %vm921_vm15, 1.0, %v3172_v27  ;;  %v3433_v54 = vadd.s32 88, %v3195_v1 }
  0x41   :  { %v3436_v55 = vadd.s32 208, %v3195_v1  ;;  %v1111_v56 = vadd.f32 %v2793_v50, %v851_v49  ;;  %vm102_vm0 = vcmp.eq.s32.totalorder %v3221_v19, %v3429_v51  ;;  %vm362_vm1 = vcmp.eq.s32.totalorder %v3223_v20, %v3429_v51 }
  0x42   :  { %vm622_vm2 = vcmp.eq.s32.totalorder %v3225_v21, %v3429_v51  ;;  %v1113_v57 = vadd.f32 %v2795_v53, %v853_v52  ;;  %vm104_vm3 = vcmp.eq.s32.totalorder %v3221_v19, %v3433_v54  ;;  %v2564_v58 = vsel %vm102_vm0, 1.0, %v3172_v27 }
  0x43   :  { %vm364_vm4 = vcmp.eq.s32.totalorder %v3223_v20, %v3433_v54  ;;  %v2566_v59 = vsel %vm104_vm3, 1.0, %v3172_v27  ;;  %v2628_v60 = vsel %vm362_vm1, 1.0, %v3172_v27  ;;  %vm624_vm5 = vcmp.eq.s32.totalorder %v3225_v21, %v3433_v54 }
  0x44   :  { %v2630_v61 = vsel %vm364_vm4, 1.0, %v3172_v27  ;;  %v1148_v62 = vpack.c.bf16 %v1113_v57, %v1111_v56  ;;  %v554_v63 = vadd.f32 %v2628_v60, %v2564_v58  ;;  %v2692_v6 = vsel %vm622_vm2, 1.0, %v3172_v27 }
  0x45   :  { %v556_v0 = vadd.f32 %v2630_v61, %v2566_v59  ;;  %v2694_v11 = vsel %vm624_vm5, 1.0, %v3172_v27  ;;  %vm882_vm6 = vcmp.eq.s32.totalorder %v3227_v22, %v3429_v51  ;;  %vm884_vm7 = vcmp.eq.s32.totalorder %v3227_v22, %v3433_v54 }
  0x46   :  { %v3461_v12 = vadd.s32 216, %v3195_v1  ;;  %1197 = vmatpush.bf16.msra.mxu3 %v1148_v62  ;;  %v814_v13 = vadd.f32 %v2692_v6, %v554_v63  ;;  %v2756_v15 = vsel %vm882_vm6, 1.0, %v3172_v27  ;;  %v2758_v16 = vsel %vm884_vm7, 1.0, %v3172_v27 }
  0x47   :  { %v816_v14 = vadd.f32 %v2694_v11, %v556_v0  ;;  %vm134_vm8 = vcmp.eq.s32.totalorder %v3221_v19, %v3436_v55  ;;  %vm394_vm10 = vcmp.eq.s32.totalorder %v3223_v20, %v3436_v55  ;;  %vm654_vm12 = vcmp.eq.s32.totalorder %v3225_v21, %v3436_v55 }
  0x48   :  { %vm136_vm9 = vcmp.eq.s32.totalorder %v3221_v19, %v3461_v12  ;;  %vm396_vm11 = vcmp.eq.s32.totalorder %v3223_v20, %v3461_v12  ;;  %v1074_v17 = vadd.f32 %v2756_v15, %v814_v13  ;;  %v2596_v28 = vsel %vm134_vm8, 1.0, %v3172_v27 }
  0x49   :  { %v1076_v18 = vadd.f32 %v2758_v16, %v816_v14  ;;  %v2598_v29 = vsel %vm136_vm9, 1.0, %v3172_v27  ;;  %v2660_v30 = vsel %vm394_vm10, 1.0, %v3172_v27  ;;  %v2662_v31 = vsel %vm396_vm11, 1.0, %v3172_v27 }
  0x4a   :  { %vm656_vm13 = vcmp.eq.s32.totalorder %v3225_v21, %v3461_v12  ;;  %v586_v33 = vadd.f32 %v2660_v30, %v2596_v28  ;;  %v588_v34 = vadd.f32 %v2662_v31, %v2598_v29  ;;  %v2724_v35 = vsel %vm654_vm12, 1.0, %v3172_v27 }
  0x4b   :  { %v1129_v32 = vpack.c.bf16 %v1076_v18, %v1074_v17  ;;  %v2726_v36 = vsel %vm656_vm13, 1.0, %v3172_v27  ;;  %vm914_vm14 = vcmp.eq.s32.totalorder %v3227_v22, %v3436_v55  ;;  %vm916_vm15 = vcmp.eq.s32.totalorder %v3227_v22, %v3461_v12 }
  0x4c   :  { %vm103_vm0 = vcmp.eq.s32.totalorder %v3229_v23, %v3429_v51  ;;  %v846_v37 = vadd.f32 %v2724_v35, %v586_v33  ;;  %v848_v38 = vadd.f32 %v2726_v36, %v588_v34  ;;  %v2788_v39 = vsel %vm914_vm14, 1.0, %v3172_v27 }
  0x4d   :  { %1159 = vmatpush.bf16.msra.mxu0 %v1129_v32  ;;  %v2790_v40 = vsel %vm916_vm15, 1.0, %v3172_v27  ;;  %vm105_vm1 = vcmp.eq.s32.totalorder %v3229_v23, %v3433_v54  ;;  %v2565_v41 = vsel %vm103_vm0, 1.0, %v3172_v27  ;;  %vm363_vm2 = vcmp.eq.s32.totalorder %v3231_v24, %v3429_v51 }
  0x4e   :  { %vm365_vm3 = vcmp.eq.s32.totalorder %v3231_v24, %v3433_v54  ;;  %v1106_v42 = vadd.f32 %v2788_v39, %v846_v37  ;;  %v1108_v43 = vadd.f32 %v2790_v40, %v848_v38  ;;  %v2567_v44 = vsel %vm105_vm1, 1.0, %v3172_v27 }
  0x4f   :  { %v2629_v45 = vsel %vm363_vm2, 1.0, %v3172_v27  ;;  %v2631_v46 = vsel %vm365_vm3, 1.0, %v3172_v27  ;;  %vm623_vm4 = vcmp.eq.s32.totalorder %v3233_v25, %v3429_v51  ;;  %vm625_vm5 = vcmp.eq.s32.totalorder %v3233_v25, %v3433_v54 }
  0x50   :  { %v555_v47 = vadd.f32 %v2629_v45, %v2565_v41  ;;  %v1145_v48 = vpack.c.bf16 %v1108_v43, %v1106_v42  ;;  %v557_v49 = vadd.f32 %v2631_v46, %v2567_v44  ;;  %v2693_v50 = vsel %vm623_vm4, 1.0, %v3172_v27 }
  0x51   :  { %v2695_v52 = vsel %vm625_vm5, 1.0, %v3172_v27  ;;  %vm883_vm6 = vcmp.eq.s32.totalorder %v3235_v26, %v3429_v51  ;;  %vm885_vm7 = vcmp.eq.s32.totalorder %v3235_v26, %v3433_v54  ;;  %vm135_vm8 = vcmp.eq.s32.totalorder %v3229_v23, %v3436_v55 }
  0x52   :  { %v815_v53 = vadd.f32 %v2693_v50, %v555_v47  ;;  %1172 = vmatpush.bf16.msra.mxu1 %v1145_v48  ;;  %v817_v56 = vadd.f32 %v2695_v52, %v557_v49  ;;  %v2757_v57 = vsel %vm883_vm6, 1.0, %v3172_v27  ;;  %v2759_v58 = vsel %vm885_vm7, 1.0, %v3172_v27 }
  0x53   :  { %vm137_vm9 = vcmp.eq.s32.totalorder %v3229_v23, %v3461_v12  ;;  %v2597_v60 = vsel %vm135_vm8, 1.0, %v3172_v27  ;;  %vm395_vm10 = vcmp.eq.s32.totalorder %v3231_v24, %v3436_v55  ;;  %vm397_vm11 = vcmp.eq.s32.totalorder %v3231_v24, %v3461_v12 }
  0x54   :  { %v1075_v59 = vadd.f32 %v2757_v57, %v815_v53  ;;  %v2599_v61 = vsel %vm137_vm9, 1.0, %v3172_v27  ;;  %v1077_v62 = vadd.f32 %v2759_v58, %v817_v56  ;;  %v2661_v63 = vsel %vm395_vm10, 1.0, %v3172_v27 }
  0x55   :  { %vm655_vm12 = vcmp.eq.s32.totalorder %v3233_v25, %v3436_v55  ;;  %v2663_v0 = vsel %vm397_vm11, 1.0, %v3172_v27  ;;  %v587_v6 = vadd.f32 %v2661_v63, %v2597_v60  ;;  %vm657_vm13 = vcmp.eq.s32.totalorder %v3233_v25, %v3461_v12 }
  0x56   :  { %v2725_v11 = vsel %vm655_vm12, 1.0, %v3172_v27  ;;  %v1130_v13 = vpack.c.bf16 %v1077_v62, %v1075_v59  ;;  %v589_v14 = vadd.f32 %v2663_v0, %v2599_v61  ;;  %v2727_v15 = vsel %vm657_vm13, 1.0, %v3172_v27 }
  0x57   :  { %vm915_vm14 = vcmp.eq.s32.totalorder %v3235_v26, %v3436_v55  ;;  %v847_v16 = vadd.f32 %v2725_v11, %v587_v6  ;;  %vm917_vm15 = vcmp.eq.s32.totalorder %v3235_v26, %v3461_v12  ;;  %v3537_v18 = vadd.s32 64, %v3195_v1 }
  0x58   :  { %v2789_v17 = vsel %vm915_vm14, 1.0, %v3172_v27  ;;  %1185 = vmatpush.bf16.msra.mxu2 %v1130_v13  ;;  %v849_v28 = vadd.f32 %v2727_v15, %v589_v14  ;;  %v2791_v29 = vsel %vm917_vm15, 1.0, %v3172_v27  ;;  %v3541_v30 = vadd.s32 72, %v3195_v1 }
  0x59   :  { %v3544_v31 = vadd.s32 192, %v3195_v1  ;;  %v1107_v32 = vadd.f32 %v2789_v17, %v847_v16  ;;  %vm98_vm0 = vcmp.eq.s32.totalorder %v3221_v19, %v3537_v18  ;;  %vm358_vm1 = vcmp.eq.s32.totalorder %v3223_v20, %v3537_v18 }
  0x5a   :  { %vm618_vm2 = vcmp.eq.s32.totalorder %v3225_v21, %v3537_v18  ;;  %v1109_v33 = vadd.f32 %v2791_v29, %v849_v28  ;;  %vm100_vm3 = vcmp.eq.s32.totalorder %v3221_v19, %v3541_v30  ;;  %v2560_v34 = vsel %vm98_vm0, 1.0, %v3172_v27 }
  0x5b   :  { %vm360_vm4 = vcmp.eq.s32.totalorder %v3223_v20, %v3541_v30  ;;  %v2562_v35 = vsel %vm100_vm3, 1.0, %v3172_v27  ;;  %v2624_v36 = vsel %vm358_vm1, 1.0, %v3172_v27  ;;  %vm620_vm5 = vcmp.eq.s32.totalorder %v3225_v21, %v3541_v30 }
  0x5c   :  { %v2626_v37 = vsel %vm360_vm4, 1.0, %v3172_v27  ;;  %v1146_v38 = vpack.c.bf16 %v1109_v33, %v1107_v32  ;;  %v550_v39 = vadd.f32 %v2624_v36, %v2560_v34  ;;  %v2688_v41 = vsel %vm618_vm2, 1.0, %v3172_v27 }
  0x5d   :  { %v552_v40 = vadd.f32 %v2626_v37, %v2562_v35  ;;  %v2690_v42 = vsel %vm620_vm5, 1.0, %v3172_v27  ;;  %vm878_vm6 = vcmp.eq.s32.totalorder %v3227_v22, %v3537_v18  ;;  %vm880_vm7 = vcmp.eq.s32.totalorder %v3227_v22, %v3541_v30 }
  0x5e   :  { %v3569_v43 = vadd.s32 200, %v3195_v1  ;;  %1198 = vmatpush.bf16.msra.mxu3 %v1146_v38  ;;  %v810_v44 = vadd.f32 %v2688_v41, %v550_v39  ;;  %v2752_v46 = vsel %vm878_vm6, 1.0, %v3172_v27  ;;  %v2754_v47 = vsel %vm880_vm7, 1.0, %v3172_v27 }
  0x5f   :  { %v812_v45 = vadd.f32 %v2690_v42, %v552_v40  ;;  %vm130_vm8 = vcmp.eq.s32.totalorder %v3221_v19, %v3544_v31  ;;  %vm390_vm10 = vcmp.eq.s32.totalorder %v3223_v20, %v3544_v31  ;;  %vm650_vm12 = vcmp.eq.s32.totalorder %v3225_v21, %v3544_v31 }
  0x60   :  { %vm132_vm9 = vcmp.eq.s32.totalorder %v3221_v19, %v3569_v43  ;;  %vm392_vm11 = vcmp.eq.s32.totalorder %v3223_v20, %v3569_v43  ;;  %v1070_v48 = vadd.f32 %v2752_v46, %v810_v44  ;;  %v2592_v50 = vsel %vm130_vm8, 1.0, %v3172_v27 }
  0x61   :  { %v1072_v49 = vadd.f32 %v2754_v47, %v812_v45  ;;  %v2594_v52 = vsel %vm132_vm9, 1.0, %v3172_v27  ;;  %v2656_v53 = vsel %vm390_vm10, 1.0, %v3172_v27  ;;  %v2658_v56 = vsel %vm392_vm11, 1.0, %v3172_v27 }
  0x62   :  { %vm652_vm13 = vcmp.eq.s32.totalorder %v3225_v21, %v3569_v43  ;;  %v582_v58 = vadd.f32 %v2656_v53, %v2592_v50  ;;  %v584_v59 = vadd.f32 %v2658_v56, %v2594_v52  ;;  %v2720_v60 = vsel %vm650_vm12, 1.0, %v3172_v27 }
  0x63   :  { %v1127_v57 = vpack.c.bf16 %v1072_v49, %v1070_v48  ;;  %v2722_v61 = vsel %vm652_vm13, 1.0, %v3172_v27  ;;  %vm910_vm14 = vcmp.eq.s32.totalorder %v3227_v22, %v3544_v31  ;;  %vm912_vm15 = vcmp.eq.s32.totalorder %v3227_v22, %v3569_v43 }
  0x64   :  { %vm99_vm0 = vcmp.eq.s32.totalorder %v3229_v23, %v3537_v18  ;;  %v842_v62 = vadd.f32 %v2720_v60, %v582_v58  ;;  %v844_v63 = vadd.f32 %v2722_v61, %v584_v59  ;;  %v2784_v0 = vsel %vm910_vm14, 1.0, %v3172_v27 }
  0x65   :  { %1160 = vmatpush.bf16.msra.mxu0 %v1127_v57  ;;  %v2786_v6 = vsel %vm912_vm15, 1.0, %v3172_v27  ;;  %vm101_vm1 = vcmp.eq.s32.totalorder %v3229_v23, %v3541_v30  ;;  %v2561_v11 = vsel %vm99_vm0, 1.0, %v3172_v27  ;;  %vm359_vm2 = vcmp.eq.s32.totalorder %v3231_v24, %v3537_v18 }
  0x66   :  { %vm361_vm3 = vcmp.eq.s32.totalorder %v3231_v24, %v3541_v30  ;;  %v1102_v13 = vadd.f32 %v2784_v0, %v842_v62  ;;  %v1104_v14 = vadd.f32 %v2786_v6, %v844_v63  ;;  %v2563_v15 = vsel %vm101_vm1, 1.0, %v3172_v27 }
  0x67   :  { %v2625_v16 = vsel %vm359_vm2, 1.0, %v3172_v27  ;;  %v2627_v17 = vsel %vm361_vm3, 1.0, %v3172_v27  ;;  %vm619_vm4 = vcmp.eq.s32.totalorder %v3233_v25, %v3537_v18  ;;  %vm621_vm5 = vcmp.eq.s32.totalorder %v3233_v25, %v3541_v30 }
  0x68   :  { %v551_v28 = vadd.f32 %v2625_v16, %v2561_v11  ;;  %v1143_v29 = vpack.c.bf16 %v1104_v14, %v1102_v13  ;;  %v553_v32 = vadd.f32 %v2627_v17, %v2563_v15  ;;  %v2689_v33 = vsel %vm619_vm4, 1.0, %v3172_v27 }
  0x69   :  { %v2691_v34 = vsel %vm621_vm5, 1.0, %v3172_v27  ;;  %vm879_vm6 = vcmp.eq.s32.totalorder %v3235_v26, %v3537_v18  ;;  %vm881_vm7 = vcmp.eq.s32.totalorder %v3235_v26, %v3541_v30  ;;  %vm131_vm8 = vcmp.eq.s32.totalorder %v3229_v23, %v3544_v31 }
  0x6a   :  { %v811_v35 = vadd.f32 %v2689_v33, %v551_v28  ;;  %1173 = vmatpush.bf16.msra.mxu1 %v1143_v29  ;;  %v813_v36 = vadd.f32 %v2691_v34, %v553_v32  ;;  %v2753_v37 = vsel %vm879_vm6, 1.0, %v3172_v27  ;;  %v2755_v38 = vsel %vm881_vm7, 1.0, %v3172_v27 }
  0x6b   :  { %vm133_vm9 = vcmp.eq.s32.totalorder %v3229_v23, %v3569_v43  ;;  %v2593_v40 = vsel %vm131_vm8, 1.0, %v3172_v27  ;;  %vm391_vm10 = vcmp.eq.s32.totalorder %v3231_v24, %v3544_v31  ;;  %vm393_vm11 = vcmp.eq.s32.totalorder %v3231_v24, %v3569_v43 }
  0x6c   :  { %v1071_v39 = vadd.f32 %v2753_v37, %v811_v35  ;;  %v2595_v41 = vsel %vm133_vm9, 1.0, %v3172_v27  ;;  %v1073_v42 = vadd.f32 %v2755_v38, %v813_v36  ;;  %v2657_v44 = vsel %vm391_vm10, 1.0, %v3172_v27 }
  0x6d   :  { %vm651_vm12 = vcmp.eq.s32.totalorder %v3233_v25, %v3544_v31  ;;  %v2659_v45 = vsel %vm393_vm11, 1.0, %v3172_v27  ;;  %v583_v46 = vadd.f32 %v2657_v44, %v2593_v40  ;;  %vm653_vm13 = vcmp.eq.s32.totalorder %v3233_v25, %v3569_v43 }
  0x6e   :  { %v2721_v47 = vsel %vm651_vm12, 1.0, %v3172_v27  ;;  %v1128_v48 = vpack.c.bf16 %v1073_v42, %v1071_v39  ;;  %v585_v49 = vadd.f32 %v2659_v45, %v2595_v41  ;;  %v2723_v50 = vsel %vm653_vm13, 1.0, %v3172_v27 }
  0x6f   :  { %vm911_vm14 = vcmp.eq.s32.totalorder %v3235_v26, %v3544_v31  ;;  %v843_v52 = vadd.f32 %v2721_v47, %v583_v46  ;;  %vm913_vm15 = vcmp.eq.s32.totalorder %v3235_v26, %v3569_v43  ;;  %v3645_v56 = vadd.s32 48, %v3195_v1 }
  0x70   :  { %v2785_v53 = vsel %vm911_vm14, 1.0, %v3172_v27  ;;  %1186 = vmatpush.bf16.msra.mxu2 %v1128_v48  ;;  %v845_v57 = vadd.f32 %v2723_v50, %v585_v49  ;;  %v2787_v58 = vsel %vm913_vm15, 1.0, %v3172_v27  ;;  %v3649_v59 = vadd.s32 56, %v3195_v1 }
  0x71   :  { %v3652_v60 = vadd.s32 176, %v3195_v1  ;;  %v1103_v61 = vadd.f32 %v2785_v53, %v843_v52  ;;  %vm94_vm0 = vcmp.eq.s32.totalorder %v3221_v19, %v3645_v56  ;;  %vm354_vm1 = vcmp.eq.s32.totalorder %v3223_v20, %v3645_v56 }
  0x72   :  { %vm614_vm2 = vcmp.eq.s32.totalorder %v3225_v21, %v3645_v56  ;;  %v1105_v62 = vadd.f32 %v2787_v58, %v845_v57  ;;  %vm96_vm3 = vcmp.eq.s32.totalorder %v3221_v19, %v3649_v59  ;;  %v2556_v63 = vsel %vm94_vm0, 1.0, %v3172_v27 }
  0x73   :  { %vm356_vm4 = vcmp.eq.s32.totalorder %v3223_v20, %v3649_v59  ;;  %v2558_v0 = vsel %vm96_vm3, 1.0, %v3172_v27  ;;  %v2620_v6 = vsel %vm354_vm1, 1.0, %v3172_v27  ;;  %vm616_vm5 = vcmp.eq.s32.totalorder %v3225_v21, %v3649_v59 }
  0x74   :  { %v2622_v11 = vsel %vm356_vm4, 1.0, %v3172_v27  ;;  %v1144_v13 = vpack.c.bf16 %v1105_v62, %v1103_v61  ;;  %v546_v14 = vadd.f32 %v2620_v6, %v2556_v63  ;;  %v2684_v16 = vsel %vm614_vm2, 1.0, %v3172_v27 }
  0x75   :  { %v548_v15 = vadd.f32 %v2622_v11, %v2558_v0  ;;  %v2686_v17 = vsel %vm616_vm5, 1.0, %v3172_v27  ;;  %vm874_vm6 = vcmp.eq.s32.totalorder %v3227_v22, %v3645_v56  ;;  %vm876_vm7 = vcmp.eq.s32.totalorder %v3227_v22, %v3649_v59 }
  0x76   :  { %v3677_v28 = vadd.s32 184, %v3195_v1  ;;  %1199 = vmatpush.bf16.msra.mxu3 %v1144_v13  ;;  %v806_v29 = vadd.f32 %v2684_v16, %v546_v14  ;;  %v2748_v33 = vsel %vm874_vm6, 1.0, %v3172_v27  ;;  %v2750_v34 = vsel %vm876_vm7, 1.0, %v3172_v27 }
  0x77   :  { %v808_v32 = vadd.f32 %v2686_v17, %v548_v15  ;;  %vm126_vm8 = vcmp.eq.s32.totalorder %v3221_v19, %v3652_v60  ;;  %vm386_vm10 = vcmp.eq.s32.totalorder %v3223_v20, %v3652_v60  ;;  %vm646_vm12 = vcmp.eq.s32.totalorder %v3225_v21, %v3652_v60 }
  0x78   :  { %vm128_vm9 = vcmp.eq.s32.totalorder %v3221_v19, %v3677_v28  ;;  %vm388_vm11 = vcmp.eq.s32.totalorder %v3223_v20, %v3677_v28  ;;  %v1066_v35 = vadd.f32 %v2748_v33, %v806_v29  ;;  %v2588_v37 = vsel %vm126_vm8, 1.0, %v3172_v27 }
  0x79   :  { %v1068_v36 = vadd.f32 %v2750_v34, %v808_v32  ;;  %v2590_v38 = vsel %vm128_vm9, 1.0, %v3172_v27  ;;  %v2652_v39 = vsel %vm386_vm10, 1.0, %v3172_v27  ;;  %v2654_v40 = vsel %vm388_vm11, 1.0, %v3172_v27 }
  0x7a   :  { %vm648_vm13 = vcmp.eq.s32.totalorder %v3225_v21, %v3677_v28  ;;  %v578_v42 = vadd.f32 %v2652_v39, %v2588_v37  ;;  %v580_v44 = vadd.f32 %v2654_v40, %v2590_v38  ;;  %v2716_v45 = vsel %vm646_vm12, 1.0, %v3172_v27 }
  0x7b   :  { %v1125_v41 = vpack.c.bf16 %v1068_v36, %v1066_v35  ;;  %v2718_v46 = vsel %vm648_vm13, 1.0, %v3172_v27  ;;  %vm906_vm14 = vcmp.eq.s32.totalorder %v3227_v22, %v3652_v60  ;;  %vm908_vm15 = vcmp.eq.s32.totalorder %v3227_v22, %v3677_v28 }
  0x7c   :  { %vm95_vm0 = vcmp.eq.s32.totalorder %v3229_v23, %v3645_v56  ;;  %v838_v47 = vadd.f32 %v2716_v45, %v578_v42  ;;  %v840_v48 = vadd.f32 %v2718_v46, %v580_v44  ;;  %v2780_v49 = vsel %vm906_vm14, 1.0, %v3172_v27 }
  0x7d   :  { %1161 = vmatpush.bf16.msra.mxu0 %v1125_v41  ;;  %v2782_v50 = vsel %vm908_vm15, 1.0, %v3172_v27  ;;  %vm97_vm1 = vcmp.eq.s32.totalorder %v3229_v23, %v3649_v59  ;;  %v2557_v52 = vsel %vm95_vm0, 1.0, %v3172_v27  ;;  %vm355_vm2 = vcmp.eq.s32.totalorder %v3231_v24, %v3645_v56 }
  0x7e   :  { %vm357_vm3 = vcmp.eq.s32.totalorder %v3231_v24, %v3649_v59  ;;  %v1098_v53 = vadd.f32 %v2780_v49, %v838_v47  ;;  %v1100_v57 = vadd.f32 %v2782_v50, %v840_v48  ;;  %v2559_v58 = vsel %vm97_vm1, 1.0, %v3172_v27 }
  0x7f   :  { %v2621_v61 = vsel %vm355_vm2, 1.0, %v3172_v27  ;;  %v2623_v62 = vsel %vm357_vm3, 1.0, %v3172_v27  ;;  %vm615_vm4 = vcmp.eq.s32.totalorder %v3233_v25, %v3645_v56  ;;  %vm617_vm5 = vcmp.eq.s32.totalorder %v3233_v25, %v3649_v59 }
  0x80   :  { %v547_v63 = vadd.f32 %v2621_v61, %v2557_v52  ;;  %v1141_v0 = vpack.c.bf16 %v1100_v57, %v1098_v53  ;;  %v549_v6 = vadd.f32 %v2623_v62, %v2559_v58  ;;  %v2685_v11 = vsel %vm615_vm4, 1.0, %v3172_v27 }
  0x81   :  { %v2687_v13 = vsel %vm617_vm5, 1.0, %v3172_v27  ;;  %vm875_vm6 = vcmp.eq.s32.totalorder %v3235_v26, %v3645_v56  ;;  %vm877_vm7 = vcmp.eq.s32.totalorder %v3235_v26, %v3649_v59  ;;  %vm127_vm8 = vcmp.eq.s32.totalorder %v3229_v23, %v3652_v60 }
  0x82   :  { %v807_v14 = vadd.f32 %v2685_v11, %v547_v63  ;;  %1174 = vmatpush.bf16.msra.mxu1 %v1141_v0  ;;  %v809_v15 = vadd.f32 %v2687_v13, %v549_v6  ;;  %v2749_v16 = vsel %vm875_vm6, 1.0, %v3172_v27  ;;  %v2751_v17 = vsel %vm877_vm7, 1.0, %v3172_v27 }
  0x83   :  { %vm129_vm9 = vcmp.eq.s32.totalorder %v3229_v23, %v3677_v28  ;;  %v2589_v32 = vsel %vm127_vm8, 1.0, %v3172_v27  ;;  %vm387_vm10 = vcmp.eq.s32.totalorder %v3231_v24, %v3652_v60  ;;  %vm389_vm11 = vcmp.eq.s32.totalorder %v3231_v24, %v3677_v28 }
  0x84   :  { %v1067_v29 = vadd.f32 %v2749_v16, %v807_v14  ;;  %v2591_v33 = vsel %vm129_vm9, 1.0, %v3172_v27  ;;  %v1069_v34 = vadd.f32 %v2751_v17, %v809_v15  ;;  %v2653_v35 = vsel %vm387_vm10, 1.0, %v3172_v27 }
  0x85   :  { %vm647_vm12 = vcmp.eq.s32.totalorder %v3233_v25, %v3652_v60  ;;  %v2655_v36 = vsel %vm389_vm11, 1.0, %v3172_v27  ;;  %v579_v37 = vadd.f32 %v2653_v35, %v2589_v32  ;;  %vm649_vm13 = vcmp.eq.s32.totalorder %v3233_v25, %v3677_v28 }
  0x86   :  { %v2717_v38 = vsel %vm647_vm12, 1.0, %v3172_v27  ;;  %v1126_v39 = vpack.c.bf16 %v1069_v34, %v1067_v29  ;;  %v581_v40 = vadd.f32 %v2655_v36, %v2591_v33  ;;  %v2719_v41 = vsel %vm649_vm13, 1.0, %v3172_v27 }
  0x87   :  { %vm907_vm14 = vcmp.eq.s32.totalorder %v3235_v26, %v3652_v60  ;;  %v839_v42 = vadd.f32 %v2717_v38, %v579_v37  ;;  %vm909_vm15 = vcmp.eq.s32.totalorder %v3235_v26, %v3677_v28  ;;  %v3753_v45 = vadd.s32 32, %v3195_v1 }
  0x88   :  { %v2781_v44 = vsel %vm907_vm14, 1.0, %v3172_v27  ;;  %1187 = vmatpush.bf16.msra.mxu2 %v1126_v39  ;;  %v841_v46 = vadd.f32 %v2719_v41, %v581_v40  ;;  %v2783_v47 = vsel %vm909_vm15, 1.0, %v3172_v27  ;;  %v3757_v48 = vadd.s32 40, %v3195_v1 }
  0x89   :  { %v3760_v49 = vadd.s32 160, %v3195_v1  ;;  %v1099_v50 = vadd.f32 %v2781_v44, %v839_v42  ;;  %vm90_vm0 = vcmp.eq.s32.totalorder %v3221_v19, %v3753_v45  ;;  %vm350_vm1 = vcmp.eq.s32.totalorder %v3223_v20, %v3753_v45 }
  0x8a   :  { %vm610_vm2 = vcmp.eq.s32.totalorder %v3225_v21, %v3753_v45  ;;  %v1101_v52 = vadd.f32 %v2783_v47, %v841_v46  ;;  %vm92_vm3 = vcmp.eq.s32.totalorder %v3221_v19, %v3757_v48  ;;  %v2552_v53 = vsel %vm90_vm0, 1.0, %v3172_v27 }
  0x8b   :  { %vm352_vm4 = vcmp.eq.s32.totalorder %v3223_v20, %v3757_v48  ;;  %v2554_v57 = vsel %vm92_vm3, 1.0, %v3172_v27  ;;  %v2616_v58 = vsel %vm350_vm1, 1.0, %v3172_v27  ;;  %vm612_vm5 = vcmp.eq.s32.totalorder %v3225_v21, %v3757_v48 }
  0x8c   :  { %v2618_v61 = vsel %vm352_vm4, 1.0, %v3172_v27  ;;  %v1142_v62 = vpack.c.bf16 %v1101_v52, %v1099_v50  ;;  %v542_v63 = vadd.f32 %v2616_v58, %v2552_v53  ;;  %v2680_v6 = vsel %vm610_vm2, 1.0, %v3172_v27 }
  0x8d   :  { %v544_v0 = vadd.f32 %v2618_v61, %v2554_v57  ;;  %v2682_v11 = vsel %vm612_vm5, 1.0, %v3172_v27  ;;  %vm870_vm6 = vcmp.eq.s32.totalorder %v3227_v22, %v3753_v45  ;;  %vm872_vm7 = vcmp.eq.s32.totalorder %v3227_v22, %v3757_v48 }
  0x8e   :  { %v3785_v13 = vadd.s32 168, %v3195_v1  ;;  %1200 = vmatpush.bf16.msra.mxu3 %v1142_v62  ;;  %v802_v14 = vadd.f32 %v2680_v6, %v542_v63  ;;  %v2744_v16 = vsel %vm870_vm6, 1.0, %v3172_v27  ;;  %v2746_v17 = vsel %vm872_vm7, 1.0, %v3172_v27 }
  0x8f   :  { %v804_v15 = vadd.f32 %v2682_v11, %v544_v0  ;;  %vm122_vm8 = vcmp.eq.s32.totalorder %v3221_v19, %v3760_v49  ;;  %vm382_vm10 = vcmp.eq.s32.totalorder %v3223_v20, %v3760_v49  ;;  %vm642_vm12 = vcmp.eq.s32.totalorder %v3225_v21, %v3760_v49 }
  0x90   :  { %vm124_vm9 = vcmp.eq.s32.totalorder %v3221_v19, %v3785_v13  ;;  %vm384_vm11 = vcmp.eq.s32.totalorder %v3223_v20, %v3785_v13  ;;  %v1062_v29 = vadd.f32 %v2744_v16, %v802_v14  ;;  %v2584_v33 = vsel %vm122_vm8, 1.0, %v3172_v27 }
  0x91   :  { %v1064_v32 = vadd.f32 %v2746_v17, %v804_v15  ;;  %v2586_v34 = vsel %vm124_vm9, 1.0, %v3172_v27  ;;  %v2648_v35 = vsel %vm382_vm10, 1.0, %v3172_v27  ;;  %v2650_v36 = vsel %vm384_vm11, 1.0, %v3172_v27 }
  0x92   :  { %vm644_vm13 = vcmp.eq.s32.totalorder %v3225_v21, %v3785_v13  ;;  %v574_v38 = vadd.f32 %v2648_v35, %v2584_v33  ;;  %v576_v39 = vadd.f32 %v2650_v36, %v2586_v34  ;;  %v2712_v40 = vsel %vm642_vm12, 1.0, %v3172_v27 }
  0x93   :  { %v1123_v37 = vpack.c.bf16 %v1064_v32, %v1062_v29  ;;  %v2714_v41 = vsel %vm644_vm13, 1.0, %v3172_v27  ;;  %vm902_vm14 = vcmp.eq.s32.totalorder %v3227_v22, %v3760_v49  ;;  %vm904_vm15 = vcmp.eq.s32.totalorder %v3227_v22, %v3785_v13 }
  0x94   :  { %vm91_vm0 = vcmp.eq.s32.totalorder %v3229_v23, %v3753_v45  ;;  %v834_v42 = vadd.f32 %v2712_v40, %v574_v38  ;;  %v836_v44 = vadd.f32 %v2714_v41, %v576_v39  ;;  %v2776_v46 = vsel %vm902_vm14, 1.0, %v3172_v27 }
  0x95   :  { %1162 = vmatpush.bf16.msra.mxu0 %v1123_v37  ;;  %v2778_v47 = vsel %vm904_vm15, 1.0, %v3172_v27  ;;  %vm93_vm1 = vcmp.eq.s32.totalorder %v3229_v23, %v3757_v48  ;;  %v2553_v50 = vsel %vm91_vm0, 1.0, %v3172_v27  ;;  %vm351_vm2 = vcmp.eq.s32.totalorder %v3231_v24, %v3753_v45 }
  0x96   :  { %vm353_vm3 = vcmp.eq.s32.totalorder %v3231_v24, %v3757_v48  ;;  %v1094_v52 = vadd.f32 %v2776_v46, %v834_v42  ;;  %v1096_v53 = vadd.f32 %v2778_v47, %v836_v44  ;;  %v2555_v57 = vsel %vm93_vm1, 1.0, %v3172_v27 }
  0x97   :  { %v2617_v58 = vsel %vm351_vm2, 1.0, %v3172_v27  ;;  %v2619_v61 = vsel %vm353_vm3, 1.0, %v3172_v27  ;;  %vm611_vm4 = vcmp.eq.s32.totalorder %v3233_v25, %v3753_v45  ;;  %vm613_vm5 = vcmp.eq.s32.totalorder %v3233_v25, %v3757_v48 }
  0x98   :  { %v543_v62 = vadd.f32 %v2617_v58, %v2553_v50  ;;  %v1139_v63 = vpack.c.bf16 %v1096_v53, %v1094_v52  ;;  %v545_v0 = vadd.f32 %v2619_v61, %v2555_v57  ;;  %v2681_v6 = vsel %vm611_vm4, 1.0, %v3172_v27 }
  0x99   :  { %v2683_v11 = vsel %vm613_vm5, 1.0, %v3172_v27  ;;  %vm871_vm6 = vcmp.eq.s32.totalorder %v3235_v26, %v3753_v45  ;;  %vm873_vm7 = vcmp.eq.s32.totalorder %v3235_v26, %v3757_v48  ;;  %vm123_vm8 = vcmp.eq.s32.totalorder %v3229_v23, %v3760_v49 }
  0x9a   :  { %v803_v14 = vadd.f32 %v2681_v6, %v543_v62  ;;  %1175 = vmatpush.bf16.msra.mxu1 %v1139_v63  ;;  %v805_v15 = vadd.f32 %v2683_v11, %v545_v0  ;;  %v2745_v16 = vsel %vm871_vm6, 1.0, %v3172_v27  ;;  %v2747_v17 = vsel %vm873_vm7, 1.0, %v3172_v27 }
  0x9b   :  { %vm125_vm9 = vcmp.eq.s32.totalorder %v3229_v23, %v3785_v13  ;;  %v2585_v32 = vsel %vm123_vm8, 1.0, %v3172_v27  ;;  %vm383_vm10 = vcmp.eq.s32.totalorder %v3231_v24, %v3760_v49  ;;  %vm385_vm11 = vcmp.eq.s32.totalorder %v3231_v24, %v3785_v13 }
  0x9c   :  { %v1063_v29 = vadd.f32 %v2745_v16, %v803_v14  ;;  %v2587_v33 = vsel %vm125_vm9, 1.0, %v3172_v27  ;;  %v1065_v34 = vadd.f32 %v2747_v17, %v805_v15  ;;  %v2649_v35 = vsel %vm383_vm10, 1.0, %v3172_v27 }
  0x9d   :  { %vm643_vm12 = vcmp.eq.s32.totalorder %v3233_v25, %v3760_v49  ;;  %v2651_v36 = vsel %vm385_vm11, 1.0, %v3172_v27  ;;  %v575_v37 = vadd.f32 %v2649_v35, %v2585_v32  ;;  %vm645_vm13 = vcmp.eq.s32.totalorder %v3233_v25, %v3785_v13 }
  0x9e   :  { %v2713_v38 = vsel %vm643_vm12, 1.0, %v3172_v27  ;;  %v1124_v39 = vpack.c.bf16 %v1065_v34, %v1063_v29  ;;  %v577_v40 = vadd.f32 %v2651_v36, %v2587_v33  ;;  %v2715_v41 = vsel %vm645_vm13, 1.0, %v3172_v27 }
  0x9f   :  { %vm903_vm14 = vcmp.eq.s32.totalorder %v3235_v26, %v3760_v49  ;;  %v835_v42 = vadd.f32 %v2713_v38, %v575_v37  ;;  %vm905_vm15 = vcmp.eq.s32.totalorder %v3235_v26, %v3785_v13  ;;  %v3861_v46 = vadd.s32 16, %v3195_v1 }
  0xa0   :  { %v2777_v44 = vsel %vm903_vm14, 1.0, %v3172_v27  ;;  %1188 = vmatpush.bf16.msra.mxu2 %v1124_v39  ;;  %v837_v47 = vadd.f32 %v2715_v41, %v577_v40  ;;  %v2779_v50 = vsel %vm905_vm15, 1.0, %v3172_v27  ;;  %v3865_v52 = vadd.s32 24, %v3195_v1 }
  0xa1   :  { %v3868_v53 = vadd.s32 144, %v3195_v1  ;;  %v1095_v57 = vadd.f32 %v2777_v44, %v835_v42  ;;  %vm86_vm0 = vcmp.eq.s32.totalorder %v3221_v19, %v3861_v46  ;;  %vm346_vm1 = vcmp.eq.s32.totalorder %v3223_v20, %v3861_v46 }
  0xa2   :  { %vm606_vm2 = vcmp.eq.s32.totalorder %v3225_v21, %v3861_v46  ;;  %v1097_v58 = vadd.f32 %v2779_v50, %v837_v47  ;;  %vm88_vm3 = vcmp.eq.s32.totalorder %v3221_v19, %v3865_v52  ;;  %v2548_v61 = vsel %vm86_vm0, 1.0, %v3172_v27 }
  0xa3   :  { %vm348_vm4 = vcmp.eq.s32.totalorder %v3223_v20, %v3865_v52  ;;  %v2550_v62 = vsel %vm88_vm3, 1.0, %v3172_v27  ;;  %v2612_v63 = vsel %vm346_vm1, 1.0, %v3172_v27  ;;  %vm608_vm5 = vcmp.eq.s32.totalorder %v3225_v21, %v3865_v52 }
  0xa4   :  { %v2614_v0 = vsel %vm348_vm4, 1.0, %v3172_v27  ;;  %v1140_v6 = vpack.c.bf16 %v1097_v58, %v1095_v57  ;;  %v538_v11 = vadd.f32 %v2612_v63, %v2548_v61  ;;  %v2676_v15 = vsel %vm606_vm2, 1.0, %v3172_v27 }
  0xa5   :  { %v540_v14 = vadd.f32 %v2614_v0, %v2550_v62  ;;  %v2678_v16 = vsel %vm608_vm5, 1.0, %v3172_v27  ;;  %vm866_vm6 = vcmp.eq.s32.totalorder %v3227_v22, %v3861_v46  ;;  %vm868_vm7 = vcmp.eq.s32.totalorder %v3227_v22, %v3865_v52 }
  0xa6   :  { %v3893_v17 = vadd.s32 152, %v3195_v1  ;;  %1201 = vmatpush.bf16.msra.mxu3 %v1140_v6  ;;  %v798_v29 = vadd.f32 %v2676_v15, %v538_v11  ;;  %v2740_v33 = vsel %vm866_vm6, 1.0, %v3172_v27  ;;  %v2742_v34 = vsel %vm868_vm7, 1.0, %v3172_v27 }
  0xa7   :  { %v800_v32 = vadd.f32 %v2678_v16, %v540_v14  ;;  %vm118_vm8 = vcmp.eq.s32.totalorder %v3221_v19, %v3868_v53  ;;  %vm378_vm10 = vcmp.eq.s32.totalorder %v3223_v20, %v3868_v53  ;;  %vm638_vm12 = vcmp.eq.s32.totalorder %v3225_v21, %v3868_v53 }
  0xa8   :  { %vm120_vm9 = vcmp.eq.s32.totalorder %v3221_v19, %v3893_v17  ;;  %vm380_vm11 = vcmp.eq.s32.totalorder %v3223_v20, %v3893_v17  ;;  %v1058_v35 = vadd.f32 %v2740_v33, %v798_v29  ;;  %v2580_v37 = vsel %vm118_vm8, 1.0, %v3172_v27 }
  0xa9   :  { %v1060_v36 = vadd.f32 %v2742_v34, %v800_v32  ;;  %v2582_v38 = vsel %vm120_vm9, 1.0, %v3172_v27  ;;  %v2644_v39 = vsel %vm378_vm10, 1.0, %v3172_v27  ;;  %v2646_v40 = vsel %vm380_vm11, 1.0, %v3172_v27 }
  0xaa   :  { %vm640_vm13 = vcmp.eq.s32.totalorder %v3225_v21, %v3893_v17  ;;  %v570_v42 = vadd.f32 %v2644_v39, %v2580_v37  ;;  %v572_v44 = vadd.f32 %v2646_v40, %v2582_v38  ;;  %v2708_v47 = vsel %vm638_vm12, 1.0, %v3172_v27 }
  0xab   :  { %v1121_v41 = vpack.c.bf16 %v1060_v36, %v1058_v35  ;;  %v2710_v50 = vsel %vm640_vm13, 1.0, %v3172_v27  ;;  %vm898_vm14 = vcmp.eq.s32.totalorder %v3227_v22, %v3868_v53  ;;  %vm900_vm15 = vcmp.eq.s32.totalorder %v3227_v22, %v3893_v17 }
  0xac   :  { %vm87_vm0 = vcmp.eq.s32.totalorder %v3229_v23, %v3861_v46  ;;  %v830_v57 = vadd.f32 %v2708_v47, %v570_v42  ;;  %v832_v58 = vadd.f32 %v2710_v50, %v572_v44  ;;  %v2772_v61 = vsel %vm898_vm14, 1.0, %v3172_v27 }
  0xad   :  { %1163 = vmatpush.bf16.msra.mxu0 %v1121_v41  ;;  %v2774_v62 = vsel %vm900_vm15, 1.0, %v3172_v27  ;;  %vm89_vm1 = vcmp.eq.s32.totalorder %v3229_v23, %v3865_v52  ;;  %v2549_v63 = vsel %vm87_vm0, 1.0, %v3172_v27  ;;  %vm347_vm2 = vcmp.eq.s32.totalorder %v3231_v24, %v3861_v46 }
  0xae   :  { %vm349_vm3 = vcmp.eq.s32.totalorder %v3231_v24, %v3865_v52  ;;  %v1090_v0 = vadd.f32 %v2772_v61, %v830_v57  ;;  %v1092_v6 = vadd.f32 %v2774_v62, %v832_v58  ;;  %v2551_v11 = vsel %vm89_vm1, 1.0, %v3172_v27 }
  0xaf   :  { %v2613_v14 = vsel %vm347_vm2, 1.0, %v3172_v27  ;;  %v2615_v15 = vsel %vm349_vm3, 1.0, %v3172_v27  ;;  %vm607_vm4 = vcmp.eq.s32.totalorder %v3233_v25, %v3861_v46  ;;  %vm609_vm5 = vcmp.eq.s32.totalorder %v3233_v25, %v3865_v52 }
  0xb0   :  { %v539_v16 = vadd.f32 %v2613_v14, %v2549_v63  ;;  %v1137_v29 = vpack.c.bf16 %v1092_v6, %v1090_v0  ;;  %v541_v32 = vadd.f32 %v2615_v15, %v2551_v11  ;;  %v2677_v33 = vsel %vm607_vm4, 1.0, %v3172_v27 }
  0xb1   :  { %v2679_v34 = vsel %vm609_vm5, 1.0, %v3172_v27  ;;  %vm867_vm6 = vcmp.eq.s32.totalorder %v3235_v26, %v3861_v46  ;;  %vm869_vm7 = vcmp.eq.s32.totalorder %v3235_v26, %v3865_v52  ;;  %vm119_vm8 = vcmp.eq.s32.totalorder %v3229_v23, %v3868_v53 }
  0xb2   :  { %v799_v35 = vadd.f32 %v2677_v33, %v539_v16  ;;  %1176 = vmatpush.bf16.msra.mxu1 %v1137_v29  ;;  %v801_v36 = vadd.f32 %v2679_v34, %v541_v32  ;;  %v2741_v37 = vsel %vm867_vm6, 1.0, %v3172_v27  ;;  %v2743_v38 = vsel %vm869_vm7, 1.0, %v3172_v27 }
  0xb3   :  { %vm121_vm9 = vcmp.eq.s32.totalorder %v3229_v23, %v3893_v17  ;;  %v2581_v40 = vsel %vm119_vm8, 1.0, %v3172_v27  ;;  %vm379_vm10 = vcmp.eq.s32.totalorder %v3231_v24, %v3868_v53  ;;  %vm381_vm11 = vcmp.eq.s32.totalorder %v3231_v24, %v3893_v17 }
  0xb4   :  { %v1059_v39 = vadd.f32 %v2741_v37, %v799_v35  ;;  %v2583_v41 = vsel %vm121_vm9, 1.0, %v3172_v27  ;;  %v1061_v42 = vadd.f32 %v2743_v38, %v801_v36  ;;  %v2645_v44 = vsel %vm379_vm10, 1.0, %v3172_v27 }
  0xb5   :  { %vm639_vm12 = vcmp.eq.s32.totalorder %v3233_v25, %v3868_v53  ;;  %v2647_v47 = vsel %vm381_vm11, 1.0, %v3172_v27  ;;  %v571_v50 = vadd.f32 %v2645_v44, %v2581_v40  ;;  %vm641_vm13 = vcmp.eq.s32.totalorder %v3233_v25, %v3893_v17 }
  0xb6   :  { %v2709_v57 = vsel %vm639_vm12, 1.0, %v3172_v27  ;;  %v1122_v58 = vpack.c.bf16 %v1061_v42, %v1059_v39  ;;  %v573_v61 = vadd.f32 %v2647_v47, %v2583_v41  ;;  %v2711_v62 = vsel %vm641_vm13, 1.0, %v3172_v27 }
  0xb7   :  { %vm899_vm14 = vcmp.eq.s32.totalorder %v3235_v26, %v3868_v53  ;;  %v831_v63 = vadd.f32 %v2709_v57, %v571_v50  ;;  %vm901_vm15 = vcmp.eq.s32.totalorder %v3235_v26, %v3893_v17  ;;  %v3969_v6 = vadd.s32 8, %v3195_v1 }
  0xb8   :  { %v2773_v0 = vsel %vm899_vm14, 1.0, %v3172_v27  ;;  %1189 = vmatpush.bf16.msra.mxu2 %v1122_v58  ;;  %v833_v11 = vadd.f32 %v2711_v62, %v573_v61  ;;  %v2775_v14 = vsel %vm901_vm15, 1.0, %v3172_v27  ;;  %vm82_vm0 = vcmp.eq.s32.totalorder %v3221_v19, %v3195_v1 }
  0xb9   :  { %vm342_vm1 = vcmp.eq.s32.totalorder %v3223_v20, %v3195_v1  ;;  %v1091_v15 = vadd.f32 %v2773_v0, %v831_v63  ;;  %vm84_vm2 = vcmp.eq.s32.totalorder %v3221_v19, %v3969_v6  ;;  %v2544_v16 = vsel %vm82_vm0, 1.0, %v3172_v27 }
  0xba   :  { %vm344_vm3 = vcmp.eq.s32.totalorder %v3223_v20, %v3969_v6  ;;  %v1093_v29 = vadd.f32 %v2775_v14, %v833_v11  ;;  %v2546_v32 = vsel %vm84_vm2, 1.0, %v3172_v27  ;;  %v2608_v33 = vsel %vm342_vm1, 1.0, %v3172_v27 }
  0xbb   :  { %v2610_v34 = vsel %vm344_vm3, 1.0, %v3172_v27  ;;  %v534_v35 = vadd.f32 %v2608_v33, %v2544_v16  ;;  %vm602_vm4 = vcmp.eq.s32.totalorder %v3225_v21, %v3195_v1  ;;  %vm604_vm5 = vcmp.eq.s32.totalorder %v3225_v21, %v3969_v6 }
  0xbc   :  { %v536_v36 = vadd.f32 %v2610_v34, %v2546_v32  ;;  %v1138_v37 = vpack.c.bf16 %v1093_v29, %v1091_v15  ;;  %v2672_v38 = vsel %vm602_vm4, 1.0, %v3172_v27  ;;  %v2674_v39 = vsel %vm604_vm5, 1.0, %v3172_v27 }
  0xbd   :  { %vm862_vm6 = vcmp.eq.s32.totalorder %v3227_v22, %v3195_v1  ;;  %v794_v40 = vadd.f32 %v2672_v38, %v534_v35  ;;  %vm864_vm7 = vcmp.eq.s32.totalorder %v3227_v22, %v3969_v6  ;;  %v3997_v47 = vadd.s32 128, %v3195_v1 }
  0xbe   :  { %v796_v41 = vadd.f32 %v2674_v39, %v536_v36  ;;  %v2736_v42 = vsel %vm862_vm6, 1.0, %v3172_v27  ;;  %1202 = vmatpush.bf16.msra.mxu3 %v1138_v37  ;;  %v2738_v44 = vsel %vm864_vm7, 1.0, %v3172_v27  ;;  %v4000_v50 = vadd.s32 136, %v3195_v1 }
  0xbf   :  { %vm83_vm8 = vcmp.eq.s32.totalorder %v3229_v23, %v3195_v1  ;;  %v1054_v57 = vadd.f32 %v2736_v42, %v794_v40  ;;  %vm85_vm9 = vcmp.eq.s32.totalorder %v3229_v23, %v3969_v6  ;;  %vm114_vm10 = vcmp.eq.s32.totalorder %v3221_v19, %v3997_v47 }
  0xc0   :  { %v1056_v58 = vadd.f32 %v2738_v44, %v796_v41  ;;  %v2545_v61 = vsel %vm83_vm8, 1.0, %v3172_v27  ;;  %vm116_vm11 = vcmp.eq.s32.totalorder %v3221_v19, %v4000_v50  ;;  %vm374_vm12 = vcmp.eq.s32.totalorder %v3223_v20, %v3997_v47 }
  0xc1   :  { %vm376_vm13 = vcmp.eq.s32.totalorder %v3223_v20, %v4000_v50  ;;  %v2576_v63 = vsel %vm114_vm10, 1.0, %v3172_v27  ;;  %v2578_v0 = vsel %vm116_vm11, 1.0, %v3172_v27  ;;  %v2640_v11 = vsel %vm374_vm12, 1.0, %v3172_v27 }
  0xc2   :  { %v1119_v62 = vpack.c.bf16 %v1056_v58, %v1054_v57  ;;  %v2642_v14 = vsel %vm376_vm13, 1.0, %v3172_v27  ;;  %v566_v15 = vadd.f32 %v2640_v11, %v2576_v63  ;;  %vm634_vm14 = vcmp.eq.s32.totalorder %v3225_v21, %v3997_v47 }
  0xc3   :  { %vm636_vm15 = vcmp.eq.s32.totalorder %v3225_v21, %v4000_v50  ;;  %v568_v19 = vadd.f32 %v2642_v14, %v2578_v0  ;;  %v2704_v20 = vsel %vm634_vm14, 1.0, %v3172_v27  ;;  %vm894_vm0 = vcmp.eq.s32.totalorder %v3227_v22, %v3997_v47 }
  0xc4   :  { %1164 = vmatpush.bf16.msra.mxu0 %v1119_v62  ;;  %v2706_v16 = vsel %vm636_vm15, 1.0, %v3172_v27  ;;  %v826_v29 = vadd.f32 %v2704_v20, %v566_v15  ;;  %vm896_vm1 = vcmp.eq.s32.totalorder %v3227_v22, %v4000_v50  ;;  %v2768_v32 = vsel %vm894_vm0, 1.0, %v3172_v27 }
  0xc5   :  { %v2547_v21 = vsel %vm85_vm9, 1.0, %v3172_v27  ;;  %v828_v33 = vadd.f32 %v2706_v16, %v568_v19  ;;  %v2770_v34 = vsel %vm896_vm1, 1.0, %v3172_v27  ;;  %vm343_vm2 = vcmp.eq.s32.totalorder %v3231_v24, %v3195_v1 }
  0xc6   :  { %vm345_vm3 = vcmp.eq.s32.totalorder %v3231_v24, %v3969_v6  ;;  %v1086_v35 = vadd.f32 %v2768_v32, %v826_v29  ;;  %v2609_v36 = vsel %vm343_vm2, 1.0, %v3172_v27  ;;  %vm603_vm4 = vcmp.eq.s32.totalorder %v3233_v25, %v3195_v1 }
  0xc7   :  { %v2611_v22 = vsel %vm345_vm3, 1.0, %v3172_v27  ;;  %v1088_v37 = vadd.f32 %v2770_v34, %v828_v33  ;;  %v535_v38 = vadd.f32 %v2609_v36, %v2545_v61  ;;  %vm605_vm5 = vcmp.eq.s32.totalorder %v3233_v25, %v3969_v6 }
  0xc8   :  { %v537_v39 = vadd.f32 %v2611_v22, %v2547_v21  ;;  %v2673_v40 = vsel %vm603_vm4, 1.0, %v3172_v27  ;;  %v2675_v41 = vsel %vm605_vm5, 1.0, %v3172_v27  ;;  %vm863_vm6 = vcmp.eq.s32.totalorder %v3235_v26, %v3195_v1 }
  0xc9   :  { %vm865_vm7 = vcmp.eq.s32.totalorder %v3235_v26, %v3969_v6  ;;  %v1135_v42 = vpack.c.bf16 %v1088_v37, %v1086_v35  ;;  %v795_v44 = vadd.f32 %v2673_v40, %v535_v38  ;;  %v2737_v58 = vsel %vm863_vm6, 1.0, %v3172_v27 }
  0xca   :  { %v797_v57 = vadd.f32 %v2675_v41, %v537_v39  ;;  %v2739_v61 = vsel %vm865_vm7, 1.0, %v3172_v27  ;;  %vm115_vm8 = vcmp.eq.s32.totalorder %v3229_v23, %v3997_v47  ;;  %vm117_vm9 = vcmp.eq.s32.totalorder %v3229_v23, %v4000_v50  ;;  %v4068_v23 = vld [vmem:[#allocation5 + $0x8] sm:$0xff] }
  0xcb   :  { %vm375_vm10 = vcmp.eq.s32.totalorder %v3231_v24, %v3997_v47  ;;  %1177 = vmatpush.bf16.msra.mxu1 %v1135_v42  ;;  %v1055_v62 = vadd.f32 %v2737_v58, %v795_v44  ;;  %v2577_v0 = vsel %vm115_vm8, 1.0, %v3172_v27  ;;  %v2579_v11 = vsel %vm117_vm9, 1.0, %v3172_v27 }
  0xcc   :  { %v1057_v63 = vadd.f32 %v2739_v61, %v797_v57  ;;  %vm377_vm11 = vcmp.eq.s32.totalorder %v3231_v24, %v4000_v50  ;;  %v2641_v14 = vsel %vm375_vm10, 1.0, %v3172_v27  ;;  %vm635_vm12 = vcmp.eq.s32.totalorder %v3233_v25, %v3997_v47 }
  0xcd   :  { %vm637_vm13 = vcmp.eq.s32.totalorder %v3233_v25, %v4000_v50  ;;  %v2643_v19 = vsel %vm377_vm11, 1.0, %v3172_v27  ;;  %v567_v20 = vadd.f32 %v2641_v14, %v2577_v0  ;;  %v2705_v16 = vsel %vm635_vm12, 1.0, %v3172_v27 }
  0xce   :  { %v1120_v15 = vpack.c.bf16 %v1057_v63, %v1055_v62  ;;  %v569_v29 = vadd.f32 %v2643_v19, %v2579_v11  ;;  %v2707_v32 = vsel %vm637_vm13, 1.0, %v3172_v27  ;;  %vm895_vm14 = vcmp.eq.s32.totalorder %v3235_v26, %v3997_v47 }
  0xcf   :  { %vm897_vm15 = vcmp.eq.s32.totalorder %v3235_v26, %v4000_v50  ;;  %v827_v24 = vadd.f32 %v2705_v16, %v567_v20  ;;  %v2769_v25 = vsel %vm895_vm14, 1.0, %v3172_v27  ;;  %v1247_v33 = vperm.slane %v4068_v23, 0 }
  0xd0   :  { %1190 = vmatpush.bf16.msra.mxu2 %v1120_v15  ;;  %v2771_v21 = vsel %vm897_vm15, 1.0, %v3172_v27  ;;  %v829_v34 = vadd.f32 %v2707_v32, %v569_v29  ;;  %v1507_v35 = vperm.slane %v4068_v23, 1  ;;  %v1767_v36 = vperm.slane %v4068_v23, 2 }
  0xd1   :  { %v2027_v22 = vperm.slane %v4068_v23, 3  ;;  %v1087_v37 = vadd.f32 %v2769_v25, %v827_v24  ;;  %v4083_v38 = vperm.slane %v1247_v33, 0  ;;  %v1248_v26 = vperm.slane %v4068_v23, 4 }
  0xd2   :  { %v1508_v39 = vperm.slane %v4068_v23, 5  ;;  %v1089_v40 = vadd.f32 %v2771_v21, %v829_v34  ;;  %v4087_v41 = vperm.slane %v1507_v35, 1  ;;  %v4089_v42 = vperm.slane %v1767_v36, 2 }
  0xd3   :  { %v4091_v44 = vperm.slane %v2027_v22, 3  ;;  %vm1279_vm0 = vcmp.eq.s32.totalorder %v4083_v38, %v3198_v2  ;;  %vm1281_vm1 = vcmp.eq.s32.totalorder %v4083_v38, %v3201_v3  ;;  %vm1311_vm2 = vcmp.eq.s32.totalorder %v4083_v38, %v3204_v4 }
  0xd4   :  { %vm1313_vm3 = vcmp.eq.s32.totalorder %v4083_v38, %v3207_v5  ;;  %v1136_v57 = vpack.c.bf16 %v1089_v40, %v1087_v37  ;;  %v2831_v58 = vsel %vm1279_vm0, 1.0, %v3172_v27  ;;  %v2833_v61 = vsel %vm1281_vm1, 1.0, %v3172_v27 }
  0xd5   :  { %vm1539_vm4 = vcmp.eq.s32.totalorder %v4087_v41, %v3198_v2  ;;  %vm1541_vm5 = vcmp.eq.s32.totalorder %v4087_v41, %v3201_v3  ;;  %vm1799_vm6 = vcmp.eq.s32.totalorder %v4089_v42, %v3198_v2  ;;  %vm1801_vm7 = vcmp.eq.s32.totalorder %v4089_v42, %v3201_v3 }
  0xd6   :  { %v2895_v62 = vsel %vm1539_vm4, 1.0, %v3172_v27  ;;  %1203 = vmatpush.bf16.msra.mxu3 %v1136_v57  ;;  %v2897_v63 = vsel %vm1541_vm5, 1.0, %v3172_v27  ;;  %v2959_v11 = vsel %vm1799_vm6, 1.0, %v3172_v27  ;;  %v2961_v14 = vsel %vm1801_vm7, 1.0, %v3172_v27 }
  0xd7   :  { %v1731_v0 = vadd.f32 %v2895_v62, %v2831_v58  ;;  %v1733_v15 = vadd.f32 %v2897_v63, %v2833_v61  ;;  %vm2059_vm8 = vcmp.eq.s32.totalorder %v4091_v44, %v3198_v2  ;;  %vm2061_vm9 = vcmp.eq.s32.totalorder %v4091_v44, %v3201_v3 }
  0xd8   :  { %v2863_v19 = vsel %vm1311_vm2, 1.0, %v3172_v27  ;;  %v3023_v16 = vsel %vm2059_vm8, 1.0, %v3172_v27  ;;  %v3025_v29 = vsel %vm2061_vm9, 1.0, %v3172_v27  ;;  %v2865_v32 = vsel %vm1313_vm3, 1.0, %v3172_v27 }
  0xd9   :  { %v1991_v20 = vadd.f32 %v2959_v11, %v1731_v0  ;;  %v1993_v24 = vadd.f32 %v2961_v14, %v1733_v15  ;;  %vm1571_vm10 = vcmp.eq.s32.totalorder %v4087_v41, %v3204_v4  ;;  %vm1573_vm11 = vcmp.eq.s32.totalorder %v4087_v41, %v3207_v5 }
  0xda   :  { %vm1831_vm12 = vcmp.eq.s32.totalorder %v4089_v42, %v3204_v4  ;;  %v2927_v21 = vsel %vm1571_vm10, 1.0, %v3172_v27  ;;  %v2929_v33 = vsel %vm1573_vm11, 1.0, %v3172_v27  ;;  %vm1833_vm13 = vcmp.eq.s32.totalorder %v4089_v42, %v3207_v5 }
  0xdb   :  { %v2251_v25 = vadd.f32 %v3023_v16, %v1991_v20  ;;  %v2253_v34 = vadd.f32 %v3025_v29, %v1993_v24  ;;  %v1763_v35 = vadd.f32 %v2927_v21, %v2863_v19  ;;  %v1765_v36 = vadd.f32 %v2929_v33, %v2865_v32  ;;  %v1118_v32 = vld [vmem:[#allocation2] sm:$0xf] }
  0xdc   :  { %v2991_v22 = vsel %vm1831_vm12, 1.0, %v3172_v27  ;;  %v2993_v37 = vsel %vm1833_vm13, 1.0, %v3172_v27  ;;  %vm2091_vm14 = vcmp.eq.s32.totalorder %v4091_v44, %v3204_v4  ;;  %vm2093_vm15 = vcmp.eq.s32.totalorder %v4091_v44, %v3207_v5  ;;  %1152 = vst [vmem:[#allocation1] ss:$4 sm:$0xff] %v1118_v32 }
  0xdd   :  { %v4145_v40 = vperm.slane %v1248_v26, 0  ;;  %v2303_v57 = vpack.c.bf16 %v2253_v34, %v2251_v25  ;;  %v2023_v58 = vadd.f32 %v2991_v22, %v1763_v35  ;;  %v2025_v61 = vadd.f32 %v2993_v37, %v1765_v36 }
  0xde   :  { %v3055_v62 = vsel %vm2091_vm14, 1.0, %v3172_v27  ;;  %v3057_v63 = vsel %vm2093_vm15, 1.0, %v3172_v27  ;;  %v4153_v0 = vperm.slane %v1508_v39, 1  ;;  %v1768_v19 = vperm.slane %v4068_v23, 6 }
  0xdf   :  { %vm1280_vm0 = vcmp.eq.s32.totalorder %v4145_v40, %v3198_v2  ;;  %vm1282_vm1 = vcmp.eq.s32.totalorder %v4145_v40, %v3201_v3  ;;  %2327 = vmatpush.bf16.msrb.mxu0 %v2303_v57  ;;  %v2283_v11 = vadd.f32 %v3055_v62, %v2023_v58  ;;  %v2285_v14 = vadd.f32 %v3057_v63, %v2025_v61 }
  0xe0   :  { %v2832_v26 = vsel %vm1280_vm0, 1.0, %v3172_v27  ;;  %v2834_v15 = vsel %vm1282_vm1, 1.0, %v3172_v27  ;;  %vm1540_vm2 = vcmp.eq.s32.totalorder %v4153_v0, %v3198_v2  ;;  %vm1542_vm3 = vcmp.eq.s32.totalorder %v4153_v0, %v3201_v3 }
  0xe1   :  { %v2028_v20 = vperm.slane %v4068_v23, 7  ;;  %v2319_v16 = vpack.c.bf16 %v2285_v14, %v2283_v11  ;;  %v2896_v39 = vsel %vm1540_vm2, 1.0, %v3172_v27  ;;  %v2898_v29 = vsel %vm1542_vm3, 1.0, %v3172_v27 }
  0xe2   :  { %vm1312_vm4 = vcmp.eq.s32.totalorder %v4145_v40, %v3204_v4  ;;  %v1732_v24 = vadd.f32 %v2896_v39, %v2832_v26  ;;  %v1734_v25 = vadd.f32 %v2898_v29, %v2834_v15  ;;  %v4167_v21 = vperm.slane %v1768_v19, 2 }
  0xe3   :  { %v4169_v33 = vperm.slane %v2028_v20, 3  ;;  %2340 = vmatpush.bf16.msrb.mxu1 %v2319_v16  ;;  %vm1314_vm5 = vcmp.eq.s32.totalorder %v4145_v40, %v3207_v5  ;;  %v2864_v23 = vsel %vm1312_vm4, 1.0, %v3172_v27  ;;  %vm1572_vm6 = vcmp.eq.s32.totalorder %v4153_v0, %v3204_v4  ;;  %v1153_v19 = vld.sshfl [vmem:[#allocation1] sm:$0xff pattern:$0x73625140] }
  0xe4   :  { %vm1574_vm7 = vcmp.eq.s32.totalorder %v4153_v0, %v3207_v5  ;;  %vm1800_vm8 = vcmp.eq.s32.totalorder %v4167_v21, %v3198_v2  ;;  %vm1802_vm9 = vcmp.eq.s32.totalorder %v4167_v21, %v3201_v3  ;;  %v2866_v58 = vsel %vm1314_vm5, 1.0, %v3172_v27  ;;  %1191 = vmatmul.bf16.vlgmr.msra.gmra.mxu2 %v1153_v19  ;;  %v1154_v32 = vld.sshfl [vmem:[#allocation1 + $0x8] sm:$0xff pattern:$0x73625140]  ;;  %1165 = vmatmul.bf16.vlgmr.msra.gmra.mxu0 %v1153_v19 }
  0xe5   :  { %vm2060_vm10 = vcmp.eq.s32.totalorder %v4169_v33, %v3198_v2  ;;  %vm2062_vm11 = vcmp.eq.s32.totalorder %v4169_v33, %v3201_v3  ;;  %v2960_v34 = vsel %vm1800_vm8, 1.0, %v3172_v27  ;;  %v2962_v35 = vsel %vm1802_vm9, 1.0, %v3172_v27  ;;  %1204 = vmatmul.bf16.vlgmr.msra.gmra.mxu3 %v1154_v32  ;;  %1178 = vmatmul.bf16.vlgmr.msra.gmra.mxu1 %v1154_v32 }
  0xe6   :  { %v3024_v36 = vsel %vm2060_vm10, 1.0, %v3172_v27  ;;  %v3026_v22 = vsel %vm2062_vm11, 1.0, %v3172_v27  ;;  %v1992_v37 = vadd.f32 %v2960_v34, %v1732_v24  ;;  %v1994_v57 = vadd.f32 %v2962_v35, %v1734_v25 }
  0xe7   :  { %v2928_v61 = vsel %vm1572_vm6, 1.0, %v3172_v27  ;;  %v2930_v62 = vsel %vm1574_vm7, 1.0, %v3172_v27  ;;  %vm1832_vm12 = vcmp.eq.s32.totalorder %v4167_v21, %v3204_v4  ;;  %vm1834_vm13 = vcmp.eq.s32.totalorder %v4167_v21, %v3207_v5 }
  0xe8   :  { %v1764_v2 = vadd.f32 %v2928_v61, %v2864_v23  ;;  %v2252_v3 = vadd.f32 %v3024_v36, %v1992_v37  ;;  %v2254_v63 = vadd.f32 %v3026_v22, %v1994_v57  ;;  %v1766_v11 = vadd.f32 %v2930_v62, %v2866_v58 }
  0xe9   :  { %v2992_v14 = vsel %vm1832_vm12, 1.0, %v3172_v27  ;;  %v2994_v26 = vsel %vm1834_vm13, 1.0, %v3172_v27  ;;  %vm2092_vm14 = vcmp.eq.s32.totalorder %v4169_v33, %v3204_v4  ;;  %vm2094_vm15 = vcmp.eq.s32.totalorder %v4169_v33, %v3207_v5 }
  0xea   :  { %v2024_v15 = vadd.f32 %v2992_v14, %v1764_v2  ;;  %v2304_v20 = vpack.c.bf16 %v2254_v63, %v2252_v3  ;;  %v2026_v16 = vadd.f32 %v2994_v26, %v1766_v11  ;;  %v3056_v39 = vsel %vm2092_vm14, 1.0, %v3172_v27 }
  0xeb   :  { %v3058_v29 = vsel %vm2094_vm15, 1.0, %v3172_v27  ;;  %vm1275_vm0 = vcmp.eq.s32.totalorder %v4083_v38, %v3210_v7  ;;  %vm1277_vm1 = vcmp.eq.s32.totalorder %v4083_v38, %v3213_v8  ;;  %vm1535_vm2 = vcmp.eq.s32.totalorder %v4087_v41, %v3210_v7 }
  0xec   :  { %v2284_v24 = vadd.f32 %v3056_v39, %v2024_v15  ;;  %2353 = vmatpush.bf16.msrb.mxu2 %v2304_v20  ;;  %v2286_v4 = vadd.f32 %v3058_v29, %v2026_v16  ;;  %v2827_v5 = vsel %vm1275_vm0, 1.0, %v3172_v27  ;;  %v2829_v25 = vsel %vm1277_vm1, 1.0, %v3172_v27 }
  0xed   :  { %vm1537_vm3 = vcmp.eq.s32.totalorder %v4087_v41, %v3213_v8  ;;  %v2891_v23 = vsel %vm1535_vm2, 1.0, %v3172_v27  ;;  %vm1795_vm4 = vcmp.eq.s32.totalorder %v4089_v42, %v3210_v7  ;;  %vm1797_vm5 = vcmp.eq.s32.totalorder %v4089_v42, %v3213_v8 }
  0xee   :  { %v2893_v34 = vsel %vm1537_vm3, 1.0, %v3172_v27  ;;  %v2320_v35 = vpack.c.bf16 %v2286_v4, %v2284_v24  ;;  %v1727_v36 = vadd.f32 %v2891_v23, %v2827_v5  ;;  %v2955_v37 = vsel %vm1795_vm4, 1.0, %v3172_v27 }
  0xef   :  { %v1729_v22 = vadd.f32 %v2893_v34, %v2829_v25  ;;  %v2957_v57 = vsel %vm1797_vm5, 1.0, %v3172_v27  ;;  %vm2055_vm6 = vcmp.eq.s32.totalorder %v4091_v44, %v3210_v7  ;;  %vm2057_vm7 = vcmp.eq.s32.totalorder %v4091_v44, %v3213_v8 }
  0xf0   :  { %vm1307_vm8 = vcmp.eq.s32.totalorder %v4083_v38, %v3216_v9  ;;  %2366 = vmatpush.bf16.msrb.mxu3 %v2320_v35  ;;  %v1987_v58 = vadd.f32 %v2955_v37, %v1727_v36  ;;  %v3019_v62 = vsel %vm2055_vm6, 1.0, %v3172_v27  ;;  %v3021_v2 = vsel %vm2057_vm7, 1.0, %v3172_v27 }
  0xf1   :  { %v1989_v61 = vadd.f32 %v2957_v57, %v1729_v22  ;;  %vm1309_vm9 = vcmp.eq.s32.totalorder %v4083_v38, %v3219_v10  ;;  %v2859_v3 = vsel %vm1307_vm8, 1.0, %v3172_v27  ;;  %vm1567_vm10 = vcmp.eq.s32.totalorder %v4087_v41, %v3216_v9 }
  0xf2   :  { %vm1569_vm11 = vcmp.eq.s32.totalorder %v4087_v41, %v3219_v10  ;;  %v2247_v63 = vadd.f32 %v3019_v62, %v1987_v58  ;;  %v2861_v14 = vsel %vm1309_vm9, 1.0, %v3172_v27  ;;  %v2923_v26 = vsel %vm1567_vm10, 1.0, %v3172_v27 }
  0xf3   :  { %v2249_v11 = vadd.f32 %v3021_v2, %v1989_v61  ;;  %v2925_v15 = vsel %vm1569_vm11, 1.0, %v3172_v27  ;;  %v1759_v19 = vadd.f32 %v2923_v26, %v2859_v3  ;;  %vm1827_vm12 = vcmp.eq.s32.totalorder %v4089_v42, %v3216_v9 }
  0xf4   :  { %vm1829_vm13 = vcmp.eq.s32.totalorder %v4089_v42, %v3219_v10  ;;  %v1761_v16 = vadd.f32 %v2925_v15, %v2861_v14  ;;  %v2987_v39 = vsel %vm1827_vm12, 1.0, %v3172_v27  ;;  %vm2087_vm14 = vcmp.eq.s32.totalorder %v4091_v44, %v3216_v9 }
  0xf5   :  { %v2301_v20 = vpack.c.bf16 %v2249_v11, %v2247_v63  ;;  %v2989_v29 = vsel %vm1829_vm13, 1.0, %v3172_v27  ;;  %v2019_v32 = vadd.f32 %v2987_v39, %v1759_v19  ;;  %vm2089_vm15 = vcmp.eq.s32.totalorder %v4091_v44, %v3219_v10 }
  0xf6   :  { %vm1276_vm0 = vcmp.eq.s32.totalorder %v4145_v40, %v3210_v7  ;;  %v2021_v24 = vadd.f32 %v2989_v29, %v1761_v16  ;;  %v3051_v4 = vsel %vm2087_vm14, 1.0, %v3172_v27  ;;  %v3053_v5 = vsel %vm2089_vm15, 1.0, %v3172_v27 }
  0xf7   :  { %2328 = vmatpush.bf16.msrb.mxu0 %v2301_v20  ;;  %vm1278_vm1 = vcmp.eq.s32.totalorder %v4145_v40, %v3213_v8  ;;  %v2279_v25 = vadd.f32 %v3051_v4, %v2019_v32  ;;  %v2828_v23 = vsel %vm1276_vm0, 1.0, %v3172_v27  ;;  %vm1536_vm2 = vcmp.eq.s32.totalorder %v4153_v0, %v3210_v7 }
  0xf8   :  { %v2830_v34 = vsel %vm1278_vm1, 1.0, %v3172_v27  ;;  %v2281_v35 = vadd.f32 %v3053_v5, %v2021_v24  ;;  %vm1538_vm3 = vcmp.eq.s32.totalorder %v4153_v0, %v3213_v8  ;;  %v2892_v36 = vsel %vm1536_vm2, 1.0, %v3172_v27 }
  0xf9   :  { %vm1796_vm4 = vcmp.eq.s32.totalorder %v4167_v21, %v3210_v7  ;;  %v2894_v22 = vsel %vm1538_vm3, 1.0, %v3172_v27  ;;  %v1728_v37 = vadd.f32 %v2892_v36, %v2828_v23  ;;  %vm1798_vm5 = vcmp.eq.s32.totalorder %v4167_v21, %v3213_v8  ;;  %v3086_v23 = vld [vmem:[#allocation5] sm:$0xff] }
  0xfa   :  { %v2956_v57 = vsel %vm1796_vm4, 1.0, %v3172_v27  ;;  %v2317_v58 = vpack.c.bf16 %v2281_v35, %v2279_v25  ;;  %v1730_v61 = vadd.f32 %v2894_v22, %v2830_v34  ;;  %v2958_v62 = vsel %vm1798_vm5, 1.0, %v3172_v27 }
  0xfb   :  { %vm2056_vm6 = vcmp.eq.s32.totalorder %v4169_v33, %v3210_v7  ;;  %v1988_v2 = vadd.f32 %v2956_v57, %v1728_v37  ;;  %vm2058_vm7 = vcmp.eq.s32.totalorder %v4169_v33, %v3213_v8  ;;  %vm1308_vm8 = vcmp.eq.s32.totalorder %v4145_v40, %v3216_v9 }
  0xfc   :  { %v3020_v3 = vsel %vm2056_vm6, 1.0, %v3172_v27  ;;  %2341 = vmatpush.bf16.msrb.mxu1 %v2317_v58  ;;  %v1990_v63 = vadd.f32 %v2958_v62, %v1730_v61  ;;  %v3022_v11 = vsel %vm2058_vm7, 1.0, %v3172_v27  ;;  %vm1310_vm9 = vcmp.eq.s32.totalorder %v4145_v40, %v3219_v10 }
  0xfd   :  { %v2860_v14 = vsel %vm1308_vm8, 1.0, %v3172_v27  ;;  %v2248_v26 = vadd.f32 %v3020_v3, %v1988_v2  ;;  %v2862_v7 = vsel %vm1310_vm9, 1.0, %v3172_v27  ;;  %vm1568_vm10 = vcmp.eq.s32.totalorder %v4153_v0, %v3216_v9 }
  0xfe   :  { %vm1570_vm11 = vcmp.eq.s32.totalorder %v4153_v0, %v3219_v10  ;;  %v2250_v8 = vadd.f32 %v3022_v11, %v1990_v63  ;;  %v2924_v15 = vsel %vm1568_vm10, 1.0, %v3172_v27  ;;  %vm1828_vm12 = vcmp.eq.s32.totalorder %v4167_v21, %v3216_v9 }
  0xff   :  { %v2926_v19 = vsel %vm1570_vm11, 1.0, %v3172_v27  ;;  %v1760_v20 = vadd.f32 %v2924_v15, %v2860_v14  ;;  %vm1830_vm13 = vcmp.eq.s32.totalorder %v4167_v21, %v3219_v10  ;;  %v2988_v39 = vsel %vm1828_vm12, 1.0, %v3172_v27 }
 0x100   :  { %v1762_v16 = vadd.f32 %v2926_v19, %v2862_v7  ;;  %v2302_v29 = vpack.c.bf16 %v2250_v8, %v2248_v26  ;;  %v2990_v32 = vsel %vm1830_vm13, 1.0, %v3172_v27  ;;  %vm2088_vm14 = vcmp.eq.s32.totalorder %v4169_v33, %v3216_v9  ;;  %v2288_v7 = vld [vmem:[#allocation2 + $0x4] sm:$0xf] }
 0x101   :  { %vm2090_vm15 = vcmp.eq.s32.totalorder %v4169_v33, %v3219_v10  ;;  %v2020_v24 = vadd.f32 %v2988_v39, %v1760_v20  ;;  %v3052_v5 = vsel %vm2088_vm14, 1.0, %v3172_v27  ;;  %vm1209_vm0 = vcmp.lt.s32.totalorder %v3086_v23, 256 }
 0x102   :  { %v2022_v4 = vadd.f32 %v2990_v32, %v1762_v16  ;;  %v3054_v25 = vsel %vm2090_vm15, 1.0, %v3172_v27  ;;  %2354 = vmatpush.bf16.msrb.mxu2 %v2302_v29  ;;  %vm1271_vm1 = vcmp.eq.s32.totalorder %v4083_v38, %v3429_v51  ;;  %vm1273_vm2 = vcmp.eq.s32.totalorder %v4083_v38, %v3433_v54 }
 0x103   :  { %vm1531_vm3 = vcmp.eq.s32.totalorder %v4087_v41, %v3429_v51  ;;  %v2280_v9 = vadd.f32 %v3052_v5, %v2020_v24  ;;  %v2800_v34 = vsel %vm1209_vm0, 1.0, %v3172_v27  ;;  %v2823_v35 = vsel %vm1271_vm1, 1.0, %v3172_v27 }
 0x104   :  { %v2282_v10 = vadd.f32 %v3054_v25, %v2022_v4  ;;  %1213 = vst [vmem:[#allocation1] ss:$2 sm:$0xff] %v2800_v34  ;;  %v2825_v36 = vsel %vm1273_vm2, 1.0, %v3172_v27  ;;  %vm1533_vm4 = vcmp.eq.s32.totalorder %v4087_v41, %v3433_v54  ;;  %v2887_v22 = vsel %vm1531_vm3, 1.0, %v3172_v27 }
 0x105   :  { %vm1791_vm5 = vcmp.eq.s32.totalorder %v4089_v42, %v3429_v51  ;;  %v2889_v57 = vsel %vm1533_vm4, 1.0, %v3172_v27  ;;  %v1723_v58 = vadd.f32 %v2887_v22, %v2823_v35  ;;  %vm1793_vm6 = vcmp.eq.s32.totalorder %v4089_v42, %v3433_v54 }
 0x106   :  { %v2318_v37 = vpack.c.bf16 %v2282_v10, %v2280_v9  ;;  %v1725_v61 = vadd.f32 %v2889_v57, %v2825_v36  ;;  %v2951_v62 = vsel %vm1791_vm5, 1.0, %v3172_v27  ;;  %v2953_v2 = vsel %vm1793_vm6, 1.0, %v3172_v27 }
 0x107   :  { %vm2051_vm7 = vcmp.eq.s32.totalorder %v4091_v44, %v3429_v51  ;;  %v1983_v3 = vadd.f32 %v2951_v62, %v1723_v58  ;;  %vm2053_vm8 = vcmp.eq.s32.totalorder %v4091_v44, %v3433_v54  ;;  %vm1303_vm9 = vcmp.eq.s32.totalorder %v4083_v38, %v3436_v55 }
 0x108   :  { %2367 = vmatpush.bf16.msrb.mxu3 %v2318_v37  ;;  %v3015_v63 = vsel %vm2051_vm7, 1.0, %v3172_v27  ;;  %v1985_v11 = vadd.f32 %v2953_v2, %v1725_v61  ;;  %v3017_v14 = vsel %vm2053_vm8, 1.0, %v3172_v27  ;;  %vm1305_vm10 = vcmp.eq.s32.totalorder %v4083_v38, %v3461_v12 }
 0x109   :  { %v2855_v26 = vsel %vm1303_vm9, 1.0, %v3172_v27  ;;  %v2243_v8 = vadd.f32 %v3015_v63, %v1983_v3  ;;  %v2857_v15 = vsel %vm1305_vm10, 1.0, %v3172_v27  ;;  %vm1563_vm11 = vcmp.eq.s32.totalorder %v4087_v41, %v3436_v55 }
 0x10a   :  { %vm1565_vm12 = vcmp.eq.s32.totalorder %v4087_v41, %v3461_v12  ;;  %v2245_v19 = vadd.f32 %v3017_v14, %v1985_v11  ;;  %v2919_v20 = vsel %vm1563_vm11, 1.0, %v3172_v27  ;;  %vm1823_vm13 = vcmp.eq.s32.totalorder %v4089_v42, %v3436_v55 }
 0x10b   :  { %v2921_v16 = vsel %vm1565_vm12, 1.0, %v3172_v27  ;;  %v4340_v39 = vld.sshfl [vmem:[#allocation1] sm:$0xff pattern:$0x75316420]  ;;  %v1755_v32 = vadd.f32 %v2919_v20, %v2855_v26  ;;  %vm1825_vm14 = vcmp.eq.s32.totalorder %v4089_v42, %v3461_v12  ;;  %vm2083_vm15 = vcmp.eq.s32.totalorder %v4091_v44, %v3436_v55 }
 0x10c   :  { %v4342_v29 = vld.sshfl [vmem:[#allocation1 + $0x8] sm:$0xff pattern:$0x75316420]  ;;  %v1757_v24 = vadd.f32 %v2921_v16, %v2857_v15  ;;  %v2299_v4 = vpack.c.bf16 %v2245_v19, %v2243_v8  ;;  %v2983_v5 = vsel %vm1823_vm13, 1.0, %v3172_v27  ;;  %v2985_v25 = vsel %vm1825_vm14, 1.0, %v3172_v27 }
 0x10d   :  { %2322 = vst [vmem:[#allocation1] ss:$4 sm:$0xff] %v2288_v7  ;;  %vm2085_vm0 = vcmp.eq.s32.totalorder %v4091_v44, %v3461_v12  ;;  %v2015_v23 = vadd.f32 %v2983_v5, %v1755_v32  ;;  %v3047_v10 = vsel %vm2083_vm15, 1.0, %v3172_v27  ;;  %vm1272_vm1 = vcmp.eq.s32.totalorder %v4145_v40, %v3429_v51 }
 0x10e   :  { %v2017_v9 = vadd.f32 %v2985_v25, %v1757_v24  ;;  %v3049_v34 = vsel %vm2085_vm0, 1.0, %v3172_v27  ;;  %2329 = vmatpush.bf16.msrb.mxu0 %v2299_v4  ;;  %vm1274_vm2 = vcmp.eq.s32.totalorder %v4145_v40, %v3433_v54  ;;  %vm1532_vm3 = vcmp.eq.s32.totalorder %v4153_v0, %v3429_v51 }
 0x10f   :  { %vm1534_vm4 = vcmp.eq.s32.totalorder %v4153_v0, %v3433_v54  ;;  %v2275_v35 = vadd.f32 %v3047_v10, %v2015_v23  ;;  %v2824_v22 = vsel %vm1272_vm1, 1.0, %v3172_v27  ;;  %v2826_v37 = vsel %vm1274_vm2, 1.0, %v3172_v27 }
 0x110   :  { %v2277_v36 = vadd.f32 %v3049_v34, %v2017_v9  ;;  %v2888_v57 = vsel %vm1532_vm3, 1.0, %v3172_v27  ;;  %v2890_v58 = vsel %vm1534_vm4, 1.0, %v3172_v27  ;;  %vm1792_vm5 = vcmp.eq.s32.totalorder %v4167_v21, %v3429_v51 }
 0x111   :  { %vm1794_vm6 = vcmp.eq.s32.totalorder %v4167_v21, %v3433_v54  ;;  %v1724_v62 = vadd.f32 %v2888_v57, %v2824_v22  ;;  %v1726_v2 = vadd.f32 %v2890_v58, %v2826_v37  ;;  %v2952_v3 = vsel %vm1792_vm5, 1.0, %v3172_v27 }
 0x112   :  { %v2315_v61 = vpack.c.bf16 %v2277_v36, %v2275_v35  ;;  %v2954_v63 = vsel %vm1794_vm6, 1.0, %v3172_v27  ;;  %vm2052_vm7 = vcmp.eq.s32.totalorder %v4169_v33, %v3429_v51  ;;  %vm2054_vm8 = vcmp.eq.s32.totalorder %v4169_v33, %v3433_v54 }
 0x113   :  { %vm1304_vm9 = vcmp.eq.s32.totalorder %v4145_v40, %v3436_v55  ;;  %v1984_v11 = vadd.f32 %v2952_v3, %v1724_v62  ;;  %v1986_v14 = vadd.f32 %v2954_v63, %v1726_v2  ;;  %v3016_v26 = vsel %vm2052_vm7, 1.0, %v3172_v27 }
 0x114   :  { %2342 = vmatpush.bf16.msrb.mxu1 %v2315_v61  ;;  %v3018_v7 = vsel %vm2054_vm8, 1.0, %v3172_v27  ;;  %vm1306_vm10 = vcmp.eq.s32.totalorder %v4145_v40, %v3461_v12  ;;  %v2856_v8 = vsel %vm1304_vm9, 1.0, %v3172_v27  ;;  %vm1564_vm11 = vcmp.eq.s32.totalorder %v4153_v0, %v3436_v55 }
 0x115   :  { %vm1566_vm12 = vcmp.eq.s32.totalorder %v4153_v0, %v3461_v12  ;;  %v2244_v51 = vadd.f32 %v3016_v26, %v1984_v11  ;;  %v2246_v54 = vadd.f32 %v3018_v7, %v1986_v14  ;;  %v2858_v15 = vsel %vm1306_vm10, 1.0, %v3172_v27 }
 0x116   :  { %v2920_v19 = vsel %vm1564_vm11, 1.0, %v3172_v27  ;;  %v2922_v20 = vsel %vm1566_vm12, 1.0, %v3172_v27  ;;  %vm1824_vm13 = vcmp.eq.s32.totalorder %v4167_v21, %v3436_v55  ;;  %vm1826_vm14 = vcmp.eq.s32.totalorder %v4167_v21, %v3461_v12 }
 0x117   :  { %v1756_v16 = vadd.f32 %v2920_v19, %v2856_v8  ;;  %v2300_v32 = vpack.c.bf16 %v2246_v54, %v2244_v51  ;;  %v1758_v24 = vadd.f32 %v2922_v20, %v2858_v15  ;;  %v2984_v4 = vsel %vm1824_vm13, 1.0, %v3172_v27 }
 0x118   :  { %v2986_v5 = vsel %vm1826_vm14, 1.0, %v3172_v27  ;;  %vm2084_vm15 = vcmp.eq.s32.totalorder %v4169_v33, %v3436_v55  ;;  %vm2086_vm0 = vcmp.eq.s32.totalorder %v4169_v33, %v3461_v12  ;;  %vm1267_vm1 = vcmp.eq.s32.totalorder %v4083_v38, %v3537_v18 }
 0x119   :  { %v2016_v25 = vadd.f32 %v2984_v4, %v1756_v16  ;;  %2355 = vmatpush.bf16.msrb.mxu2 %v2300_v32  ;;  %v2018_v23 = vadd.f32 %v2986_v5, %v1758_v24  ;;  %v3048_v9 = vsel %vm2084_vm15, 1.0, %v3172_v27  ;;  %v3050_v10 = vsel %vm2086_vm0, 1.0, %v3172_v27 }
 0x11a   :  { %vm1269_vm2 = vcmp.eq.s32.totalorder %v4083_v38, %v3541_v30  ;;  %v2819_v35 = vsel %vm1267_vm1, 1.0, %v3172_v27  ;;  %vm1527_vm3 = vcmp.eq.s32.totalorder %v4087_v41, %v3537_v18  ;;  %vm1529_vm4 = vcmp.eq.s32.totalorder %v4087_v41, %v3541_v30 }
 0x11b   :  { %v2276_v34 = vadd.f32 %v3048_v9, %v2016_v25  ;;  %v2821_v55 = vsel %vm1269_vm2, 1.0, %v3172_v27  ;;  %v2278_v12 = vadd.f32 %v3050_v10, %v2018_v23  ;;  %v2883_v36 = vsel %vm1527_vm3, 1.0, %v3172_v27 }
 0x11c   :  { %vm1787_vm5 = vcmp.eq.s32.totalorder %v4089_v42, %v3537_v18  ;;  %v2885_v22 = vsel %vm1529_vm4, 1.0, %v3172_v27  ;;  %v1719_v37 = vadd.f32 %v2883_v36, %v2819_v35  ;;  %vm1789_vm6 = vcmp.eq.s32.totalorder %v4089_v42, %v3541_v30 }
 0x11d   :  { %v2947_v57 = vsel %vm1787_vm5, 1.0, %v3172_v27  ;;  %v2316_v58 = vpack.c.bf16 %v2278_v12, %v2276_v34  ;;  %v1721_v61 = vadd.f32 %v2885_v22, %v2821_v55  ;;  %v2949_v62 = vsel %vm1789_vm6, 1.0, %v3172_v27 }
 0x11e   :  { %vm2047_vm7 = vcmp.eq.s32.totalorder %v4091_v44, %v3537_v18  ;;  %v1979_v2 = vadd.f32 %v2947_v57, %v1719_v37  ;;  %vm2049_vm8 = vcmp.eq.s32.totalorder %v4091_v44, %v3541_v30  ;;  %vm1299_vm9 = vcmp.eq.s32.totalorder %v4083_v38, %v3544_v31 }
 0x11f   :  { %v3011_v3 = vsel %vm2047_vm7, 1.0, %v3172_v27  ;;  %2368 = vmatpush.bf16.msrb.mxu3 %v2316_v58  ;;  %v1981_v63 = vadd.f32 %v2949_v62, %v1721_v61  ;;  %v3013_v11 = vsel %vm2049_vm8, 1.0, %v3172_v27  ;;  %vm1301_vm10 = vcmp.eq.s32.totalorder %v4083_v38, %v3569_v43 }
 0x120   :  { %v2851_v14 = vsel %vm1299_vm9, 1.0, %v3172_v27  ;;  %v2239_v26 = vadd.f32 %v3011_v3, %v1979_v2  ;;  %v2853_v7 = vsel %vm1301_vm10, 1.0, %v3172_v27  ;;  %vm1559_vm11 = vcmp.eq.s32.totalorder %v4087_v41, %v3544_v31 }
 0x121   :  { %vm1561_vm12 = vcmp.eq.s32.totalorder %v4087_v41, %v3569_v43  ;;  %v2241_v8 = vadd.f32 %v3013_v11, %v1981_v63  ;;  %v2915_v51 = vsel %vm1559_vm11, 1.0, %v3172_v27  ;;  %vm1819_vm13 = vcmp.eq.s32.totalorder %v4089_v42, %v3544_v31 }
 0x122   :  { %v2917_v54 = vsel %vm1561_vm12, 1.0, %v3172_v27  ;;  %v1751_v15 = vadd.f32 %v2915_v51, %v2851_v14  ;;  %vm1821_vm14 = vcmp.eq.s32.totalorder %v4089_v42, %v3569_v43  ;;  %v2979_v20 = vsel %vm1819_vm13, 1.0, %v3172_v27 }
 0x123   :  { %v1753_v19 = vadd.f32 %v2917_v54, %v2853_v7  ;;  %v2297_v16 = vpack.c.bf16 %v2241_v8, %v2239_v26  ;;  %v2981_v32 = vsel %vm1821_vm14, 1.0, %v3172_v27  ;;  %vm2079_vm15 = vcmp.eq.s32.totalorder %v4091_v44, %v3544_v31 }
 0x124   :  { %vm2081_vm0 = vcmp.eq.s32.totalorder %v4091_v44, %v3569_v43  ;;  %v2011_v24 = vadd.f32 %v2979_v20, %v1751_v15  ;;  %v3043_v5 = vsel %vm2079_vm15, 1.0, %v3172_v27  ;;  %vm1268_vm1 = vcmp.eq.s32.totalorder %v4145_v40, %v3537_v18 }
 0x125   :  { %v2013_v4 = vadd.f32 %v2981_v32, %v1753_v19  ;;  %v3045_v25 = vsel %vm2081_vm0, 1.0, %v3172_v27  ;;  %2330 = vmatpush.bf16.msrb.mxu0 %v2297_v16  ;;  %vm1270_vm2 = vcmp.eq.s32.totalorder %v4145_v40, %v3541_v30  ;;  %vm1528_vm3 = vcmp.eq.s32.totalorder %v4153_v0, %v3537_v18 }
 0x126   :  { %vm1530_vm4 = vcmp.eq.s32.totalorder %v4153_v0, %v3541_v30  ;;  %v2271_v23 = vadd.f32 %v3043_v5, %v2011_v24  ;;  %v2820_v10 = vsel %vm1268_vm1, 1.0, %v3172_v27  ;;  %v2822_v34 = vsel %vm1270_vm2, 1.0, %v3172_v27 }
 0x127   :  { %v2273_v9 = vadd.f32 %v3045_v25, %v2013_v4  ;;  %v2884_v35 = vsel %vm1528_vm3, 1.0, %v3172_v27  ;;  %v2886_v55 = vsel %vm1530_vm4, 1.0, %v3172_v27  ;;  %vm1788_vm5 = vcmp.eq.s32.totalorder %v4167_v21, %v3537_v18 }
 0x128   :  { %vm1790_vm6 = vcmp.eq.s32.totalorder %v4167_v21, %v3541_v30  ;;  %v1720_v36 = vadd.f32 %v2884_v35, %v2820_v10  ;;  %v1722_v22 = vadd.f32 %v2886_v55, %v2822_v34  ;;  %v2948_v37 = vsel %vm1788_vm5, 1.0, %v3172_v27 }
 0x129   :  { %v2313_v12 = vpack.c.bf16 %v2273_v9, %v2271_v23  ;;  %v2950_v57 = vsel %vm1790_vm6, 1.0, %v3172_v27  ;;  %vm2048_vm7 = vcmp.eq.s32.totalorder %v4169_v33, %v3537_v18  ;;  %vm2050_vm8 = vcmp.eq.s32.totalorder %v4169_v33, %v3541_v30 }
 0x12a   :  { %vm1300_vm9 = vcmp.eq.s32.totalorder %v4145_v40, %v3544_v31  ;;  %v1980_v58 = vadd.f32 %v2948_v37, %v1720_v36  ;;  %v1982_v61 = vadd.f32 %v2950_v57, %v1722_v22  ;;  %v3012_v62 = vsel %vm2048_vm7, 1.0, %v3172_v27 }
 0x12b   :  { %2343 = vmatpush.bf16.msrb.mxu1 %v2313_v12  ;;  %v3014_v2 = vsel %vm2050_vm8, 1.0, %v3172_v27  ;;  %vm1302_vm10 = vcmp.eq.s32.totalorder %v4145_v40, %v3569_v43  ;;  %v2852_v3 = vsel %vm1300_vm9, 1.0, %v3172_v27  ;;  %vm1560_vm11 = vcmp.eq.s32.totalorder %v4153_v0, %v3544_v31 }
 0x12c   :  { %vm1562_vm12 = vcmp.eq.s32.totalorder %v4153_v0, %v3569_v43  ;;  %v2240_v18 = vadd.f32 %v3012_v62, %v1980_v58  ;;  %v2242_v30 = vadd.f32 %v3014_v2, %v1982_v61  ;;  %v2854_v63 = vsel %vm1302_vm10, 1.0, %v3172_v27 }
 0x12d   :  { %v2916_v11 = vsel %vm1560_vm11, 1.0, %v3172_v27  ;;  %v2918_v14 = vsel %vm1562_vm12, 1.0, %v3172_v27  ;;  %vm1820_vm13 = vcmp.eq.s32.totalorder %v4167_v21, %v3544_v31  ;;  %vm1822_vm14 = vcmp.eq.s32.totalorder %v4167_v21, %v3569_v43 }
 0x12e   :  { %v1752_v26 = vadd.f32 %v2916_v11, %v2852_v3  ;;  %v2298_v7 = vpack.c.bf16 %v2242_v30, %v2240_v18  ;;  %v1754_v8 = vadd.f32 %v2918_v14, %v2854_v63  ;;  %v2980_v51 = vsel %vm1820_vm13, 1.0, %v3172_v27 }
 0x12f   :  { %v2982_v54 = vsel %vm1822_vm14, 1.0, %v3172_v27  ;;  %vm2080_vm15 = vcmp.eq.s32.totalorder %v4169_v33, %v3544_v31  ;;  %vm2082_vm0 = vcmp.eq.s32.totalorder %v4169_v33, %v3569_v43  ;;  %vm1263_vm1 = vcmp.eq.s32.totalorder %v4083_v38, %v3645_v56 }
 0x130   :  { %v2012_v15 = vadd.f32 %v2980_v51, %v1752_v26  ;;  %2356 = vmatpush.bf16.msrb.mxu2 %v2298_v7  ;;  %v2014_v19 = vadd.f32 %v2982_v54, %v1754_v8  ;;  %v3044_v20 = vsel %vm2080_vm15, 1.0, %v3172_v27  ;;  %v3046_v16 = vsel %vm2082_vm0, 1.0, %v3172_v27 }
 0x131   :  { %vm1265_vm2 = vcmp.eq.s32.totalorder %v4083_v38, %v3649_v59  ;;  %v2815_v24 = vsel %vm1263_vm1, 1.0, %v3172_v27  ;;  %vm1523_vm3 = vcmp.eq.s32.totalorder %v4087_v41, %v3645_v56  ;;  %vm1525_vm4 = vcmp.eq.s32.totalorder %v4087_v41, %v3649_v59 }
 0x132   :  { %v2272_v32 = vadd.f32 %v3044_v20, %v2012_v15  ;;  %v2817_v31 = vsel %vm1265_vm2, 1.0, %v3172_v27  ;;  %v2274_v43 = vadd.f32 %v3046_v16, %v2014_v19  ;;  %v2879_v4 = vsel %vm1523_vm3, 1.0, %v3172_v27 }
 0x133   :  { %vm1783_vm5 = vcmp.eq.s32.totalorder %v4089_v42, %v3645_v56  ;;  %v2881_v5 = vsel %vm1525_vm4, 1.0, %v3172_v27  ;;  %v1715_v25 = vadd.f32 %v2879_v4, %v2815_v24  ;;  %vm1785_vm6 = vcmp.eq.s32.totalorder %v4089_v42, %v3649_v59 }
 0x134   :  { %v2943_v23 = vsel %vm1783_vm5, 1.0, %v3172_v27  ;;  %v2314_v9 = vpack.c.bf16 %v2274_v43, %v2272_v32  ;;  %v1717_v10 = vadd.f32 %v2881_v5, %v2817_v31  ;;  %v2945_v34 = vsel %vm1785_vm6, 1.0, %v3172_v27 }
 0x135   :  { %vm2043_vm7 = vcmp.eq.s32.totalorder %v4091_v44, %v3645_v56  ;;  %v1975_v35 = vadd.f32 %v2943_v23, %v1715_v25  ;;  %vm2045_vm8 = vcmp.eq.s32.totalorder %v4091_v44, %v3649_v59  ;;  %vm1295_vm9 = vcmp.eq.s32.totalorder %v4083_v38, %v3652_v60 }
 0x136   :  { %v3007_v55 = vsel %vm2043_vm7, 1.0, %v3172_v27  ;;  %2369 = vmatpush.bf16.msrb.mxu3 %v2314_v9  ;;  %v1977_v12 = vadd.f32 %v2945_v34, %v1717_v10  ;;  %v3009_v36 = vsel %vm2045_vm8, 1.0, %v3172_v27  ;;  %vm1297_vm10 = vcmp.eq.s32.totalorder %v4083_v38, %v3677_v28 }
 0x137   :  { %v2847_v22 = vsel %vm1295_vm9, 1.0, %v3172_v27  ;;  %v2235_v37 = vadd.f32 %v3007_v55, %v1975_v35  ;;  %v2849_v57 = vsel %vm1297_vm10, 1.0, %v3172_v27  ;;  %vm1555_vm11 = vcmp.eq.s32.totalorder %v4087_v41, %v3652_v60 }
 0x138   :  { %vm1557_vm12 = vcmp.eq.s32.totalorder %v4087_v41, %v3677_v28  ;;  %v2237_v58 = vadd.f32 %v3009_v36, %v1977_v12  ;;  %v2911_v61 = vsel %vm1555_vm11, 1.0, %v3172_v27  ;;  %vm1815_vm13 = vcmp.eq.s32.totalorder %v4089_v42, %v3652_v60 }
 0x139   :  { %v2913_v62 = vsel %vm1557_vm12, 1.0, %v3172_v27  ;;  %v1747_v2 = vadd.f32 %v2911_v61, %v2847_v22  ;;  %vm1817_vm14 = vcmp.eq.s32.totalorder %v4089_v42, %v3677_v28  ;;  %v2975_v18 = vsel %vm1815_vm13, 1.0, %v3172_v27 }
 0x13a   :  { %v1749_v3 = vadd.f32 %v2913_v62, %v2849_v57  ;;  %v2295_v30 = vpack.c.bf16 %v2237_v58, %v2235_v37  ;;  %v2977_v63 = vsel %vm1817_vm14, 1.0, %v3172_v27  ;;  %vm2075_vm15 = vcmp.eq.s32.totalorder %v4091_v44, %v3652_v60 }
 0x13b   :  { %vm2077_vm0 = vcmp.eq.s32.totalorder %v4091_v44, %v3677_v28  ;;  %v2007_v11 = vadd.f32 %v2975_v18, %v1747_v2  ;;  %v3039_v26 = vsel %vm2075_vm15, 1.0, %v3172_v27  ;;  %vm1264_vm1 = vcmp.eq.s32.totalorder %v4145_v40, %v3645_v56 }
 0x13c   :  { %v2009_v14 = vadd.f32 %v2977_v63, %v1749_v3  ;;  %v3041_v7 = vsel %vm2077_vm0, 1.0, %v3172_v27  ;;  %2331 = vmatpush.bf16.msrb.mxu0 %v2295_v30  ;;  %vm1266_vm2 = vcmp.eq.s32.totalorder %v4145_v40, %v3649_v59  ;;  %vm1524_vm3 = vcmp.eq.s32.totalorder %v4153_v0, %v3645_v56 }
 0x13d   :  { %vm1526_vm4 = vcmp.eq.s32.totalorder %v4153_v0, %v3649_v59  ;;  %v2267_v8 = vadd.f32 %v3039_v26, %v2007_v11  ;;  %v2816_v54 = vsel %vm1264_vm1, 1.0, %v3172_v27  ;;  %v2818_v15 = vsel %vm1266_vm2, 1.0, %v3172_v27 }
 0x13e   :  { %v2269_v51 = vadd.f32 %v3041_v7, %v2009_v14  ;;  %v2880_v19 = vsel %vm1524_vm3, 1.0, %v3172_v27  ;;  %v2882_v20 = vsel %vm1526_vm4, 1.0, %v3172_v27  ;;  %vm1784_vm5 = vcmp.eq.s32.totalorder %v4167_v21, %v3645_v56 }
 0x13f   :  { %vm1786_vm6 = vcmp.eq.s32.totalorder %v4167_v21, %v3649_v59  ;;  %v1716_v32 = vadd.f32 %v2880_v19, %v2816_v54  ;;  %v1718_v24 = vadd.f32 %v2882_v20, %v2818_v15  ;;  %v2944_v31 = vsel %vm1784_vm5, 1.0, %v3172_v27 }
 0x140   :  { %v2311_v16 = vpack.c.bf16 %v2269_v51, %v2267_v8  ;;  %v2946_v43 = vsel %vm1786_vm6, 1.0, %v3172_v27  ;;  %vm2044_vm7 = vcmp.eq.s32.totalorder %v4169_v33, %v3645_v56  ;;  %vm2046_vm8 = vcmp.eq.s32.totalorder %v4169_v33, %v3649_v59 }
 0x141   :  { %vm1296_vm9 = vcmp.eq.s32.totalorder %v4145_v40, %v3652_v60  ;;  %v1976_v4 = vadd.f32 %v2944_v31, %v1716_v32  ;;  %v1978_v5 = vadd.f32 %v2946_v43, %v1718_v24  ;;  %v3008_v25 = vsel %vm2044_vm7, 1.0, %v3172_v27 }
 0x142   :  { %2344 = vmatpush.bf16.msrb.mxu1 %v2311_v16  ;;  %v3010_v23 = vsel %vm2046_vm8, 1.0, %v3172_v27  ;;  %vm1298_vm10 = vcmp.eq.s32.totalorder %v4145_v40, %v3677_v28  ;;  %v2848_v9 = vsel %vm1296_vm9, 1.0, %v3172_v27  ;;  %vm1556_vm11 = vcmp.eq.s32.totalorder %v4153_v0, %v3652_v60 }
 0x143   :  { %vm1558_vm12 = vcmp.eq.s32.totalorder %v4153_v0, %v3677_v28  ;;  %v2236_v56 = vadd.f32 %v3008_v25, %v1976_v4  ;;  %v2238_v59 = vadd.f32 %v3010_v23, %v1978_v5  ;;  %v2850_v10 = vsel %vm1298_vm10, 1.0, %v3172_v27 }
 0x144   :  { %v2912_v34 = vsel %vm1556_vm11, 1.0, %v3172_v27  ;;  %v2914_v35 = vsel %vm1558_vm12, 1.0, %v3172_v27  ;;  %vm1816_vm13 = vcmp.eq.s32.totalorder %v4167_v21, %v3652_v60  ;;  %vm1818_vm14 = vcmp.eq.s32.totalorder %v4167_v21, %v3677_v28 }
 0x145   :  { %v1748_v55 = vadd.f32 %v2912_v34, %v2848_v9  ;;  %v2296_v12 = vpack.c.bf16 %v2238_v59, %v2236_v56  ;;  %v1750_v36 = vadd.f32 %v2914_v35, %v2850_v10  ;;  %v2976_v22 = vsel %vm1816_vm13, 1.0, %v3172_v27 }
 0x146   :  { %v2978_v37 = vsel %vm1818_vm14, 1.0, %v3172_v27  ;;  %vm2076_vm15 = vcmp.eq.s32.totalorder %v4169_v33, %v3652_v60  ;;  %vm2078_vm0 = vcmp.eq.s32.totalorder %v4169_v33, %v3677_v28  ;;  %vm1259_vm1 = vcmp.eq.s32.totalorder %v4083_v38, %v3753_v45 }
 0x147   :  { %v2008_v57 = vadd.f32 %v2976_v22, %v1748_v55  ;;  %2357 = vmatpush.bf16.msrb.mxu2 %v2296_v12  ;;  %v2010_v58 = vadd.f32 %v2978_v37, %v1750_v36  ;;  %v3040_v61 = vsel %vm2076_vm15, 1.0, %v3172_v27  ;;  %v3042_v62 = vsel %vm2078_vm0, 1.0, %v3172_v27 }
 0x148   :  { %vm1261_vm2 = vcmp.eq.s32.totalorder %v4083_v38, %v3757_v48  ;;  %v2811_v3 = vsel %vm1259_vm1, 1.0, %v3172_v27  ;;  %vm1519_vm3 = vcmp.eq.s32.totalorder %v4087_v41, %v3753_v45  ;;  %vm1521_vm4 = vcmp.eq.s32.totalorder %v4087_v41, %v3757_v48 }
 0x149   :  { %v2268_v2 = vadd.f32 %v3040_v61, %v2008_v57  ;;  %v2813_v60 = vsel %vm1261_vm2, 1.0, %v3172_v27  ;;  %v2270_v28 = vadd.f32 %v3042_v62, %v2010_v58  ;;  %v2875_v18 = vsel %vm1519_vm3, 1.0, %v3172_v27 }
 0x14a   :  { %vm1779_vm5 = vcmp.eq.s32.totalorder %v4089_v42, %v3753_v45  ;;  %v2877_v30 = vsel %vm1521_vm4, 1.0, %v3172_v27  ;;  %v1711_v63 = vadd.f32 %v2875_v18, %v2811_v3  ;;  %vm1781_vm6 = vcmp.eq.s32.totalorder %v4089_v42, %v3757_v48 }
 0x14b   :  { %v2939_v11 = vsel %vm1779_vm5, 1.0, %v3172_v27  ;;  %v2312_v14 = vpack.c.bf16 %v2270_v28, %v2268_v2  ;;  %v1713_v26 = vadd.f32 %v2877_v30, %v2813_v60  ;;  %v2941_v7 = vsel %vm1781_vm6, 1.0, %v3172_v27 }
 0x14c   :  { %vm2039_vm7 = vcmp.eq.s32.totalorder %v4091_v44, %v3753_v45  ;;  %v1971_v8 = vadd.f32 %v2939_v11, %v1711_v63  ;;  %vm2041_vm8 = vcmp.eq.s32.totalorder %v4091_v44, %v3757_v48  ;;  %vm1291_vm9 = vcmp.eq.s32.totalorder %v4083_v38, %v3760_v49 }
 0x14d   :  { %v3003_v51 = vsel %vm2039_vm7, 1.0, %v3172_v27  ;;  %2370 = vmatpush.bf16.msrb.mxu3 %v2312_v14  ;;  %v1973_v54 = vadd.f32 %v2941_v7, %v1713_v26  ;;  %v3005_v15 = vsel %vm2041_vm8, 1.0, %v3172_v27  ;;  %vm1293_vm10 = vcmp.eq.s32.totalorder %v4083_v38, %v3785_v13 }
 0x14e   :  { %v2843_v19 = vsel %vm1291_vm9, 1.0, %v3172_v27  ;;  %v2231_v20 = vadd.f32 %v3003_v51, %v1971_v8  ;;  %v2845_v16 = vsel %vm1293_vm10, 1.0, %v3172_v27  ;;  %vm1551_vm11 = vcmp.eq.s32.totalorder %v4087_v41, %v3760_v49 }
 0x14f   :  { %vm1553_vm12 = vcmp.eq.s32.totalorder %v4087_v41, %v3785_v13  ;;  %v2233_v32 = vadd.f32 %v3005_v15, %v1973_v54  ;;  %v2907_v24 = vsel %vm1551_vm11, 1.0, %v3172_v27  ;;  %vm1811_vm13 = vcmp.eq.s32.totalorder %v4089_v42, %v3760_v49 }
 0x150   :  { %v2909_v31 = vsel %vm1553_vm12, 1.0, %v3172_v27  ;;  %v1743_v43 = vadd.f32 %v2907_v24, %v2843_v19  ;;  %vm1813_vm14 = vcmp.eq.s32.totalorder %v4089_v42, %v3785_v13  ;;  %v2971_v5 = vsel %vm1811_vm13, 1.0, %v3172_v27 }
 0x151   :  { %v1745_v4 = vadd.f32 %v2909_v31, %v2845_v16  ;;  %v2293_v25 = vpack.c.bf16 %v2233_v32, %v2231_v20  ;;  %v2973_v23 = vsel %vm1813_vm14, 1.0, %v3172_v27  ;;  %vm2071_vm15 = vcmp.eq.s32.totalorder %v4091_v44, %v3760_v49 }
 0x152   :  { %vm2073_vm0 = vcmp.eq.s32.totalorder %v4091_v44, %v3785_v13  ;;  %v2003_v9 = vadd.f32 %v2971_v5, %v1743_v43  ;;  %v3035_v59 = vsel %vm2071_vm15, 1.0, %v3172_v27  ;;  %vm1260_vm1 = vcmp.eq.s32.totalorder %v4145_v40, %v3753_v45 }
 0x153   :  { %v2005_v56 = vadd.f32 %v2973_v23, %v1745_v4  ;;  %v3037_v10 = vsel %vm2073_vm0, 1.0, %v3172_v27  ;;  %2332 = vmatpush.bf16.msrb.mxu0 %v2293_v25  ;;  %vm1262_vm2 = vcmp.eq.s32.totalorder %v4145_v40, %v3757_v48  ;;  %vm1520_vm3 = vcmp.eq.s32.totalorder %v4153_v0, %v3753_v45 }
 0x154   :  { %vm1522_vm4 = vcmp.eq.s32.totalorder %v4153_v0, %v3757_v48  ;;  %v2263_v34 = vadd.f32 %v3035_v59, %v2003_v9  ;;  %v2812_v55 = vsel %vm1260_vm1, 1.0, %v3172_v27  ;;  %v2814_v12 = vsel %vm1262_vm2, 1.0, %v3172_v27 }
 0x155   :  { %v2265_v35 = vadd.f32 %v3037_v10, %v2005_v56  ;;  %v2876_v36 = vsel %vm1520_vm3, 1.0, %v3172_v27  ;;  %v2878_v22 = vsel %vm1522_vm4, 1.0, %v3172_v27  ;;  %vm1780_vm5 = vcmp.eq.s32.totalorder %v4167_v21, %v3753_v45 }
 0x156   :  { %vm1782_vm6 = vcmp.eq.s32.totalorder %v4167_v21, %v3757_v48  ;;  %v1712_v57 = vadd.f32 %v2876_v36, %v2812_v55  ;;  %v1714_v58 = vadd.f32 %v2878_v22, %v2814_v12  ;;  %v2940_v61 = vsel %vm1780_vm5, 1.0, %v3172_v27 }
 0x157   :  { %v2309_v37 = vpack.c.bf16 %v2265_v35, %v2263_v34  ;;  %v2942_v62 = vsel %vm1782_vm6, 1.0, %v3172_v27  ;;  %vm2040_vm7 = vcmp.eq.s32.totalorder %v4169_v33, %v3753_v45  ;;  %vm2042_vm8 = vcmp.eq.s32.totalorder %v4169_v33, %v3757_v48 }
 0x158   :  { %vm1292_vm9 = vcmp.eq.s32.totalorder %v4145_v40, %v3760_v49  ;;  %v1972_v2 = vadd.f32 %v2940_v61, %v1712_v57  ;;  %v1974_v3 = vadd.f32 %v2942_v62, %v1714_v58  ;;  %v3004_v60 = vsel %vm2040_vm7, 1.0, %v3172_v27 }
 0x159   :  { %2345 = vmatpush.bf16.msrb.mxu1 %v2309_v37  ;;  %v3006_v28 = vsel %vm2042_vm8, 1.0, %v3172_v27  ;;  %vm1294_vm10 = vcmp.eq.s32.totalorder %v4145_v40, %v3785_v13  ;;  %v2844_v18 = vsel %vm1292_vm9, 1.0, %v3172_v27  ;;  %vm1552_vm11 = vcmp.eq.s32.totalorder %v4153_v0, %v3760_v49 }
 0x15a   :  { %vm1554_vm12 = vcmp.eq.s32.totalorder %v4153_v0, %v3785_v13  ;;  %v2232_v45 = vadd.f32 %v3004_v60, %v1972_v2  ;;  %v2234_v48 = vadd.f32 %v3006_v28, %v1974_v3  ;;  %v2846_v30 = vsel %vm1294_vm10, 1.0, %v3172_v27 }
 0x15b   :  { %v2908_v63 = vsel %vm1552_vm11, 1.0, %v3172_v27  ;;  %v2910_v11 = vsel %vm1554_vm12, 1.0, %v3172_v27  ;;  %vm1812_vm13 = vcmp.eq.s32.totalorder %v4167_v21, %v3760_v49  ;;  %vm1814_vm14 = vcmp.eq.s32.totalorder %v4167_v21, %v3785_v13 }
 0x15c   :  { %v1744_v14 = vadd.f32 %v2908_v63, %v2844_v18  ;;  %v2294_v26 = vpack.c.bf16 %v2234_v48, %v2232_v45  ;;  %v1746_v7 = vadd.f32 %v2910_v11, %v2846_v30  ;;  %v2972_v8 = vsel %vm1812_vm13, 1.0, %v3172_v27 }
 0x15d   :  { %v2974_v51 = vsel %vm1814_vm14, 1.0, %v3172_v27  ;;  %vm2072_vm15 = vcmp.eq.s32.totalorder %v4169_v33, %v3760_v49  ;;  %vm2074_vm0 = vcmp.eq.s32.totalorder %v4169_v33, %v3785_v13  ;;  %vm1255_vm1 = vcmp.eq.s32.totalorder %v4083_v38, %v3861_v46 }
 0x15e   :  { %v2004_v54 = vadd.f32 %v2972_v8, %v1744_v14  ;;  %2358 = vmatpush.bf16.msrb.mxu2 %v2294_v26  ;;  %v2006_v15 = vadd.f32 %v2974_v51, %v1746_v7  ;;  %v3036_v19 = vsel %vm2072_vm15, 1.0, %v3172_v27  ;;  %v3038_v20 = vsel %vm2074_vm0, 1.0, %v3172_v27 }
 0x15f   :  { %vm1257_vm2 = vcmp.eq.s32.totalorder %v4083_v38, %v3865_v52  ;;  %v2807_v32 = vsel %vm1255_vm1, 1.0, %v3172_v27  ;;  %vm1515_vm3 = vcmp.eq.s32.totalorder %v4087_v41, %v3861_v46  ;;  %vm1517_vm4 = vcmp.eq.s32.totalorder %v4087_v41, %v3865_v52 }
 0x160   :  { %v2264_v16 = vadd.f32 %v3036_v19, %v2004_v54  ;;  %v2809_v49 = vsel %vm1257_vm2, 1.0, %v3172_v27  ;;  %v2266_v13 = vadd.f32 %v3038_v20, %v2006_v15  ;;  %v2871_v24 = vsel %vm1515_vm3, 1.0, %v3172_v27 }
 0x161   :  { %vm1775_vm5 = vcmp.eq.s32.totalorder %v4089_v42, %v3861_v46  ;;  %v2873_v31 = vsel %vm1517_vm4, 1.0, %v3172_v27  ;;  %v1707_v43 = vadd.f32 %v2871_v24, %v2807_v32  ;;  %vm1777_vm6 = vcmp.eq.s32.totalorder %v4089_v42, %v3865_v52 }
 0x162   :  { %v2935_v4 = vsel %vm1775_vm5, 1.0, %v3172_v27  ;;  %v2310_v5 = vpack.c.bf16 %v2266_v13, %v2264_v16  ;;  %v1709_v25 = vadd.f32 %v2873_v31, %v2809_v49  ;;  %v2937_v23 = vsel %vm1777_vm6, 1.0, %v3172_v27 }
 0x163   :  { %vm2035_vm7 = vcmp.eq.s32.totalorder %v4091_v44, %v3861_v46  ;;  %v1967_v9 = vadd.f32 %v2935_v4, %v1707_v43  ;;  %vm2037_vm8 = vcmp.eq.s32.totalorder %v4091_v44, %v3865_v52  ;;  %vm1287_vm9 = vcmp.eq.s32.totalorder %v4083_v38, %v3868_v53 }
 0x164   :  { %v2999_v56 = vsel %vm2035_vm7, 1.0, %v3172_v27  ;;  %2371 = vmatpush.bf16.msrb.mxu3 %v2310_v5  ;;  %v1969_v59 = vadd.f32 %v2937_v23, %v1709_v25  ;;  %v3001_v10 = vsel %vm2037_vm8, 1.0, %v3172_v27  ;;  %vm1289_vm10 = vcmp.eq.s32.totalorder %v4083_v38, %v3893_v17 }
 0x165   :  { %v2839_v34 = vsel %vm1287_vm9, 1.0, %v3172_v27  ;;  %v2227_v35 = vadd.f32 %v2999_v56, %v1967_v9  ;;  %v2841_v55 = vsel %vm1289_vm10, 1.0, %v3172_v27  ;;  %vm1547_vm11 = vcmp.eq.s32.totalorder %v4087_v41, %v3868_v53 }
 0x166   :  { %vm1549_vm12 = vcmp.eq.s32.totalorder %v4087_v41, %v3893_v17  ;;  %v2229_v12 = vadd.f32 %v3001_v10, %v1969_v59  ;;  %v2903_v36 = vsel %vm1547_vm11, 1.0, %v3172_v27  ;;  %vm1807_vm13 = vcmp.eq.s32.totalorder %v4089_v42, %v3868_v53 }
 0x167   :  { %v2905_v22 = vsel %vm1549_vm12, 1.0, %v3172_v27  ;;  %v1739_v37 = vadd.f32 %v2903_v36, %v2839_v34  ;;  %vm1809_vm14 = vcmp.eq.s32.totalorder %v4089_v42, %v3893_v17  ;;  %v2967_v58 = vsel %vm1807_vm13, 1.0, %v3172_v27  ;;  %v4790_v59 = vpop.f32.mrf.mxu2 }
 0x168   :  { %v1741_v57 = vadd.f32 %v2905_v22, %v2841_v55  ;;  %v2291_v61 = vpack.c.bf16 %v2229_v12, %v2227_v35  ;;  %v2969_v62 = vsel %vm1809_vm14, 1.0, %v3172_v27  ;;  %vm2067_vm15 = vcmp.eq.s32.totalorder %v4091_v44, %v3868_v53  ;;  %v4792_v10 = vpop.f32.mrf.mxu3 }
 0x169   :  { %vm2069_vm0 = vcmp.eq.s32.totalorder %v4091_v44, %v3893_v17  ;;  %v1999_v2 = vadd.f32 %v2967_v58, %v1739_v37  ;;  %v3031_v60 = vsel %vm2067_vm15, 1.0, %v3172_v27  ;;  %vm1256_vm1 = vcmp.eq.s32.totalorder %v4145_v40, %v3861_v46 }
 0x16a   :  { %v2001_v3 = vadd.f32 %v2969_v62, %v1741_v57  ;;  %v3033_v28 = vsel %vm2069_vm0, 1.0, %v3172_v27  ;;  %2333 = vmatpush.bf16.msrb.mxu0 %v2291_v61  ;;  %vm1258_vm2 = vcmp.eq.s32.totalorder %v4145_v40, %v3865_v52  ;;  %vm1516_vm3 = vcmp.eq.s32.totalorder %v4153_v0, %v3861_v46 }
 0x16b   :  { %vm1518_vm4 = vcmp.eq.s32.totalorder %v4153_v0, %v3865_v52  ;;  %v2259_v18 = vadd.f32 %v3031_v60, %v1999_v2  ;;  %v2808_v48 = vsel %vm1256_vm1, 1.0, %v3172_v27  ;;  %v2810_v30 = vsel %vm1258_vm2, 1.0, %v3172_v27 }
 0x16c   :  { %v2261_v45 = vadd.f32 %v3033_v28, %v2001_v3  ;;  %v2872_v63 = vsel %vm1516_vm3, 1.0, %v3172_v27  ;;  %v2874_v11 = vsel %vm1518_vm4, 1.0, %v3172_v27  ;;  %vm1776_vm5 = vcmp.eq.s32.totalorder %v4167_v21, %v3861_v46 }
 0x16d   :  { %vm1778_vm6 = vcmp.eq.s32.totalorder %v4167_v21, %v3865_v52  ;;  %v1708_v26 = vadd.f32 %v2872_v63, %v2808_v48  ;;  %v1710_v7 = vadd.f32 %v2874_v11, %v2810_v30  ;;  %v2936_v8 = vsel %vm1776_vm5, 1.0, %v3172_v27 }
 0x16e   :  { %v2307_v14 = vpack.c.bf16 %v2261_v45, %v2259_v18  ;;  %v2938_v51 = vsel %vm1778_vm6, 1.0, %v3172_v27  ;;  %vm2036_vm7 = vcmp.eq.s32.totalorder %v4169_v33, %v3861_v46  ;;  %vm2038_vm8 = vcmp.eq.s32.totalorder %v4169_v33, %v3865_v52 }
 0x16f   :  { %vm1288_vm9 = vcmp.eq.s32.totalorder %v4145_v40, %v3868_v53  ;;  %v1968_v54 = vadd.f32 %v2936_v8, %v1708_v26  ;;  %v1970_v15 = vadd.f32 %v2938_v51, %v1710_v7  ;;  %v3000_v19 = vsel %vm2036_vm7, 1.0, %v3172_v27 }
 0x170   :  { %2346 = vmatpush.bf16.msrb.mxu1 %v2307_v14  ;;  %v3002_v20 = vsel %vm2038_vm8, 1.0, %v3172_v27  ;;  %vm1290_vm10 = vcmp.eq.s32.totalorder %v4145_v40, %v3893_v17  ;;  %v2840_v16 = vsel %vm1288_vm9, 1.0, %v3172_v27  ;;  %vm1548_vm11 = vcmp.eq.s32.totalorder %v4153_v0, %v3868_v53  ;;  %v1207_v63 = vpop.f32.mrf.mxu3 }
 0x171   :  { %vm1550_vm12 = vcmp.eq.s32.totalorder %v4153_v0, %v3893_v17  ;;  %v2228_v46 = vadd.f32 %v3000_v19, %v1968_v54  ;;  %v2230_v52 = vadd.f32 %v3002_v20, %v1970_v15  ;;  %v2842_v32 = vsel %vm1290_vm10, 1.0, %v3172_v27 }
 0x172   :  { %v2904_v49 = vsel %vm1548_vm11, 1.0, %v3172_v27  ;;  %v2906_v13 = vsel %vm1550_vm12, 1.0, %v3172_v27  ;;  %vm1808_vm13 = vcmp.eq.s32.totalorder %v4167_v21, %v3868_v53  ;;  %vm1810_vm14 = vcmp.eq.s32.totalorder %v4167_v21, %v3893_v17 }
 0x173   :  { %v1740_v24 = vadd.f32 %v2904_v49, %v2840_v16  ;;  %v2292_v31 = vpack.c.bf16 %v2230_v52, %v2228_v46  ;;  %v1742_v43 = vadd.f32 %v2906_v13, %v2842_v32  ;;  %v2968_v4 = vsel %vm1808_vm13, 1.0, %v3172_v27 }
 0x174   :  { %v2970_v5 = vsel %vm1810_vm14, 1.0, %v3172_v27  ;;  %vm2068_vm15 = vcmp.eq.s32.totalorder %v4169_v33, %v3868_v53  ;;  %vm2070_vm0 = vcmp.eq.s32.totalorder %v4169_v33, %v3893_v17  ;;  %vm1251_vm1 = vcmp.eq.s32.totalorder %v4083_v38, %v3195_v1 }
 0x175   :  { %v2000_v25 = vadd.f32 %v2968_v4, %v1740_v24  ;;  %2359 = vmatpush.bf16.msrb.mxu2 %v2292_v31  ;;  %v2002_v23 = vadd.f32 %v2970_v5, %v1742_v43  ;;  %v3032_v9 = vsel %vm2068_vm15, 1.0, %v3172_v27  ;;  %v3034_v56 = vsel %vm2070_vm0, 1.0, %v3172_v27 }
 0x176   :  { %vm1253_vm2 = vcmp.eq.s32.totalorder %v4083_v38, %v3969_v6  ;;  %v2803_v34 = vsel %vm1251_vm1, 1.0, %v3172_v27  ;;  %vm1511_vm3 = vcmp.eq.s32.totalorder %v4087_v41, %v3195_v1  ;;  %vm1513_vm4 = vcmp.eq.s32.totalorder %v4087_v41, %v3969_v6 }
 0x177   :  { %v2260_v53 = vadd.f32 %v3032_v9, %v2000_v25  ;;  %v2805_v17 = vsel %vm1253_vm2, 1.0, %v3172_v27  ;;  %v2262_v35 = vadd.f32 %v3034_v56, %v2002_v23  ;;  %v2867_v55 = vsel %vm1511_vm3, 1.0, %v3172_v27  ;;  %v2324_v23 = vld.sshfl [vmem:[#allocation1 + $0x8] sm:$0xff pattern:$0x73625140] }
 0x178   :  { %vm1771_vm5 = vcmp.eq.s32.totalorder %v4089_v42, %v3195_v1  ;;  %v2869_v12 = vsel %vm1513_vm4, 1.0, %v3172_v27  ;;  %v1703_v36 = vadd.f32 %v2867_v55, %v2803_v34  ;;  %vm1773_vm6 = vcmp.eq.s32.totalorder %v4089_v42, %v3969_v6 }
 0x179   :  { %v2931_v22 = vsel %vm1771_vm5, 1.0, %v3172_v27  ;;  %v2308_v37 = vpack.c.bf16 %v2262_v35, %v2260_v53  ;;  %v1705_v57 = vadd.f32 %v2869_v12, %v2805_v17  ;;  %v2933_v58 = vsel %vm1773_vm6, 1.0, %v3172_v27 }
 0x17a   :  { %vm2031_vm7 = vcmp.eq.s32.totalorder %v4091_v44, %v3195_v1  ;;  %v1963_v61 = vadd.f32 %v2931_v22, %v1703_v36  ;;  %vm2033_vm8 = vcmp.eq.s32.totalorder %v4091_v44, %v3969_v6  ;;  %vm1283_vm9 = vcmp.eq.s32.totalorder %v4083_v38, %v3997_v47  ;;  %v3087_v36 = vld [vmem:[#allocation5 + $0x8] sm:$0xff] }
 0x17b   :  { %v2995_v62 = vsel %vm2031_vm7, 1.0, %v3172_v27  ;;  %2372 = vmatpush.bf16.msrb.mxu3 %v2308_v37  ;;  %v1965_v2 = vadd.f32 %v2933_v58, %v1705_v57  ;;  %v2997_v3 = vsel %vm2033_vm8, 1.0, %v3172_v27  ;;  %vm1285_vm10 = vcmp.eq.s32.totalorder %v4083_v38, %v4000_v50  ;;  %v1194_v38 = vpop.f32.mrf.mxu2 }
 0x17c   :  { %v2835_v60 = vsel %vm1283_vm9, 1.0, %v3172_v27  ;;  %v2223_v28 = vadd.f32 %v2995_v62, %v1963_v61  ;;  %v2837_v18 = vsel %vm1285_vm10, 1.0, %v3172_v27  ;;  %vm1543_vm11 = vcmp.eq.s32.totalorder %v4087_v41, %v3997_v47 }
 0x17d   :  { %vm1545_vm12 = vcmp.eq.s32.totalorder %v4087_v41, %v4000_v50  ;;  %v2225_v45 = vadd.f32 %v2997_v3, %v1965_v2  ;;  %v2899_v48 = vsel %vm1543_vm11, 1.0, %v3172_v27  ;;  %vm1803_vm13 = vcmp.eq.s32.totalorder %v4089_v42, %v3997_v47 }
 0x17e   :  { %v2901_v30 = vsel %vm1545_vm12, 1.0, %v3172_v27  ;;  %v1735_v11 = vadd.f32 %v2899_v48, %v2835_v60  ;;  %vm1805_vm14 = vcmp.eq.s32.totalorder %v4089_v42, %v4000_v50  ;;  %v2963_v26 = vsel %vm1803_vm13, 1.0, %v3172_v27  ;;  %v2323_v42 = vld.sshfl [vmem:[#allocation1] sm:$0xff pattern:$0x73625140] }
 0x17f   :  { %v1737_v14 = vadd.f32 %v2901_v30, %v2837_v18  ;;  %v2289_v7 = vpack.c.bf16 %v2225_v45, %v2223_v28  ;;  %v2965_v41 = vsel %vm1805_vm14, 1.0, %v3172_v27  ;;  %vm2063_vm15 = vcmp.eq.s32.totalorder %v4091_v44, %v3997_v47 }
 0x180   :  { %vm2065_vm0 = vcmp.eq.s32.totalorder %v4091_v44, %v4000_v50  ;;  %v1995_v8 = vadd.f32 %v2963_v26, %v1735_v11  ;;  %v3027_v54 = vsel %vm2063_vm15, 1.0, %v3172_v27  ;;  %vm1252_vm1 = vcmp.eq.s32.totalorder %v4145_v40, %v3195_v1 }
 0x181   :  { %v1997_v51 = vadd.f32 %v2965_v41, %v1737_v14  ;;  %v3029_v15 = vsel %vm2065_vm0, 1.0, %v3172_v27  ;;  %2334 = vmatpush.bf16.msrb.mxu0 %v2289_v7  ;;  %vm1254_vm2 = vcmp.eq.s32.totalorder %v4145_v40, %v3969_v6  ;;  %vm1512_vm3 = vcmp.eq.s32.totalorder %v4153_v0, %v3195_v1 }
 0x182   :  { %vm1514_vm4 = vcmp.eq.s32.totalorder %v4153_v0, %v3969_v6  ;;  %v2255_v44 = vadd.f32 %v3027_v54, %v1995_v8  ;;  %v2804_v20 = vsel %vm1252_vm1, 1.0, %v3172_v27  ;;  %v2806_v16 = vsel %vm1254_vm2, 1.0, %v3172_v27 }
 0x183   :  { %v2257_v19 = vadd.f32 %v3029_v15, %v1997_v51  ;;  %v2868_v46 = vsel %vm1512_vm3, 1.0, %v3172_v27  ;;  %v2870_v52 = vsel %vm1514_vm4, 1.0, %v3172_v27  ;;  %vm1772_vm5 = vcmp.eq.s32.totalorder %v4167_v21, %v3195_v1 }
 0x184   :  { %vm1774_vm6 = vcmp.eq.s32.totalorder %v4167_v21, %v3969_v6  ;;  %v1704_v49 = vadd.f32 %v2868_v46, %v2804_v20  ;;  %v1706_v13 = vadd.f32 %v2870_v52, %v2806_v16  ;;  %v2932_v24 = vsel %vm1772_vm5, 1.0, %v3172_v27  ;;  %2335 = vmatmul.bf16.vlgmr.msrb.gmra.mxu0 %v2323_v42 }
 0x185   :  { %v2305_v32 = vpack.c.bf16 %v2257_v19, %v2255_v44  ;;  %v2934_v31 = vsel %vm1774_vm6, 1.0, %v3172_v27  ;;  %vm2032_vm7 = vcmp.eq.s32.totalorder %v4169_v33, %v3195_v1  ;;  %vm2034_vm8 = vcmp.eq.s32.totalorder %v4169_v33, %v3969_v6 }
 0x186   :  { %vm1284_vm9 = vcmp.eq.s32.totalorder %v4145_v40, %v3997_v47  ;;  %v1964_v43 = vadd.f32 %v2932_v24, %v1704_v49  ;;  %v1966_v4 = vadd.f32 %v2934_v31, %v1706_v13  ;;  %v2996_v5 = vsel %vm2032_vm7, 1.0, %v3172_v27 }
 0x187   :  { %2347 = vmatpush.bf16.msrb.mxu1 %v2305_v32  ;;  %v2998_v25 = vsel %vm2034_vm8, 1.0, %v3172_v27  ;;  %vm1286_vm10 = vcmp.eq.s32.totalorder %v4145_v40, %v4000_v50  ;;  %v2836_v9 = vsel %vm1284_vm9, 1.0, %v3172_v27  ;;  %vm1544_vm11 = vcmp.eq.s32.totalorder %v4153_v0, %v3997_v47 }
 0x188   :  { %vm1546_vm12 = vcmp.eq.s32.totalorder %v4153_v0, %v4000_v50  ;;  %v2224_v1 = vadd.f32 %v2996_v5, %v1964_v43  ;;  %v2226_v6 = vadd.f32 %v2998_v25, %v1966_v4  ;;  %v2838_v56 = vsel %vm1286_vm10, 1.0, %v3172_v27 }
 0x189   :  { %v2900_v53 = vsel %vm1544_vm11, 1.0, %v3172_v27  ;;  %v2902_v34 = vsel %vm1546_vm12, 1.0, %v3172_v27  ;;  %vm1804_vm13 = vcmp.eq.s32.totalorder %v4167_v21, %v3997_v47  ;;  %vm1806_vm14 = vcmp.eq.s32.totalorder %v4167_v21, %v4000_v50 }
 0x18a   :  { %v1736_v17 = vadd.f32 %v2900_v53, %v2836_v9  ;;  %2348 = vmatmul.bf16.vlgmr.msrb.gmra.mxu1 %v2324_v23  ;;  %v2290_v40 = vpack.c.bf16 %v2226_v6, %v2224_v1  ;;  %v1738_v35 = vadd.f32 %v2902_v34, %v2838_v56  ;;  %v2964_v0 = vsel %vm1804_vm13, 1.0, %v3172_v27 }
 0x18b   :  { %v2966_v55 = vsel %vm1806_vm14, 1.0, %v3172_v27  ;;  %vm2064_vm15 = vcmp.eq.s32.totalorder %v4169_v33, %v3997_v47  ;;  %vm2066_vm0 = vcmp.eq.s32.totalorder %v4169_v33, %v4000_v50  ;;  %vm2379_vm1 = vcmp.lt.s32.totalorder %v3087_v36, 256  ;;  %v1166_v50 = vpop.f32.mrf.mxu0  ;;  %v1179_v33 = vpop.f32.mrf.mxu1 }
 0x18c   :  { %v1996_v12 = vadd.f32 %v2964_v0, %v1736_v17  ;;  %2360 = vmatpush.bf16.msrb.mxu2 %v2290_v40  ;;  %v1998_v22 = vadd.f32 %v2966_v55, %v1738_v35  ;;  %v3028_v21 = vsel %vm2064_vm15, 1.0, %v3172_v27  ;;  %v3030_v37 = vsel %vm2066_vm0, 1.0, %v3172_v27 }
 0x18d   :  { %v3059_v57 = vsel %vm2379_vm1, 1.0, %v3172_v27  ;;  %v1206_v61 = vadd.f32 %v4792_v10, %v4790_v59  ;;  %v1180_v2 = vadd.f32 %v1179_v33, %v1166_v50  ;;  %vm1218_vm2 = vcmask 1043456  }
 0x18e   :  { %v2256_v58 = vadd.f32 %v3028_v21, %v1996_v12  ;;  %2383 = vst [vmem:[#allocation1] ss:$2 sm:$0xff] %v3059_v57  ;;  %v2258_v62 = vadd.f32 %v3030_v37, %v1998_v22  ;;  %v1219_v28 = vsel %vm1218_vm2, %v4340_v39, 0.0  ;;  %v1226_v10 = vsel %vm1218_vm2, %v4342_v29, 0.0 }
 0x18f   :  { %2361 = vmatmul.bf16.vlgmr.msrb.gmra.mxu2 %v2323_v42  ;;  %v1220_v18 = vrot.slane %v1219_v28, 4  ;;  %v1227_v14 = vrot.slane %v1226_v10, 4 }
 0x190   :  { %v2306_v47 = vpack.c.bf16 %v2258_v62, %v2256_v58 }
 0x191   :  { %v1221_v45 = vadd.f32 %v1220_v18, %v1219_v28  ;;  %v1228_v41 = vadd.f32 %v1227_v14, %v1226_v10 }
 0x192   :  { %2373 = vmatpush.bf16.msrb.mxu3 %v2306_v47 }
 0x193   :  { %v1168_v3 = vpop.f32.mrf.mxu0  ;;  %v1181_v60 = vpop.f32.mrf.mxu1  ;;  %v1222_v48 = vrot.slane %v1221_v45, 2  ;;  %v1229_v51 = vrot.slane %v1228_v41, 2 }
 0x195   :  { %2374 = vmatmul.bf16.vlgmr.msrb.gmra.mxu3 %v2324_v23  ;;  %v2384_v30 = vld.sshfl [vmem:[#allocation1] sm:$0xff pattern:$0x75316420]  ;;  %v1223_v38 = vadd.f32 %v1222_v48, %v1221_v45  ;;  %v2385_v15 = vld.sshfl [vmem:[#allocation1 + $0x8] sm:$0xff pattern:$0x75316420]  ;;  %v1230_v42 = vadd.f32 %v1229_v51, %v1228_v41 }
 0x196   :  { %v2388_v59 = vsel %vm1218_vm2, %v2384_v30, 0.0  ;;  %v2395_v44 = vsel %vm1218_vm2, %v2385_v15, 0.0 }
 0x197   :  { %v1224_v63 = vrot.slane %v1223_v38, 1  ;;  %v2389_v11 = vrot.slane %v2388_v59, 4  ;;  %v1231_v29 = vrot.slane %v1230_v42, 1  ;;  %v2396_v16 = vrot.slane %v2395_v44, 4 }
 0x199   :  { %v4894_v26 = vadd.f32 %v1224_v63, %v1223_v38  ;;  %v2390_v7 = vadd.f32 %v2389_v11, %v2388_v59  ;;  %v4902_v32 = vadd.f32 %v1231_v29, %v1230_v42  ;;  %v2397_v49 = vadd.f32 %v2396_v16, %v2395_v44 }
 0x19b   :  { %v1233_v8 = vmax.f32 %v4894_v26, 1.0  ;;  %v2391_v39 = vrot.slane %v2390_v7, 2  ;;  %v1234_v31 = vmax.f32 %v4902_v32, 1.0  ;;  %v2398_v43 = vrot.slane %v2397_v49, 2 }
 0x19c   :  { %vm1239_vm3 = vcmp.gt.f32.partialorder %v4894_v26, 0.0  ;;  %vm1240_vm7 = vcmp.gt.f32.partialorder %v4902_v32, 0.0 }
 0x19d   :  { %3074 = vrcp.f32 %v1233_v8  ;;  %v2392_v54 = vadd.f32 %v2391_v39, %v2390_v7  ;;  %v2399_v25 = vadd.f32 %v2398_v43, %v2397_v49 }
 0x19f   :  { %v2393_v19 = vrot.slane %v2392_v54, 1  ;;  %v2400_v6 = vrot.slane %v2399_v25, 1 }
 0x1a1   :  { %v4898_v46 = vadd.f32 %v2393_v19, %v2392_v54  ;;  %v4911_v35 = vadd.f32 %v2400_v6, %v2399_v25 }
 0x1a3   :  { %v3075_v20 = vpop.eup %3074  ;;  %v2402_v13 = vmax.f32 %v4898_v46, 1.0  ;;  %v2403_v21 = vmax.f32 %v4911_v35, 1.0  ;;  %vm2408_vm4 = vcmp.gt.f32.partialorder %v4898_v46, 0.0  ;;  %vm2409_vm9 = vcmp.gt.f32.partialorder %v4911_v35, 0.0 }
 0x1a4   :  { %v4900_v52 = vmul.f32 %v3075_v20, %v1180_v2 }
 0x1a5   :  { %3076 = vrcp.f32 %v2402_v13 }
 0x1a6   :  { %v2446_v24 = vmul.f32 %v4900_v52, %v4900_v52  ;;  %3078 = vrcp.f32 %v1234_v31 }
 0x1a7   :  { %3080 = vrcp.f32 %v2403_v21  ;;  %v3060_v21 = vsel %vm2408_vm4, 1.0, %v3172_v27 }
 0x1a8   :  { %v2448_v4 = vsel %vm1218_vm2, %v2446_v24, 0.0 }
 0x1a9   :  { %v2449_v23 = vrot.slane %v2448_v4, 4 }
 0x1ab   :  { %v3077_v9 = vpop.eup %3076  ;;  %v2450_v34 = vadd.f32 %v2449_v23, %v2448_v4 }
 0x1ac   :  { %v3079_v53 = vpop.eup %3078 }
 0x1ad   :  { %v4913_v0 = vmul.f32 %v3079_v53, %v1206_v61  ;;  %v2451_v12 = vrot.slane %v2450_v34, 2  ;;  %v3081_v28 = vpop.eup %3080 }
 0x1af   :  { %v2447_v57 = vmul.f32 %v4913_v0, %v4913_v0  ;;  %v2452_v58 = vadd.f32 %v2451_v12, %v2450_v34 }
 0x1b1   :  { %v2455_v61 = vsel %vm1218_vm2, %v2447_v57, 0.0  ;;  %v2453_v33 = vrot.slane %v2452_v58, 1 }
 0x1b2   :  { %v2456_v3 = vrot.slane %v2455_v61, 4 }
 0x1b3   :  { %v2454_v18 = vadd.f32 %v2453_v33, %v2452_v58 }
 0x1b4   :  { %v2457_v38 = vadd.f32 %v2456_v3, %v2455_v61 }
 0x1b6   :  { %v2458_v41 = vrot.slane %v2457_v38, 2 }
 0x1b8   :  { %v2459_v15 = vadd.f32 %v2458_v41, %v2457_v38 }
 0x1ba   :  { %v2460_v49 = vrot.slane %v2459_v15, 1 }
 0x201   :  { %v2336_v5 = vpop.f32.mrf.mxu0 }
 0x207   :  { %v2349_v1 = vpop.f32.mrf.mxu1 }
 0x208   :  { %v2350_v56 = vadd.f32 %v2349_v1, %v2336_v5  ;;  %v2461_v5 = vadd.f32 %v2460_v49, %v2459_v15 }
 0x209   :  { %v2338_v40 = vpop.f32.mrf.mxu0 }
 0x20a   :  { %v4909_v17 = vmul.f32 %v3077_v9, %v2350_v56 }
 0x20c   :  { %v2462_v55 = vmul.f32 %v4909_v17, %v4909_v17  ;;  %v2430_v14 = vmul.f32 %v4909_v17, %v4900_v52 }
 0x20e   :  { %v2464_v36 = vsel %vm1218_vm2, %v2462_v55, 0.0  ;;  %v2432_v54 = vsel %vm1218_vm2, %v2430_v14, 0.0 }
 0x20f   :  { %v2465_v22 = vrot.slane %v2464_v36, 4  ;;  %v2351_v37 = vpop.f32.mrf.mxu1  ;;  %v2433_v19 = vrot.slane %v2432_v54, 4 }
 0x211   :  { %v2466_v62 = vadd.f32 %v2465_v22, %v2464_v36  ;;  %v2434_v31 = vadd.f32 %v2433_v19, %v2432_v54  ;;  %v2801_v22 = vsel %vm1239_vm3, 1.0, %v3172_v27 }
 0x212   :  { %v2362_v50 = vpop.f32.mrf.mxu2  ;;  %v2416_v26 = vsub.f32 %v2801_v22, %v3060_v21  ;;  %v2414_v33 = vmul.f32 %v3060_v21, %v2801_v22 }
 0x213   :  { %v2467_v47 = vrot.slane %v2466_v62, 2  ;;  %v2435_v9 = vrot.slane %v2434_v31, 2 }
 0x214   :  { %vm2418_vm10 = vcmp.gt.f32.partialorder %v2416_v26, 0.0  ;;  %vm2424_vm11 = vcmp.lt.f32.partialorder %v2416_v26, 0.0 }
 0x215   :  { %v2468_v2 = vadd.f32 %v2467_v47, %v2466_v62  ;;  %v2436_v34 = vadd.f32 %v2435_v9, %v2434_v31  ;;  %v2802_v47 = vsel %vm1240_vm7, 1.0, %v3172_v27 }
 0x217   :  { %v2469_v60 = vrot.slane %v2468_v2, 1  ;;  %v2437_v12 = vrot.slane %v2436_v34, 1 }
 0x218   :  { %v2375_v48 = vpop.f32.mrf.mxu3 }
 0x219   :  { %v2470_v45 = vadd.f32 %v2469_v60, %v2468_v2  ;;  %v2376_v30 = vadd.f32 %v2375_v48, %v2362_v50  ;;  %v2438_v62 = vadd.f32 %v2437_v12, %v2436_v34  ;;  %v3061_v50 = vsel %vm2409_vm9, 1.0, %v3172_v27 }
 0x21a   :  { %v2364_v10 = vpop.f32.mrf.mxu2  ;;  %v2417_v60 = vsub.f32 %v2802_v47, %v3061_v50 }
 0x21b   :  { %v2478_v59 = vmul.f32 %v2470_v45, %v2454_v18  ;;  %v4922_v63 = vmul.f32 %v3081_v28, %v2376_v30  ;;  %v3062_v18 = vsel %vm2418_vm10, 1.0, %v3172_v27  ;;  %v3064_v45 = vsel %vm2424_vm11, 1.0, %v3172_v27 }
 0x21c   :  { %v2415_v30 = vmul.f32 %v3061_v50, %v2802_v47  ;;  %vm2419_vm14 = vcmp.gt.f32.partialorder %v2417_v60, 0.0  ;;  %vm2425_vm15 = vcmp.lt.f32.partialorder %v2417_v60, 0.0 }
 0x21d   :  { %v2480_v11 = vmax.f32 %v2478_v59, 1e-16  ;;  %v2463_v7 = vmul.f32 %v4922_v63, %v4922_v63  ;;  %v2431_v16 = vmul.f32 %v4922_v63, %v4913_v0  ;;  %v3065_v41 = vsel %vm2425_vm15, 1.0, %v3172_v27 }
 0x21f   :  { %3082 = vrsqrt.f32 %v2480_v11  ;;  %v2471_v8 = vsel %vm1218_vm2, %v2463_v7, 0.0  ;;  %v2439_v4 = vsel %vm1218_vm2, %v2431_v16, 0.0  ;;  %vm2488_vm6 = vweird.f32 %v2480_v11 }
 0x220   :  { %v2472_v39 = vrot.slane %v2471_v8, 4  ;;  %v2377_v51 = vpop.f32.mrf.mxu3  ;;  %v2440_v1 = vrot.slane %v2439_v4, 4  ;;  %v3063_v7 = vsel %vm2419_vm14, 1.0, %v3172_v27 }
 0x222   :  { %v2473_v42 = vadd.f32 %v2472_v39, %v2471_v8  ;;  %v2441_v40 = vadd.f32 %v2440_v1, %v2439_v4 }
 0x224   :  { %v2474_v20 = vrot.slane %v2473_v42, 2  ;;  %v2442_v36 = vrot.slane %v2441_v40, 2 }
 0x225   :  { %v3083_v44 = vpop.eup %3082 }
 0x226   :  { %v2483_v29 = vmul.f32 %v3083_v44, %v2480_v11  ;;  %v2475_v13 = vadd.f32 %v2474_v20, %v2473_v42  ;;  %vm2489_vm5 = vweird.f32 %v3083_v44  ;;  %v2443_v46 = vadd.f32 %v2442_v36, %v2441_v40 }
 0x227   :  { %vm2490_vm8 = vmor %vm2488_vm6, %vm2489_vm5 }
 0x228   :  { %v2484_v24 = vmul.f32 %v3083_v44, %v2483_v29  ;;  %v2476_v43 = vrot.slane %v2475_v13, 1  ;;  %v2444_v32 = vrot.slane %v2443_v46, 1 }
 0x22a   :  { %v2477_v25 = vadd.f32 %v2476_v43, %v2475_v13  ;;  %v2485_v23 = vmul.f32 0.5, %v2484_v24  ;;  %v2445_v38 = vadd.f32 %v2444_v32, %v2443_v46 }
 0x22c   :  { %v2479_v6 = vmul.f32 %v2477_v25, %v2461_v5  ;;  %v2486_v53 = vsub.f32 1.5, %v2485_v23 }
 0x22e   :  { %v2481_v56 = vmax.f32 %v2479_v6, 1e-16  ;;  %v2487_v55 = vmul.f32 %v3083_v44, %v2486_v53 }
 0x230   :  { %3084 = vrsqrt.f32 %v2481_v56  ;;  %v2491_v57 = vsel %vm2490_vm8, %v3083_v44, %v2487_v55  ;;  %vm2498_vm13 = vweird.f32 %v2481_v56 }
 0x231   :  { %v2502_v2 = vmul.f32 %v2491_v57, %v2438_v62 }
 0x233   :  { %v2504_v35 = vmul.f32 %v2502_v2, %v2414_v33 }
 0x235   :  { %v2506_v10 = vadd.f32 %v3062_v18, %v2504_v35  ;;  %v2512_v11 = vadd.f32 %v3064_v45, %v2504_v35 }
 0x236   :  { %v3085_v37 = vpop.eup %3084 }
 0x237   :  { %v2493_v58 = vmul.f32 %v3085_v37, %v2481_v56  ;;  %vm2499_vm12 = vweird.f32 %v3085_v37  ;;  %v2508_v39 = vmul.f32 %v2506_v10, %v4900_v52  ;;  %v2514_v51 = vmul.f32 %v2512_v11, %v4909_v17 }
 0x238   :  { %vm2500_vm0 = vmor %vm2498_vm13, %vm2499_vm12 }
 0x239   :  { %v2494_v61 = vmul.f32 %v3085_v37, %v2493_v58  ;;  %v2516_v19 = vadd.f32 %v2514_v51, %v2508_v39 }
 0x23b   :  { %v2495_v3 = vmul.f32 0.5, %v2494_v61  ;;  %v2518_v27 = vmul.f32 0.5, %v2516_v19 }
 0x23d   :  { %v2496_v28 = vsub.f32 1.5, %v2495_v3 }
 0x23f   :  { %v2497_v48 = vmul.f32 %v3085_v37, %v2496_v28 }
 0x241   :  { %v2501_v59 = vsel %vm2500_vm0, %v3085_v37, %v2497_v48 }
 0x242   :  { %v2503_v14 = vmul.f32 %v2501_v59, %v2445_v38 }
 0x244   :  { %v2505_v8 = vmul.f32 %v2503_v14, %v2415_v30 }
 0x246   :  { %v2507_v54 = vadd.f32 %v3063_v7, %v2505_v8  ;;  %v2513_v15 = vadd.f32 %v3065_v41, %v2505_v8 }
 0x248   :  { %v2509_v42 = vmul.f32 %v2507_v54, %v4913_v0  ;;  %v2515_v44 = vmul.f32 %v2513_v15, %v4922_v63 }
 0x24a   :  { %v2517_v20 = vadd.f32 %v2515_v44, %v2509_v42 }
 0x24c   :  { %v2519_v29 = vmul.f32 0.5, %v2517_v20 }
 0x24e   :  { %v2522_v16 = vrot.slane %v2519_v29, 4 }
 0x250   :  { %v2523_v52 = vsel %vm1218_vm2, %v2518_v27, %v2522_v16 }
 0x251   :  { %2525 = vst [vmem:[#allocation7] sm:$0xff] %v2523_v52 }
 0x252   :  { %2536 = dma.vmem_to_hbm [thread:$0]  %s2532_s1, 128, %s2534_s25, [#allocation4]  }
 0x253   :  { %3164 = dma.done.wait [#allocation4], 128  }
 0x254   :  { %3165 = vsyncadd [#allocation4], 4294967168 }
 0x255   :  { %2541 = vsyncpa [#allocation3], 1 }
 0x256   :  { %2542 = vsyncpa [#allocation6], 1 }
 0x257   :  { %2543 = vsyncpa [#allocation4], 1 }

</bundles_post_ra>
